<compile_context>
chip_gen: v6e
topology: v6e:2x2x1
jax: 0.10.0
libtpu: 0.0.40
codegen_flags: <defaults>
</compile_context>

<pallas_src>
import functools

import jax
import jax.numpy as jnp
import numpy as np
from jax import lax
from jax.experimental import pallas as pl
from jax.experimental.pallas import tpu as pltpu

LEAKY_SLOPE = 0.2
BN_EPS = 1e-5

INPUT_NC = 4
OUTPUT_NC = 3
NGF = 8

LANES = 128
ROW_TILE_CAP = 1024          # per-step VMEM is tiny; big tiles amortize overhead


def _round_up(n, m):
    return ((n + m - 1) // m) * m


# ------------------------------ Pallas kernel --------------------------------

def _flat_tap_kernel(*refs, offsets, tm, blk_h, pre_act, out_act, emit_stats):
    """Multi-tap conv over flat spatial rows, one deep MXU matmul per tile.

    y[m, :] = act_out( concat_t( act_in(x[m + off_t, :] * sc + sh) ) @ W + b )

    Optionally accumulates masked per-channel sum / sum-of-squares of the
    pre-activation output for a fused training-mode BatchNorm.
    """
    if emit_stats:
        x_ref, w_ref, sc_ref, sh_ref, b_ref, mask_ref, y_ref, s_ref, ss_ref = refs
    else:
        x_ref, w_ref, sc_ref, sh_ref, b_ref, y_ref = refs

    row0 = pl.multiple_of(pl.program_id(1) * tm, tm)
    # Row window this tile needs (tap overlap included).  Producer's folded BN
    # affine + pre-activation run once on the window in f32, then a single
    # bf16 cast (hoisted out of the tap loop).
    xw = x_ref[pl.ds(row0, blk_h), :].astype(jnp.float32)
    xw = xw * sc_ref[...] + sh_ref[...]
    if pre_act == "leaky":
        xw = jnp.where(xw >= 0, xw, LEAKY_SLOPE * xw)
    elif pre_act == "relu":
        xw = jnp.maximum(xw, 0.0)
    xw = xw.astype(jnp.bfloat16)

    # Single deep matmul: (tm, T*K) @ (T*K, Npad) with f32 accumulation.
    xcat = jnp.concatenate([xw[off:off + tm, :] for off in offsets], axis=-1)
    acc = jnp.dot(xcat, w_ref[...], preferred_element_type=jnp.float32)
    acc = acc + b_ref[...]

    if emit_stats:
        @pl.when(pl.program_id(1) == 0)
        def _init():
            s_ref[...] = jnp.zeros_like(s_ref)
            ss_ref[...] = jnp.zeros_like(ss_ref)

        m = mask_ref[...]                       # (tm, 1): 1.0 on valid rows
        s_ref[...] += jnp.sum(acc * m, axis=0, keepdims=True)
        ss_ref[...] += jnp.sum(acc * acc * m, axis=0, keepdims=True)

    y = jnp.tanh(acc) if out_act == "tanh" else acc
    y_ref[...] = y.astype(y_ref.dtype)          # lane-dense (Npad % 128 == 0)


def _flat_tap_conv(x_flat, w_cat, offsets, kscale, kshift, bias, *, pre_act,
                   out_act, emit_stats, w_flat, w_valid, h_valid, out_dtype):
    """x_flat: (N, R, K) flat spatial rows.  w_cat: (T*K, Nout) bf16 weights."""
    N, R, K = x_flat.shape
    TK, Nout = w_cat.shape
    T = len(offsets)
    assert TK == T * K
    max_off = max(offsets)

    # Lane-dense output: pad Nout to a multiple of 128 so every store is an
    # unmasked vst.  (No-op at production channel counts; negligible bytes at
    # these toy sizes.)
    Npad = _round_up(Nout, LANES)
    if Npad != Nout:
        w_cat = jnp.pad(w_cat, ((0, 0), (0, Npad - Nout)))
        bias = jnp.pad(bias, ((0, 0), (0, Npad - Nout)))

    # Row tile: as big as the layer allows (amortizes per-step overhead).
    tm = min(_round_up(R, 32), ROW_TILE_CAP)
    n_tiles = -(-R // tm)
    mp = n_tiles * tm
    blk_h = _round_up(tm + max_off, 8)          # rows a tile reads (tap overlap)
    r_need = (n_tiles - 1) * tm + blk_h

    # One flat activation per batch as a full-axis block (re-DMAed only when
    # the batch index changes); the overlapping window is sliced in-kernel.
    # For these channel counts every layer's flat activation fits VMEM easily.
    xf = jnp.pad(x_flat.astype(jnp.bfloat16), ((0, 0), (0, r_need - R), (0, 0)))

    in_specs = [
        pl.BlockSpec((None, r_need, K), lambda n, i: (n, 0, 0)),
        pl.BlockSpec((TK, Npad), lambda n, i: (0, 0)),
        pl.BlockSpec((1, K), lambda n, i: (0, 0)),
        pl.BlockSpec((1, K), lambda n, i: (0, 0)),
        pl.BlockSpec((1, Npad), lambda n, i: (0, 0)),
    ]
    operands = [xf, w_cat, kscale, kshift, bias]
    out_shapes = [jax.ShapeDtypeStruct((N, mp, Npad), out_dtype)]
    out_specs = [pl.BlockSpec((None, tm, Npad), lambda n, i: (n, i, 0))]
    if emit_stats:
        idx = np.arange(mp)
        valid = ((idx % w_flat) < w_valid) & ((idx // w_flat) < h_valid)
        mask = jnp.asarray(valid.reshape(mp, 1), jnp.float32)
        in_specs.append(pl.BlockSpec((tm, 1), lambda n, i: (i, 0)))
        operands.append(mask)
        out_shapes += [jax.ShapeDtypeStruct((N, 1, Npad), jnp.float32)] * 2
        out_specs += [pl.BlockSpec((None, 1, Npad), lambda n, i: (n, 0, 0))] * 2

    kernel = functools.partial(_flat_tap_kernel, offsets=tuple(offsets), tm=tm,
                               blk_h=blk_h, pre_act=pre_act, out_act=out_act,
                               emit_stats=emit_stats)
    # Batch axis is megacore-parallel; the row axis carries the BN-stats
    # accumulator only when stats are emitted.
    row_sem = "arbitrary" if emit_stats else "parallel"
    res = pl.pallas_call(
        kernel,
        out_shape=tuple(out_shapes),
        grid=(N, n_tiles),
        in_specs=in_specs,
        out_specs=tuple(out_specs),
        compiler_params=pltpu.CompilerParams(
            dimension_semantics=("parallel", row_sem)),
    )(*operands)
    y = res[0][:, :, :Nout]
    stats = (res[1][..., :Nout], res[2][..., :Nout]) if emit_stats else None
    return y, stats


# -------------------------- layer wrappers (host glue) -----------------------

def _neutral_pad(x_nhwc, scale_c, shift_c, has_affine):
    """Spatial pad by 1 (bf16).  When a BN affine is folded into the consumer
    kernel, pad with -shift/scale so padded positions become exactly 0 after
    the in-kernel affine + activation (matching PyTorch's zero padding of the
    already-normalized/activated conv input)."""
    N, H, W, _ = x_nhwc.shape
    xp = jnp.pad(x_nhwc.astype(jnp.bfloat16), ((0, 0), (1, 1), (1, 1), (0, 0)))
    if has_affine:
        interior = jnp.pad(jnp.ones((1, H, W, 1), jnp.bool_),
                           ((0, 0), (1, 1), (1, 1), (0, 0)))
        pad_val = (-shift_c / scale_c).astype(jnp.bfloat16)
        xp = jnp.where(interior, xp, pad_val[None, None, None, :])
    return xp


def _bn_affine(stats, bn, *, count, n_par, cout):
    gamma, beta = bn
    s = stats[0].sum(axis=(0, 1)).reshape(n_par, cout).sum(axis=0)
    ss = stats[1].sum(axis=(0, 1)).reshape(n_par, cout).sum(axis=0)
    mean = s / count
    var = ss / count - mean * mean            # biased (training-mode) variance
    scale = gamma / jnp.sqrt(var + BN_EPS)
    shift = beta - mean * scale
    return scale, shift


def conv_down(x, w_cat, *, pre_act, in_affine=None, bn=None):
    """Conv2d(k=4, s=2, p=1, bias=False) with fused input affine / activation
    and (optionally) fused BatchNorm statistics on the output."""
    N, H, W, Cin = x.shape
    assert H % 2 == 0 and W % 2 == 0
    Cout = w_cat.shape[-1]
    if in_affine is None:
        scale_c = jnp.ones((Cin,), jnp.float32)
        shift_c = jnp.zeros((Cin,), jnp.float32)
    else:
        scale_c, shift_c = in_affine
    xp = _neutral_pad(x, scale_c, shift_c, in_affine is not None)
    hz, wz = (H + 2) // 2, (W + 2) // 2
    # space-to-depth(2): stride-2 4x4 conv -> stride-1 2x2-tap conv over 4*Cin
    z = xp.reshape(N, hz, 2, wz, 2, Cin).transpose(0, 1, 3, 2, 4, 5)
    z = z.reshape(N, hz * wz, 4 * Cin)
    offsets = (0, 1, wz, wz + 1)
    kscale = jnp.tile(scale_c, 4)[None, :]
    kshift = jnp.tile(shift_c, 4)[None, :]
    bias = jnp.zeros((1, Cout), jnp.float32)
    yv, stats = _flat_tap_conv(z, w_cat, offsets, kscale, kshift, bias,
                               pre_act=pre_act, out_act=None,
                               emit_stats=bn is not None,
                               w_flat=wz, w_valid=wz - 1, h_valid=hz - 1,
                               out_dtype=jnp.bfloat16)
    ho, wo = hz - 1, wz - 1
    y = yv[:, :hz * wz].reshape(N, hz, wz, Cout)[:, :ho, :wo]
    if bn is None:
        return y
    return y, _bn_affine(stats, bn, count=N * ho * wo, n_par=1, cout=Cout)


def tconv_up(x, w_cat, *, pre_act, in_affine=None, bn=None, bias=None,
             out_act=None, out_dtype=jnp.bfloat16):
    """ConvTranspose2d(k=4, s=2, p=1) via sub-pixel (2x2-parity) decomposition:
    one 9-tap stride-1 conv producing all 4 parity planes as channel blocks."""
    N, H, W, Cin = x.shape
    Nout = w_cat.shape[-1]
    Cout = Nout // 4
    if in_affine is None:
        scale_c = jnp.ones((Cin,), jnp.float32)
        shift_c = jnp.zeros((Cin,), jnp.float32)
    else:
        scale_c, shift_c = in_affine
    xp = _neutral_pad(x, scale_c, shift_c, in_affine is not None)
    hf, wf = H + 2, W + 2
    flat = xp.reshape(N, hf * wf, Cin)
    offsets = tuple(i * wf + j for i in range(3) for j in range(3))
    kscale = scale_c[None, :]
    kshift = shift_c[None, :]
    bvec = (jnp.tile(bias, 4)[None, :] if bias is not None
            else jnp.zeros((1, Nout), jnp.float32))
    yv, stats = _flat_tap_conv(flat, w_cat, offsets, kscale, kshift, bvec,
                               pre_act=pre_act, out_act=out_act,
                               emit_stats=bn is not None,
                               w_flat=wf, w_valid=W, h_valid=H,
                               out_dtype=out_dtype)
    y = yv[:, :hf * wf].reshape(N, hf, wf, 2, 2, Cout)[:, :H, :W]
    y = y.transpose(0, 1, 3, 2, 4, 5).reshape(N, 2 * H, 2 * W, Cout)
    if bn is None:
        return y
    return y, _bn_affine(stats, bn, count=N * 4 * H * W, n_par=4, cout=Cout)


# ---------------------- weight packing (once, outside forward) ---------------

def pack_conv_weight(w_oihw):
    """(Cout, Cin, 4, 4) -> (4*4*Cin, Cout): tap-concatenated weights for the
    space-to-depth form (taps ordered as offsets (0, 1, wz, wz+1))."""
    Cout, Cin = w_oihw.shape[0], w_oihw.shape[1]
    w = jnp.transpose(w_oihw, (2, 3, 1, 0)).reshape(2, 2, 2, 2, Cin, Cout)
    w = jnp.transpose(w, (0, 2, 1, 3, 4, 5)).reshape(4, 4 * Cin, Cout)
    return w.reshape(4 * 4 * Cin, Cout).astype(jnp.bfloat16)


def pack_tconv_weight(w_iohw):
    """(Cin, Cout, 4, 4) -> (9*Cin, 4*Cout): tap-concatenated weights for the
    parity decomposition (taps ordered row-major over the 3x3 stencil)."""
    w = np.asarray(jax.device_get(w_iohw), np.float32)
    Cin, Cout = w.shape[:2]
    wt = np.zeros((3, 3, Cin, 4 * Cout), np.float32)
    for r in range(2):
        for s in range(2):
            par = r * 2 + s
            for a in range(2):
                for b in range(2):
                    wt[r + a, s + b, :, par * Cout:(par + 1) * Cout] += \
                        w[:, :, 3 - r - 2 * a, 3 - s - 2 * b]
    return jnp.asarray(wt.reshape(9 * Cin, 4 * Cout), jnp.bfloat16)


def prepare_params(p):
    prep = dict(p)
    prep['c1_pk'] = pack_conv_weight(p['c1_w'])
    prep['c2_pk'] = pack_conv_weight(p['c2_w'])
    prep['c3_pk'] = pack_conv_weight(p['c3_w'])
    prep['t3_pk'] = pack_tconv_weight(p['t3_w'])
    prep['t2_pk'] = pack_tconv_weight(p['t2_w'])
    prep['t1_pk'] = pack_tconv_weight(p['t1_w'])
    return prep


def init_params(key):
    ks = jax.random.split(key, 13)
    w = lambda k, s: 0.05 * jax.random.normal(k, s, jnp.float32)
    g = lambda k, c: 1.0 + 0.1 * jax.random.normal(k, (c,), jnp.float32)
    b = lambda k, c: 0.1 * jax.random.normal(k, (c,), jnp.float32)
    return {
        # outermost down: Conv2d(input_nc, ngf, 4, 2, 1, bias=False)
        'c1_w': w(ks[0], (NGF, INPUT_NC, 4, 4)),
        # middle down: Conv2d(ngf, ngf*2) + BatchNorm2d(ngf*2)
        'c2_w': w(ks[1], (NGF * 2, NGF, 4, 4)),
        'bn2_g': g(ks[2], NGF * 2), 'bn2_b': b(ks[3], NGF * 2),
        # innermost down: Conv2d(ngf*2, ngf*4)
        'c3_w': w(ks[4], (NGF * 4, NGF * 2, 4, 4)),
        # innermost up: ConvTranspose2d(ngf*4, ngf*2) + BatchNorm2d(ngf*2)
        't3_w': w(ks[5], (NGF * 4, NGF * 2, 4, 4)),
        'bnt3_g': g(ks[6], NGF * 2), 'bnt3_b': b(ks[7], NGF * 2),
        # middle up: ConvTranspose2d(ngf*4, ngf) + BatchNorm2d(ngf)
        't2_w': w(ks[8], (NGF * 4, NGF, 4, 4)),
        'bnt2_g': g(ks[9], NGF), 'bnt2_b': b(ks[10], NGF),
        # outermost up: ConvTranspose2d(ngf*2, output_nc, bias=True) + Tanh
        't1_w': w(ks[11], (NGF * 2, OUTPUT_NC, 4, 4)),
        't1_b': b(ks[12], OUTPUT_NC),
    }


# ------------------------------- forward pass --------------------------------

def unet_forward(x_nchw, prep):
    x = jnp.transpose(x_nchw, (0, 2, 3, 1))                       # NHWC
    # outermost down: conv only
    h1 = conv_down(x, prep['c1_pk'], pre_act=None)
    # middle down: LeakyReLU -> conv -> BN (stats fused into the conv kernel)
    h2, bn2 = conv_down(h1, prep['c2_pk'], pre_act='leaky',
                        bn=(prep['bn2_g'], prep['bn2_b']))
    # innermost down: LeakyReLU(BN(h2)) -> conv (BN affine folded into kernel)
    h3 = conv_down(h2, prep['c3_pk'], pre_act='leaky', in_affine=bn2)
    # innermost up: ReLU -> tconv -> BN (stats fused)
    t3, bnt3 = tconv_up(h3, prep['t3_pk'], pre_act='relu',
                        bn=(prep['bnt3_g'], prep['bnt3_b']))
    # innermost skip: cat([BN(h2), BN(t3)]) kept as raw tensors + folded affines
    c3 = jnp.concatenate([h2, t3], axis=-1)
    aff3 = (jnp.concatenate([bn2[0], bnt3[0]]),
            jnp.concatenate([bn2[1], bnt3[1]]))
    # middle up: ReLU -> tconv -> BN (stats fused)
    t2, bnt2 = tconv_up(c3, prep['t2_pk'], pre_act='relu', in_affine=aff3,
                        bn=(prep['bnt2_g'], prep['bnt2_b']))
    # middle skip: cat([h1, BN(t2)])
    c2 = jnp.concatenate([h1, t2], axis=-1)
    nc1 = h1.shape[-1]
    aff2 = (jnp.concatenate([jnp.ones((nc1,), jnp.float32), bnt2[0]]),
            jnp.concatenate([jnp.zeros((nc1,), jnp.float32), bnt2[1]]))
    # outermost up: ReLU -> tconv(+bias) -> Tanh, no skip
    y = tconv_up(c2, prep['t1_pk'], pre_act='relu', in_affine=aff2,
                 bias=prep['t1_b'], out_act='tanh', out_dtype=jnp.float32)
    return jnp.transpose(y, (0, 3, 1, 2))                         # NCHW


# ----------------------------- pure-JAX reference ----------------------------

def ref_forward(x, p):
    def conv(v, w):
        return lax.conv_general_dilated(
            v, w, (2, 2), ((1, 1), (1, 1)),
            dimension_numbers=("NCHW", "OIHW", "NCHW"),
            precision=lax.Precision.HIGHEST)

    def tconv(v, w_iohw, b=None):
        wf = w_iohw[:, :, ::-1, ::-1]
        wo = jnp.transpose(wf, (1, 0, 2, 3))
        y = lax.conv_general_dilated(
            v, wo, (1, 1), ((2, 2), (2, 2)), lhs_dilation=(2, 2),
            dimension_numbers=("NCHW", "OIHW", "NCHW"),
            precision=lax.Precision.HIGHEST)
        return y if b is None else y + b[None, :, None, None]

    def bn(v, gamma, beta):
        mean = jnp.mean(v, axis=(0, 2, 3), keepdims=True)
        var = jnp.mean((v - mean) ** 2, axis=(0, 2, 3), keepdims=True)
        vh = (v - mean) / jnp.sqrt(var + BN_EPS)
        return vh * gamma[None, :, None, None] + beta[None, :, None, None]

    leaky = lambda v: jnp.where(v >= 0, v, LEAKY_SLOPE * v)
    relu = lambda v: jnp.maximum(v, 0.0)

    h1 = conv(x, p['c1_w'])
    h2 = conv(leaky(h1), p['c2_w'])
    b2 = bn(h2, p['bn2_g'], p['bn2_b'])
    h3 = conv(leaky(b2), p['c3_w'])
    t3 = tconv(relu(h3), p['t3_w'])
    n3 = bn(t3, p['bnt3_g'], p['bnt3_b'])
    c3 = jnp.concatenate([b2, n3], axis=1)
    t2 = tconv(relu(c3), p['t2_w'])
    n2 = bn(t2, p['bnt2_g'], p['bnt2_b'])
    c2 = jnp.concatenate([h1, n2], axis=1)
    t1 = tconv(relu(c2), p['t1_w'], p['t1_b'])
    return jnp.tanh(t1)


# ------------------------------------ main ------------------------------------

if __name__ == "__main__":
    key = jax.random.PRNGKey(0)
    kx, kp = jax.random.split(key)

    # spatial 16 -> 8 -> 4 -> 2 (down) -> 4 -> 8 -> 16 (up)
    x = jax.random.normal(kx, (2, INPUT_NC, 16, 16), jnp.float32)
    params = init_params(kp)
    prep = prepare_params(params)       # one-time weight repack (bf16, tap form)

    fwd = jax.jit(unet_forward)
    out = jax.block_until_ready(fwd(x, prep))

    ref = jax.block_until_ready(ref_forward(x, params))
    assert out.shape == ref.shape == (2, OUTPUT_NC, 16, 16), (out.shape, ref.shape)
    # bf16 MXU operands set the error floor vs the f32 HIGHEST-precision reference.
    np.testing.assert_allclose(np.asarray(out), np.asarray(ref),
                               rtol=3e-2, atol=3e-2)
    print("KERNEL_OK")
</pallas_src>

<mosaic_0001>
module attributes {stable_mosaic.version = 11 : i64} {
  func.func @_flat_tap_kernel(%arg0: i32, %arg1: i32, %arg2: memref<1x112x16xbf16, #tpu.memory_space<vmem>>, %arg3: memref<64x128xbf16, #tpu.memory_space<vmem>>, %arg4: memref<1x16xf32, #tpu.memory_space<vmem>>, %arg5: memref<1x16xf32, #tpu.memory_space<vmem>>, %arg6: memref<1x128xf32, #tpu.memory_space<vmem>>, %arg7: memref<1x96x128xbf16, #tpu.memory_space<vmem>>) attributes {dimension_semantics = [#tpu.dimension_semantics<parallel>, #tpu.dimension_semantics<parallel>], iteration_bounds = array<i64: 2, 1>, scalar_prefetch = 0 : i64, scratch_operands = 0 : i64, tpu.core_type = #tpu.core_type<tc>, window_params = [{transform_indices = @transform_0, window_bounds = array<i64: 1, 112, 16>}, {pipeline_mode = #tpu.pipeline_mode<synchronous>, transform_indices = @transform_1, window_bounds = array<i64: 64, 128>}, {pipeline_mode = #tpu.pipeline_mode<synchronous>, transform_indices = @transform_2, window_bounds = array<i64: 1, 16>}, {pipeline_mode = #tpu.pipeline_mode<synchronous>, transform_indices = @transform_3, window_bounds = array<i64: 1, 16>}, {pipeline_mode = #tpu.pipeline_mode<synchronous>, transform_indices = @transform_4, window_bounds = array<i64: 1, 128>}, {transform_indices = @transform_5, window_bounds = array<i64: 1, 96, 128>}]} {
    %c96_i32 = arith.constant 96 : i32
    %0 = arith.muli %arg1, %c96_i32 : i32
    %1 = tpu.assume_multiple %0, 96 : i32
    %c0 = arith.constant 0 : index
    %2 = arith.index_cast %1 : i32 to index
    %c0_0 = arith.constant 0 : index
    %3 = vector.load %arg2[%c0, %2, %c0_0] : memref<1x112x16xbf16, #tpu.memory_space<vmem>>, vector<1x112x16xbf16>
    %4 = vector.shape_cast %3 : vector<1x112x16xbf16> to vector<112x16xbf16>
    %5 = arith.extf %4 : vector<112x16xbf16> to vector<112x16xf32>
    %c0_1 = arith.constant 0 : index
    %c0_2 = arith.constant 0 : index
    %6 = vector.load %arg4[%c0_1, %c0_2] : memref<1x16xf32, #tpu.memory_space<vmem>>, vector<1x16xf32>
    %7 = vector.broadcast %6 : vector<1x16xf32> to vector<112x16xf32>
    %8 = arith.mulf %5, %7 : vector<112x16xf32>
    %c0_3 = arith.constant 0 : index
    %c0_4 = arith.constant 0 : index
    %9 = vector.load %arg5[%c0_3, %c0_4] : memref<1x16xf32, #tpu.memory_space<vmem>>, vector<1x16xf32>
    %10 = vector.broadcast %9 : vector<1x16xf32> to vector<112x16xf32>
    %11 = arith.addf %8, %10 : vector<112x16xf32>
    %12 = arith.truncf %11 : vector<112x16xf32> to vector<112x16xbf16>
    %13 = vector.extract_strided_slice %12 {offsets = [0, 0], sizes = [96, 16], strides = [1, 1]} : vector<112x16xbf16> to vector<96x16xbf16>
    %14 = vector.extract_strided_slice %12 {offsets = [1, 0], sizes = [96, 16], strides = [1, 1]} : vector<112x16xbf16> to vector<96x16xbf16>
    %15 = vector.extract_strided_slice %12 {offsets = [9, 0], sizes = [96, 16], strides = [1, 1]} : vector<112x16xbf16> to vector<96x16xbf16>
    %16 = vector.extract_strided_slice %12 {offsets = [10, 0], sizes = [96, 16], strides = [1, 1]} : vector<112x16xbf16> to vector<96x16xbf16>
    %17 = tpu.concatenate %13, %14, %15, %16 in 1 : vector<96x16xbf16>, vector<96x16xbf16>, vector<96x16xbf16>, vector<96x16xbf16> -> vector<96x64xbf16>
    %c0_5 = arith.constant 0 : index
    %c0_6 = arith.constant 0 : index
    %18 = vector.load %arg3[%c0_5, %c0_6] : memref<64x128xbf16, #tpu.memory_space<vmem>>, vector<64x128xbf16>
    %cst = arith.constant dense<0.000000e+00> : vector<96x128xf32>
    %19 = tpu.matmul %17, %18, %cst {dimension_numbers = #tpu.dot_dimension_numbers<[1], [0], [0], [1], [0, 0, 1, 1], [], []>} : vector<96x64xbf16>, vector<64x128xbf16>, vector<96x128xf32> -> vector<96x128xf32>
    %c0_7 = arith.constant 0 : index
    %c0_8 = arith.constant 0 : index
    %20 = vector.load %arg6[%c0_7, %c0_8] : memref<1x128xf32, #tpu.memory_space<vmem>>, vector<1x128xf32>
    %21 = vector.broadcast %20 : vector<1x128xf32> to vector<96x128xf32>
    %22 = arith.addf %19, %21 : vector<96x128xf32>
    %23 = arith.truncf %22 : vector<96x128xf32> to vector<96x128xbf16>
    %c0_9 = arith.constant 0 : index
    %c0_10 = arith.constant 0 : index
    %c0_11 = arith.constant 0 : index
    %24 = vector.load %arg7[%c0_9, %c0_10, %c0_11] : memref<1x96x128xbf16, #tpu.memory_space<vmem>>, vector<1x96x128xbf16>
    %25 = vector.shape_cast %24 : vector<1x96x128xbf16> to vector<96x128xbf16>
    %26 = vector.shape_cast %23 : vector<96x128xbf16> to vector<1x96x128xbf16>
    tpu.vector_store %arg7[%c0_9, %c0_10, %c0_11], %26 {strides = array<i32>} : memref<1x96x128xbf16, #tpu.memory_space<vmem>>, vector<1x96x128xbf16>,
    return
  }
  func.func @transform_0(%arg0: i32, %arg1: i32) -> (i32, i32, i32) {
    %c0_i32 = arith.constant 0 : i32
    %c0_i32_0 = arith.constant 0 : i32
    %c0_i32_1 = arith.constant 0 : i32
    return %arg0, %c0_i32, %c0_i32_0 : i32, i32, i32
  }
  func.func @transform_1(%arg0: i32, %arg1: i32) -> (i32, i32) {
    %c0_i32 = arith.constant 0 : i32
    %c0_i32_0 = arith.constant 0 : i32
    %c0_i32_1 = arith.constant 0 : i32
    return %c0_i32, %c0_i32_0 : i32, i32
  }
  func.func @transform_2(%arg0: i32, %arg1: i32) -> (i32, i32) {
    %c0_i32 = arith.constant 0 : i32
    %c0_i32_0 = arith.constant 0 : i32
    %c0_i32_1 = arith.constant 0 : i32
    return %c0_i32, %c0_i32_0 : i32, i32
  }
  func.func @transform_3(%arg0: i32, %arg1: i32) -> (i32, i32) {
    %c0_i32 = arith.constant 0 : i32
    %c0_i32_0 = arith.constant 0 : i32
    %c0_i32_1 = arith.constant 0 : i32
    return %c0_i32, %c0_i32_0 : i32, i32
  }
  func.func @transform_4(%arg0: i32, %arg1: i32) -> (i32, i32) {
    %c0_i32 = arith.constant 0 : i32
    %c0_i32_0 = arith.constant 0 : i32
    %c0_i32_1 = arith.constant 0 : i32
    return %c0_i32, %c0_i32_0 : i32, i32
  }
  func.func @transform_5(%arg0: i32, %arg1: i32) -> (i32, i32, i32) {
    %c0_i32 = arith.constant 0 : i32
    %c0_i32_0 = arith.constant 0 : i32
    return %arg0, %arg1, %c0_i32 : i32, i32, i32
  }
}

module attributes {stable_mosaic.version = 11 : i64} {
  func.func @_flat_tap_kernel(%arg0: i32, %arg1: i32, %arg2: memref<1x40x32xbf16, #tpu.memory_space<vmem>>, %arg3: memref<128x128xbf16, #tpu.memory_space<vmem>>, %arg4: memref<1x32xf32, #tpu.memory_space<vmem>>, %arg5: memref<1x32xf32, #tpu.memory_space<vmem>>, %arg6: memref<1x128xf32, #tpu.memory_space<vmem>>, %arg7: memref<32x1xf32, #tpu.memory_space<vmem>>, %arg8: memref<1x32x128xbf16, #tpu.memory_space<vmem>>, %arg9: memref<1x1x128xf32, #tpu.memory_space<vmem>>, %arg10: memref<1x1x128xf32, #tpu.memory_space<vmem>>) attributes {dimension_semantics = [#tpu.dimension_semantics<parallel>, #tpu.dimension_semantics<arbitrary>], iteration_bounds = array<i64: 2, 1>, scalar_prefetch = 0 : i64, scratch_operands = 0 : i64, tpu.core_type = #tpu.core_type<tc>, window_params = [{transform_indices = @transform_0, window_bounds = array<i64: 1, 40, 32>}, {pipeline_mode = #tpu.pipeline_mode<synchronous>, transform_indices = @transform_1, window_bounds = array<i64: 128, 128>}, {pipeline_mode = #tpu.pipeline_mode<synchronous>, transform_indices = @transform_2, window_bounds = array<i64: 1, 32>}, {pipeline_mode = #tpu.pipeline_mode<synchronous>, transform_indices = @transform_3, window_bounds = array<i64: 1, 32>}, {pipeline_mode = #tpu.pipeline_mode<synchronous>, transform_indices = @transform_4, window_bounds = array<i64: 1, 128>}, {transform_indices = @transform_5, window_bounds = array<i64: 32, 1>}, {transform_indices = @transform_6, window_bounds = array<i64: 1, 32, 128>}, {transform_indices = @transform_7, window_bounds = array<i64: 1, 1, 128>}, {transform_indices = @transform_8, window_bounds = array<i64: 1, 1, 128>}]} {
    %c32_i32 = arith.constant 32 : i32
    %0 = arith.muli %arg1, %c32_i32 : i32
    %1 = tpu.assume_multiple %0, 32 : i32
    %c0 = arith.constant 0 : index
    %2 = arith.index_cast %1 : i32 to index
    %c0_0 = arith.constant 0 : index
    %3 = vector.load %arg2[%c0, %2, %c0_0] : memref<1x40x32xbf16, #tpu.memory_space<vmem>>, vector<1x40x32xbf16>
    %4 = vector.shape_cast %3 : vector<1x40x32xbf16> to vector<40x32xbf16>
    %5 = arith.extf %4 : vector<40x32xbf16> to vector<40x32xf32>
    %c0_1 = arith.constant 0 : index
    %c0_2 = arith.constant 0 : index
    %6 = vector.load %arg4[%c0_1, %c0_2] : memref<1x32xf32, #tpu.memory_space<vmem>>, vector<1x32xf32>
    %7 = vector.broadcast %6 : vector<1x32xf32> to vector<40x32xf32>
    %8 = arith.mulf %5, %7 : vector<40x32xf32>
    %c0_3 = arith.constant 0 : index
    %c0_4 = arith.constant 0 : index
    %9 = vector.load %arg5[%c0_3, %c0_4] : memref<1x32xf32, #tpu.memory_space<vmem>>, vector<1x32xf32>
    %10 = vector.broadcast %9 : vector<1x32xf32> to vector<40x32xf32>
    %11 = arith.addf %8, %10 : vector<40x32xf32>
    %cst = arith.constant 0.000000e+00 : f32
    %12 = vector.broadcast %cst : f32 to vector<40x32xf32>
    %13 = arith.cmpf oge, %11, %12 : vector<40x32xf32>
    %cst_5 = arith.constant 2.000000e-01 : f32
    %14 = vector.broadcast %cst_5 : f32 to vector<40x32xf32>
    %15 = arith.mulf %14, %11 : vector<40x32xf32>
    %16 = arith.select %13, %11, %15 : vector<40x32xi1>, vector<40x32xf32>
    %17 = arith.truncf %16 : vector<40x32xf32> to vector<40x32xbf16>
    %18 = vector.extract_strided_slice %17 {offsets = [0, 0], sizes = [32, 32], strides = [1, 1]} : vector<40x32xbf16> to vector<32x32xbf16>
    %19 = vector.extract_strided_slice %17 {offsets = [1, 0], sizes = [32, 32], strides = [1, 1]} : vector<40x32xbf16> to vector<32x32xbf16>
    %20 = vector.extract_strided_slice %17 {offsets = [5, 0], sizes = [32, 32], strides = [1, 1]} : vector<40x32xbf16> to vector<32x32xbf16>
    %21 = vector.extract_strided_slice %17 {offsets = [6, 0], sizes = [32, 32], strides = [1, 1]} : vector<40x32xbf16> to vector<32x32xbf16>
    %22 = tpu.concatenate %18, %19, %20, %21 in 1 : vector<32x32xbf16>, vector<32x32xbf16>, vector<32x32xbf16>, vector<32x32xbf16> -> vector<32x128xbf16>
    %c0_6 = arith.constant 0 : index
    %c0_7 = arith.constant 0 : index
    %23 = vector.load %arg3[%c0_6, %c0_7] : memref<128x128xbf16, #tpu.memory_space<vmem>>, vector<128x128xbf16>
    %cst_8 = arith.constant dense<0.000000e+00> : vector<32x128xf32>
    %24 = tpu.matmul %22, %23, %cst_8 {dimension_numbers = #tpu.dot_dimension_numbers<[1], [0], [0], [1], [0, 0, 1, 1], [], []>} : vector<32x128xbf16>, vector<128x128xbf16>, vector<32x128xf32> -> vector<32x128xf32>
    %c0_9 = arith.constant 0 : index
    %c0_10 = arith.constant 0 : index
    %25 = vector.load %arg6[%c0_9, %c0_10] : memref<1x128xf32, #tpu.memory_space<vmem>>, vector<1x128xf32>
    %26 = vector.broadcast %25 : vector<1x128xf32> to vector<32x128xf32>
    %27 = arith.addf %24, %26 : vector<32x128xf32>
    %c0_i32 = arith.constant 0 : i32
    %28 = arith.cmpi eq, %arg1, %c0_i32 : i32
    %29 = arith.extui %28 : i1 to i32
    %c0_i32_11 = arith.constant 0 : i32
    %30 = arith.cmpi ne, %29, %c0_i32_11 : i32
    scf.if %30 {
      %cst_31 = arith.constant 0.000000e+00 : f32
      %57 = vector.broadcast %cst_31 : f32 to vector<1x128xf32>
      %c0_32 = arith.constant 0 : index
      %c0_33 = arith.constant 0 : index
      %c0_34 = arith.constant 0 : index
      %58 = vector.load %arg9[%c0_32, %c0_33, %c0_34] : memref<1x1x128xf32, #tpu.memory_space<vmem>>, vector<1x1x128xf32>
      %59 = vector.shape_cast %58 : vector<1x1x128xf32> to vector<1x128xf32>
      %60 = vector.shape_cast %57 : vector<1x128xf32> to vector<1x1x128xf32>
      tpu.vector_store %arg9[%c0_32, %c0_33, %c0_34], %60 {strides = array<i32>} : memref<1x1x128xf32, #tpu.memory_space<vmem>>, vector<1x1x128xf32>,
      %cst_35 = arith.constant 0.000000e+00 : f32
      %61 = vector.broadcast %cst_35 : f32 to vector<1x128xf32>
      %c0_36 = arith.constant 0 : index
      %c0_37 = arith.constant 0 : index
      %c0_38 = arith.constant 0 : index
      %62 = vector.load %arg10[%c0_36, %c0_37, %c0_38] : memref<1x1x128xf32, #tpu.memory_space<vmem>>, vector<1x1x128xf32>
      %63 = vector.shape_cast %62 : vector<1x1x128xf32> to vector<1x128xf32>
      %64 = vector.shape_cast %61 : vector<1x128xf32> to vector<1x1x128xf32>
      tpu.vector_store %arg10[%c0_36, %c0_37, %c0_38], %64 {strides = array<i32>} : memref<1x1x128xf32, #tpu.memory_space<vmem>>, vector<1x1x128xf32>,
    } else {
    }
    %c0_12 = arith.constant 0 : index
    %c0_13 = arith.constant 0 : index
    %31 = vector.load %arg7[%c0_12, %c0_13] : memref<32x1xf32, #tpu.memory_space<vmem>>, vector<32x1xf32>
    %c0_14 = arith.constant 0 : index
    %c0_15 = arith.constant 0 : index
    %c0_16 = arith.constant 0 : index
    %32 = vector.load %arg9[%c0_14, %c0_15, %c0_16] : memref<1x1x128xf32, #tpu.memory_space<vmem>>, vector<1x1x128xf32>
    %33 = vector.shape_cast %32 : vector<1x1x128xf32> to vector<1x128xf32>
    %34 = vector.broadcast %31 : vector<32x1xf32> to vector<32x128xf32>
    %35 = arith.mulf %27, %34 : vector<32x128xf32>
    %cst_17 = arith.constant dense<0.000000e+00> : vector<128xf32>
    %36 = vector.multi_reduction <add>, %35, %cst_17 [0] : vector<32x128xf32> to vector<128xf32>
    %37 = vector.shape_cast %36 : vector<128xf32> to vector<1x128xf32>
    %38 = arith.addf %33, %37 : vector<1x128xf32>
    %c0_18 = arith.constant 0 : index
    %c0_19 = arith.constant 0 : index
    %c0_20 = arith.constant 0 : index
    %39 = vector.load %arg9[%c0_18, %c0_19, %c0_20] : memref<1x1x128xf32, #tpu.memory_space<vmem>>, vector<1x1x128xf32>
    %40 = vector.shape_cast %39 : vector<1x1x128xf32> to vector<1x128xf32>
    %41 = vector.shape_cast %38 : vector<1x128xf32> to vector<1x1x128xf32>
    tpu.vector_store %arg9[%c0_18, %c0_19, %c0_20], %41 {strides = array<i32>} : memref<1x1x128xf32, #tpu.memory_space<vmem>>, vector<1x1x128xf32>,
    %c0_21 = arith.constant 0 : index
    %c0_22 = arith.constant 0 : index
    %c0_23 = arith.constant 0 : index
    %42 = vector.load %arg10[%c0_21, %c0_22, %c0_23] : memref<1x1x128xf32, #tpu.memory_space<vmem>>, vector<1x1x128xf32>
    %43 = vector.shape_cast %42 : vector<1x1x128xf32> to vector<1x128xf32>
    %44 = arith.mulf %27, %27 : vector<32x128xf32>
    %45 = vector.broadcast %31 : vector<32x1xf32> to vector<32x128xf32>
    %46 = arith.mulf %44, %45 : vector<32x128xf32>
    %cst_24 = arith.constant dense<0.000000e+00> : vector<128xf32>
    %47 = vector.multi_reduction <add>, %46, %cst_24 [0] : vector<32x128xf32> to vector<128xf32>
    %48 = vector.shape_cast %47 : vector<128xf32> to vector<1x128xf32>
    %49 = arith.addf %43, %48 : vector<1x128xf32>
    %c0_25 = arith.constant 0 : index
    %c0_26 = arith.constant 0 : index
    %c0_27 = arith.constant 0 : index
    %50 = vector.load %arg10[%c0_25, %c0_26, %c0_27] : memref<1x1x128xf32, #tpu.memory_space<vmem>>, vector<1x1x128xf32>
    %51 = vector.shape_cast %50 : vector<1x1x128xf32> to vector<1x128xf32>
    %52 = vector.shape_cast %49 : vector<1x128xf32> to vector<1x1x128xf32>
    tpu.vector_store %arg10[%c0_25, %c0_26, %c0_27], %52 {strides = array<i32>} : memref<1x1x128xf32, #tpu.memory_space<vmem>>, vector<1x1x128xf32>,
    %53 = arith.truncf %27 : vector<32x128xf32> to vector<32x128xbf16>
    %c0_28 = arith.constant 0 : index
    %c0_29 = arith.constant 0 : index
    %c0_30 = arith.constant 0 : index
    %54 = vector.load %arg8[%c0_28, %c0_29, %c0_30] : memref<1x32x128xbf16, #tpu.memory_space<vmem>>, vector<1x32x128xbf16>
    %55 = vector.shape_cast %54 : vector<1x32x128xbf16> to vector<32x128xbf16>
    %56 = vector.shape_cast %53 : vector<32x128xbf16> to vector<1x32x128xbf16>
    tpu.vector_store %arg8[%c0_28, %c0_29, %c0_30], %56 {strides = array<i32>} : memref<1x32x128xbf16, #tpu.memory_space<vmem>>, vector<1x32x128xbf16>,
    return
  }
  func.func @transform_0(%arg0: i32, %arg1: i32) -> (i32, i32, i32) {
    %c0_i32 = arith.constant 0 : i32
    %c0_i32_0 = arith.constant 0 : i32
    %c0_i32_1 = arith.constant 0 : i32
    return %arg0, %c0_i32, %c0_i32_0 : i32, i32, i32
  }
  func.func @transform_1(%arg0: i32, %arg1: i32) -> (i32, i32) {
    %c0_i32 = arith.constant 0 : i32
    %c0_i32_0 = arith.constant 0 : i32
    %c0_i32_1 = arith.constant 0 : i32
    return %c0_i32, %c0_i32_0 : i32, i32
  }
  func.func @transform_2(%arg0: i32, %arg1: i32) -> (i32, i32) {
    %c0_i32 = arith.constant 0 : i32
    %c0_i32_0 = arith.constant 0 : i32
    %c0_i32_1 = arith.constant 0 : i32
    return %c0_i32, %c0_i32_0 : i32, i32
  }
  func.func @transform_3(%arg0: i32, %arg1: i32) -> (i32, i32) {
    %c0_i32 = arith.constant 0 : i32
    %c0_i32_0 = arith.constant 0 : i32
    %c0_i32_1 = arith.constant 0 : i32
    return %c0_i32, %c0_i32_0 : i32, i32
  }
  func.func @transform_4(%arg0: i32, %arg1: i32) -> (i32, i32) {
    %c0_i32 = arith.constant 0 : i32
    %c0_i32_0 = arith.constant 0 : i32
    %c0_i32_1 = arith.constant 0 : i32
    return %c0_i32, %c0_i32_0 : i32, i32
  }
  func.func @transform_5(%arg0: i32, %arg1: i32) -> (i32, i32) {
    %c0_i32 = arith.constant 0 : i32
    %c0_i32_0 = arith.constant 0 : i32
    return %arg1, %c0_i32 : i32, i32
  }
  func.func @transform_6(%arg0: i32, %arg1: i32) -> (i32, i32, i32) {
    %c0_i32 = arith.constant 0 : i32
    %c0_i32_0 = arith.constant 0 : i32
    return %arg0, %arg1, %c0_i32 : i32, i32, i32
  }
  func.func @transform_7(%arg0: i32, %arg1: i32) -> (i32, i32, i32) {
    %c0_i32 = arith.constant 0 : i32
    %c0_i32_0 = arith.constant 0 : i32
    %c0_i32_1 = arith.constant 0 : i32
    return %arg0, %c0_i32, %c0_i32_0 : i32, i32, i32
  }
  func.func @transform_8(%arg0: i32, %arg1: i32) -> (i32, i32, i32) {
    %c0_i32 = arith.constant 0 : i32
    %c0_i32_0 = arith.constant 0 : i32
    %c0_i32_1 = arith.constant 0 : i32
    return %arg0, %c0_i32, %c0_i32_0 : i32, i32, i32
  }
}

module attributes {stable_mosaic.version = 11 : i64} {
  func.func @_flat_tap_kernel(%arg0: i32, %arg1: i32, %arg2: memref<1x40x64xbf16, #tpu.memory_space<vmem>>, %arg3: memref<256x128xbf16, #tpu.memory_space<vmem>>, %arg4: memref<1x64xf32, #tpu.memory_space<vmem>>, %arg5: memref<1x64xf32, #tpu.memory_space<vmem>>, %arg6: memref<1x128xf32, #tpu.memory_space<vmem>>, %arg7: memref<1x32x128xbf16, #tpu.memory_space<vmem>>) attributes {dimension_semantics = [#tpu.dimension_semantics<parallel>, #tpu.dimension_semantics<parallel>], iteration_bounds = array<i64: 2, 1>, scalar_prefetch = 0 : i64, scratch_operands = 0 : i64, tpu.core_type = #tpu.core_type<tc>, window_params = [{transform_indices = @transform_0, window_bounds = array<i64: 1, 40, 64>}, {pipeline_mode = #tpu.pipeline_mode<synchronous>, transform_indices = @transform_1, window_bounds = array<i64: 256, 128>}, {pipeline_mode = #tpu.pipeline_mode<synchronous>, transform_indices = @transform_2, window_bounds = array<i64: 1, 64>}, {pipeline_mode = #tpu.pipeline_mode<synchronous>, transform_indices = @transform_3, window_bounds = array<i64: 1, 64>}, {pipeline_mode = #tpu.pipeline_mode<synchronous>, transform_indices = @transform_4, window_bounds = array<i64: 1, 128>}, {transform_indices = @transform_5, window_bounds = array<i64: 1, 32, 128>}]} {
    %c32_i32 = arith.constant 32 : i32
    %0 = arith.muli %arg1, %c32_i32 : i32
    %1 = tpu.assume_multiple %0, 32 : i32
    %c0 = arith.constant 0 : index
    %2 = arith.index_cast %1 : i32 to index
    %c0_0 = arith.constant 0 : index
    %3 = vector.load %arg2[%c0, %2, %c0_0] : memref<1x40x64xbf16, #tpu.memory_space<vmem>>, vector<1x40x64xbf16>
    %4 = vector.shape_cast %3 : vector<1x40x64xbf16> to vector<40x64xbf16>
    %5 = arith.extf %4 : vector<40x64xbf16> to vector<40x64xf32>
    %c0_1 = arith.constant 0 : index
    %c0_2 = arith.constant 0 : index
    %6 = vector.load %arg4[%c0_1, %c0_2] : memref<1x64xf32, #tpu.memory_space<vmem>>, vector<1x64xf32>
    %7 = vector.broadcast %6 : vector<1x64xf32> to vector<40x64xf32>
    %8 = arith.mulf %5, %7 : vector<40x64xf32>
    %c0_3 = arith.constant 0 : index
    %c0_4 = arith.constant 0 : index
    %9 = vector.load %arg5[%c0_3, %c0_4] : memref<1x64xf32, #tpu.memory_space<vmem>>, vector<1x64xf32>
    %10 = vector.broadcast %9 : vector<1x64xf32> to vector<40x64xf32>
    %11 = arith.addf %8, %10 : vector<40x64xf32>
    %cst = arith.constant 0.000000e+00 : f32
    %12 = vector.broadcast %cst : f32 to vector<40x64xf32>
    %13 = arith.cmpf oge, %11, %12 : vector<40x64xf32>
    %cst_5 = arith.constant 2.000000e-01 : f32
    %14 = vector.broadcast %cst_5 : f32 to vector<40x64xf32>
    %15 = arith.mulf %14, %11 : vector<40x64xf32>
    %16 = arith.select %13, %11, %15 : vector<40x64xi1>, vector<40x64xf32>
    %17 = arith.truncf %16 : vector<40x64xf32> to vector<40x64xbf16>
    %18 = vector.extract_strided_slice %17 {offsets = [0, 0], sizes = [32, 64], strides = [1, 1]} : vector<40x64xbf16> to vector<32x64xbf16>
    %19 = vector.extract_strided_slice %17 {offsets = [1, 0], sizes = [32, 64], strides = [1, 1]} : vector<40x64xbf16> to vector<32x64xbf16>
    %20 = vector.extract_strided_slice %17 {offsets = [3, 0], sizes = [32, 64], strides = [1, 1]} : vector<40x64xbf16> to vector<32x64xbf16>
    %21 = vector.extract_strided_slice %17 {offsets = [4, 0], sizes = [32, 64], strides = [1, 1]} : vector<40x64xbf16> to vector<32x64xbf16>
    %22 = tpu.concatenate %18, %19, %20, %21 in 1 : vector<32x64xbf16>, vector<32x64xbf16>, vector<32x64xbf16>, vector<32x64xbf16> -> vector<32x256xbf16>
    %c0_6 = arith.constant 0 : index
    %c0_7 = arith.constant 0 : index
    %23 = vector.load %arg3[%c0_6, %c0_7] : memref<256x128xbf16, #tpu.memory_space<vmem>>, vector<256x128xbf16>
    %cst_8 = arith.constant dense<0.000000e+00> : vector<32x128xf32>
    %24 = tpu.matmul %22, %23, %cst_8 {dimension_numbers = #tpu.dot_dimension_numbers<[1], [0], [0], [1], [0, 0, 1, 1], [], []>} : vector<32x256xbf16>, vector<256x128xbf16>, vector<32x128xf32> -> vector<32x128xf32>
    %c0_9 = arith.constant 0 : index
    %c0_10 = arith.constant 0 : index
    %25 = vector.load %arg6[%c0_9, %c0_10] : memref<1x128xf32, #tpu.memory_space<vmem>>, vector<1x128xf32>
    %26 = vector.broadcast %25 : vector<1x128xf32> to vector<32x128xf32>
    %27 = arith.addf %24, %26 : vector<32x128xf32>
    %28 = arith.truncf %27 : vector<32x128xf32> to vector<32x128xbf16>
    %c0_11 = arith.constant 0 : index
    %c0_12 = arith.constant 0 : index
    %c0_13 = arith.constant 0 : index
    %29 = vector.load %arg7[%c0_11, %c0_12, %c0_13] : memref<1x32x128xbf16, #tpu.memory_space<vmem>>, vector<1x32x128xbf16>
    %30 = vector.shape_cast %29 : vector<1x32x128xbf16> to vector<32x128xbf16>
    %31 = vector.shape_cast %28 : vector<32x128xbf16> to vector<1x32x128xbf16>
    tpu.vector_store %arg7[%c0_11, %c0_12, %c0_13], %31 {strides = array<i32>} : memref<1x32x128xbf16, #tpu.memory_space<vmem>>, vector<1x32x128xbf16>,
    return
  }
  func.func @transform_0(%arg0: i32, %arg1: i32) -> (i32, i32, i32) {
    %c0_i32 = arith.constant 0 : i32
    %c0_i32_0 = arith.constant 0 : i32
    %c0_i32_1 = arith.constant 0 : i32
    return %arg0, %c0_i32, %c0_i32_0 : i32, i32, i32
  }
  func.func @transform_1(%arg0: i32, %arg1: i32) -> (i32, i32) {
    %c0_i32 = arith.constant 0 : i32
    %c0_i32_0 = arith.constant 0 : i32
    %c0_i32_1 = arith.constant 0 : i32
    return %c0_i32, %c0_i32_0 : i32, i32
  }
  func.func @transform_2(%arg0: i32, %arg1: i32) -> (i32, i32) {
    %c0_i32 = arith.constant 0 : i32
    %c0_i32_0 = arith.constant 0 : i32
    %c0_i32_1 = arith.constant 0 : i32
    return %c0_i32, %c0_i32_0 : i32, i32
  }
  func.func @transform_3(%arg0: i32, %arg1: i32) -> (i32, i32) {
    %c0_i32 = arith.constant 0 : i32
    %c0_i32_0 = arith.constant 0 : i32
    %c0_i32_1 = arith.constant 0 : i32
    return %c0_i32, %c0_i32_0 : i32, i32
  }
  func.func @transform_4(%arg0: i32, %arg1: i32) -> (i32, i32) {
    %c0_i32 = arith.constant 0 : i32
    %c0_i32_0 = arith.constant 0 : i32
    %c0_i32_1 = arith.constant 0 : i32
    return %c0_i32, %c0_i32_0 : i32, i32
  }
  func.func @transform_5(%arg0: i32, %arg1: i32) -> (i32, i32, i32) {
    %c0_i32 = arith.constant 0 : i32
    %c0_i32_0 = arith.constant 0 : i32
    return %arg0, %arg1, %c0_i32 : i32, i32, i32
  }
}

module attributes {stable_mosaic.version = 11 : i64} {
  func.func @_flat_tap_kernel(%arg0: i32, %arg1: i32, %arg2: memref<1x48x32xbf16, #tpu.memory_space<vmem>>, %arg3: memref<288x128xbf16, #tpu.memory_space<vmem>>, %arg4: memref<1x32xf32, #tpu.memory_space<vmem>>, %arg5: memref<1x32xf32, #tpu.memory_space<vmem>>, %arg6: memref<1x128xf32, #tpu.memory_space<vmem>>, %arg7: memref<32x1xf32, #tpu.memory_space<vmem>>, %arg8: memref<1x32x128xbf16, #tpu.memory_space<vmem>>, %arg9: memref<1x1x128xf32, #tpu.memory_space<vmem>>, %arg10: memref<1x1x128xf32, #tpu.memory_space<vmem>>) attributes {dimension_semantics = [#tpu.dimension_semantics<parallel>, #tpu.dimension_semantics<arbitrary>], iteration_bounds = array<i64: 2, 1>, scalar_prefetch = 0 : i64, scratch_operands = 0 : i64, tpu.core_type = #tpu.core_type<tc>, window_params = [{transform_indices = @transform_0, window_bounds = array<i64: 1, 48, 32>}, {pipeline_mode = #tpu.pipeline_mode<synchronous>, transform_indices = @transform_1, window_bounds = array<i64: 288, 128>}, {pipeline_mode = #tpu.pipeline_mode<synchronous>, transform_indices = @transform_2, window_bounds = array<i64: 1, 32>}, {pipeline_mode = #tpu.pipeline_mode<synchronous>, transform_indices = @transform_3, window_bounds = array<i64: 1, 32>}, {pipeline_mode = #tpu.pipeline_mode<synchronous>, transform_indices = @transform_4, window_bounds = array<i64: 1, 128>}, {transform_indices = @transform_5, window_bounds = array<i64: 32, 1>}, {transform_indices = @transform_6, window_bounds = array<i64: 1, 32, 128>}, {transform_indices = @transform_7, window_bounds = array<i64: 1, 1, 128>}, {transform_indices = @transform_8, window_bounds = array<i64: 1, 1, 128>}]} {
    %c32_i32 = arith.constant 32 : i32
    %0 = arith.muli %arg1, %c32_i32 : i32
    %1 = tpu.assume_multiple %0, 32 : i32
    %c0 = arith.constant 0 : index
    %2 = arith.index_cast %1 : i32 to index
    %c0_0 = arith.constant 0 : index
    %3 = vector.load %arg2[%c0, %2, %c0_0] : memref<1x48x32xbf16, #tpu.memory_space<vmem>>, vector<1x48x32xbf16>
    %4 = vector.shape_cast %3 : vector<1x48x32xbf16> to vector<48x32xbf16>
    %5 = arith.extf %4 : vector<48x32xbf16> to vector<48x32xf32>
    %c0_1 = arith.constant 0 : index
    %c0_2 = arith.constant 0 : index
    %6 = vector.load %arg4[%c0_1, %c0_2] : memref<1x32xf32, #tpu.memory_space<vmem>>, vector<1x32xf32>
    %7 = vector.broadcast %6 : vector<1x32xf32> to vector<48x32xf32>
    %8 = arith.mulf %5, %7 : vector<48x32xf32>
    %c0_3 = arith.constant 0 : index
    %c0_4 = arith.constant 0 : index
    %9 = vector.load %arg5[%c0_3, %c0_4] : memref<1x32xf32, #tpu.memory_space<vmem>>, vector<1x32xf32>
    %10 = vector.broadcast %9 : vector<1x32xf32> to vector<48x32xf32>
    %11 = arith.addf %8, %10 : vector<48x32xf32>
    %cst = arith.constant 0.000000e+00 : f32
    %12 = vector.broadcast %cst : f32 to vector<48x32xf32>
    %13 = arith.maximumf %11, %12 : vector<48x32xf32>
    %14 = arith.truncf %13 : vector<48x32xf32> to vector<48x32xbf16>
    %15 = vector.extract_strided_slice %14 {offsets = [0, 0], sizes = [32, 32], strides = [1, 1]} : vector<48x32xbf16> to vector<32x32xbf16>
    %16 = vector.extract_strided_slice %14 {offsets = [1, 0], sizes = [32, 32], strides = [1, 1]} : vector<48x32xbf16> to vector<32x32xbf16>
    %17 = vector.extract_strided_slice %14 {offsets = [2, 0], sizes = [32, 32], strides = [1, 1]} : vector<48x32xbf16> to vector<32x32xbf16>
    %18 = vector.extract_strided_slice %14 {offsets = [4, 0], sizes = [32, 32], strides = [1, 1]} : vector<48x32xbf16> to vector<32x32xbf16>
    %19 = vector.extract_strided_slice %14 {offsets = [5, 0], sizes = [32, 32], strides = [1, 1]} : vector<48x32xbf16> to vector<32x32xbf16>
    %20 = vector.extract_strided_slice %14 {offsets = [6, 0], sizes = [32, 32], strides = [1, 1]} : vector<48x32xbf16> to vector<32x32xbf16>
    %21 = vector.extract_strided_slice %14 {offsets = [8, 0], sizes = [32, 32], strides = [1, 1]} : vector<48x32xbf16> to vector<32x32xbf16>
    %22 = vector.extract_strided_slice %14 {offsets = [9, 0], sizes = [32, 32], strides = [1, 1]} : vector<48x32xbf16> to vector<32x32xbf16>
    %23 = vector.extract_strided_slice %14 {offsets = [10, 0], sizes = [32, 32], strides = [1, 1]} : vector<48x32xbf16> to vector<32x32xbf16>
    %24 = tpu.concatenate %15, %16, %17, %18, %19, %20, %21, %22, %23 in 1 : vector<32x32xbf16>, vector<32x32xbf16>, vector<32x32xbf16>, vector<32x32xbf16>, vector<32x32xbf16>, vector<32x32xbf16>, vector<32x32xbf16>, vector<32x32xbf16>, vector<32x32xbf16> -> vector<32x288xbf16>
    %c0_5 = arith.constant 0 : index
    %c0_6 = arith.constant 0 : index
    %25 = vector.load %arg3[%c0_5, %c0_6] : memref<288x128xbf16, #tpu.memory_space<vmem>>, vector<288x128xbf16>
    %cst_7 = arith.constant dense<0.000000e+00> : vector<32x128xf32>
    %26 = tpu.matmul %24, %25, %cst_7 {dimension_numbers = #tpu.dot_dimension_numbers<[1], [0], [0], [1], [0, 0, 1, 1], [], []>} : vector<32x288xbf16>, vector<288x128xbf16>, vector<32x128xf32> -> vector<32x128xf32>
    %c0_8 = arith.constant 0 : index
    %c0_9 = arith.constant 0 : index
    %27 = vector.load %arg6[%c0_8, %c0_9] : memref<1x128xf32, #tpu.memory_space<vmem>>, vector<1x128xf32>
    %28 = vector.broadcast %27 : vector<1x128xf32> to vector<32x128xf32>
    %29 = arith.addf %26, %28 : vector<32x128xf32>
    %c0_i32 = arith.constant 0 : i32
    %30 = arith.cmpi eq, %arg1, %c0_i32 : i32
    %31 = arith.extui %30 : i1 to i32
    %c0_i32_10 = arith.constant 0 : i32
    %32 = arith.cmpi ne, %31, %c0_i32_10 : i32
    scf.if %32 {
      %cst_30 = arith.constant 0.000000e+00 : f32
      %59 = vector.broadcast %cst_30 : f32 to vector<1x128xf32>
      %c0_31 = arith.constant 0 : index
      %c0_32 = arith.constant 0 : index
      %c0_33 = arith.constant 0 : index
      %60 = vector.load %arg9[%c0_31, %c0_32, %c0_33] : memref<1x1x128xf32, #tpu.memory_space<vmem>>, vector<1x1x128xf32>
      %61 = vector.shape_cast %60 : vector<1x1x128xf32> to vector<1x128xf32>
      %62 = vector.shape_cast %59 : vector<1x128xf32> to vector<1x1x128xf32>
      tpu.vector_store %arg9[%c0_31, %c0_32, %c0_33], %62 {strides = array<i32>} : memref<1x1x128xf32, #tpu.memory_space<vmem>>, vector<1x1x128xf32>,
      %cst_34 = arith.constant 0.000000e+00 : f32
      %63 = vector.broadcast %cst_34 : f32 to vector<1x128xf32>
      %c0_35 = arith.constant 0 : index
      %c0_36 = arith.constant 0 : index
      %c0_37 = arith.constant 0 : index
      %64 = vector.load %arg10[%c0_35, %c0_36, %c0_37] : memref<1x1x128xf32, #tpu.memory_space<vmem>>, vector<1x1x128xf32>
      %65 = vector.shape_cast %64 : vector<1x1x128xf32> to vector<1x128xf32>
      %66 = vector.shape_cast %63 : vector<1x128xf32> to vector<1x1x128xf32>
      tpu.vector_store %arg10[%c0_35, %c0_36, %c0_37], %66 {strides = array<i32>} : memref<1x1x128xf32, #tpu.memory_space<vmem>>, vector<1x1x128xf32>,
    } else {
    }
    %c0_11 = arith.constant 0 : index
    %c0_12 = arith.constant 0 : index
    %33 = vector.load %arg7[%c0_11, %c0_12] : memref<32x1xf32, #tpu.memory_space<vmem>>, vector<32x1xf32>
    %c0_13 = arith.constant 0 : index
    %c0_14 = arith.constant 0 : index
    %c0_15 = arith.constant 0 : index
    %34 = vector.load %arg9[%c0_13, %c0_14, %c0_15] : memref<1x1x128xf32, #tpu.memory_space<vmem>>, vector<1x1x128xf32>
    %35 = vector.shape_cast %34 : vector<1x1x128xf32> to vector<1x128xf32>
    %36 = vector.broadcast %33 : vector<32x1xf32> to vector<32x128xf32>
    %37 = arith.mulf %29, %36 : vector<32x128xf32>
    %cst_16 = arith.constant dense<0.000000e+00> : vector<128xf32>
    %38 = vector.multi_reduction <add>, %37, %cst_16 [0] : vector<32x128xf32> to vector<128xf32>
    %39 = vector.shape_cast %38 : vector<128xf32> to vector<1x128xf32>
    %40 = arith.addf %35, %39 : vector<1x128xf32>
    %c0_17 = arith.constant 0 : index
    %c0_18 = arith.constant 0 : index
    %c0_19 = arith.constant 0 : index
    %41 = vector.load %arg9[%c0_17, %c0_18, %c0_19] : memref<1x1x128xf32, #tpu.memory_space<vmem>>, vector<1x1x128xf32>
    %42 = vector.shape_cast %41 : vector<1x1x128xf32> to vector<1x128xf32>
    %43 = vector.shape_cast %40 : vector<1x128xf32> to vector<1x1x128xf32>
    tpu.vector_store %arg9[%c0_17, %c0_18, %c0_19], %43 {strides = array<i32>} : memref<1x1x128xf32, #tpu.memory_space<vmem>>, vector<1x1x128xf32>,
    %c0_20 = arith.constant 0 : index
    %c0_21 = arith.constant 0 : index
    %c0_22 = arith.constant 0 : index
    %44 = vector.load %arg10[%c0_20, %c0_21, %c0_22] : memref<1x1x128xf32, #tpu.memory_space<vmem>>, vector<1x1x128xf32>
    %45 = vector.shape_cast %44 : vector<1x1x128xf32> to vector<1x128xf32>
    %46 = arith.mulf %29, %29 : vector<32x128xf32>
    %47 = vector.broadcast %33 : vector<32x1xf32> to vector<32x128xf32>
    %48 = arith.mulf %46, %47 : vector<32x128xf32>
    %cst_23 = arith.constant dense<0.000000e+00> : vector<128xf32>
    %49 = vector.multi_reduction <add>, %48, %cst_23 [0] : vector<32x128xf32> to vector<128xf32>
    %50 = vector.shape_cast %49 : vector<128xf32> to vector<1x128xf32>
    %51 = arith.addf %45, %50 : vector<1x128xf32>
    %c0_24 = arith.constant 0 : index
    %c0_25 = arith.constant 0 : index
    %c0_26 = arith.constant 0 : index
    %52 = vector.load %arg10[%c0_24, %c0_25, %c0_26] : memref<1x1x128xf32, #tpu.memory_space<vmem>>, vector<1x1x128xf32>
    %53 = vector.shape_cast %52 : vector<1x1x128xf32> to vector<1x128xf32>
    %54 = vector.shape_cast %51 : vector<1x128xf32> to vector<1x1x128xf32>
    tpu.vector_store %arg10[%c0_24, %c0_25, %c0_26], %54 {strides = array<i32>} : memref<1x1x128xf32, #tpu.memory_space<vmem>>, vector<1x1x128xf32>,
    %55 = arith.truncf %29 : vector<32x128xf32> to vector<32x128xbf16>
    %c0_27 = arith.constant 0 : index
    %c0_28 = arith.constant 0 : index
    %c0_29 = arith.constant 0 : index
    %56 = vector.load %arg8[%c0_27, %c0_28, %c0_29] : memref<1x32x128xbf16, #tpu.memory_space<vmem>>, vector<1x32x128xbf16>
    %57 = vector.shape_cast %56 : vector<1x32x128xbf16> to vector<32x128xbf16>
    %58 = vector.shape_cast %55 : vector<32x128xbf16> to vector<1x32x128xbf16>
    tpu.vector_store %arg8[%c0_27, %c0_28, %c0_29], %58 {strides = array<i32>} : memref<1x32x128xbf16, #tpu.memory_space<vmem>>, vector<1x32x128xbf16>,
    return
  }
  func.func @transform_0(%arg0: i32, %arg1: i32) -> (i32, i32, i32) {
    %c0_i32 = arith.constant 0 : i32
    %c0_i32_0 = arith.constant 0 : i32
    %c0_i32_1 = arith.constant 0 : i32
    return %arg0, %c0_i32, %c0_i32_0 : i32, i32, i32
  }
  func.func @transform_1(%arg0: i32, %arg1: i32) -> (i32, i32) {
    %c0_i32 = arith.constant 0 : i32
    %c0_i32_0 = arith.constant 0 : i32
    %c0_i32_1 = arith.constant 0 : i32
    return %c0_i32, %c0_i32_0 : i32, i32
  }
  func.func @transform_2(%arg0: i32, %arg1: i32) -> (i32, i32) {
    %c0_i32 = arith.constant 0 : i32
    %c0_i32_0 = arith.constant 0 : i32
    %c0_i32_1 = arith.constant 0 : i32
    return %c0_i32, %c0_i32_0 : i32, i32
  }
  func.func @transform_3(%arg0: i32, %arg1: i32) -> (i32, i32) {
    %c0_i32 = arith.constant 0 : i32
    %c0_i32_0 = arith.constant 0 : i32
    %c0_i32_1 = arith.constant 0 : i32
    return %c0_i32, %c0_i32_0 : i32, i32
  }
  func.func @transform_4(%arg0: i32, %arg1: i32) -> (i32, i32) {
    %c0_i32 = arith.constant 0 : i32
    %c0_i32_0 = arith.constant 0 : i32
    %c0_i32_1 = arith.constant 0 : i32
    return %c0_i32, %c0_i32_0 : i32, i32
  }
  func.func @transform_5(%arg0: i32, %arg1: i32) -> (i32, i32) {
    %c0_i32 = arith.constant 0 : i32
    %c0_i32_0 = arith.constant 0 : i32
    return %arg1, %c0_i32 : i32, i32
  }
  func.func @transform_6(%arg0: i32, %arg1: i32) -> (i32, i32, i32) {
    %c0_i32 = arith.constant 0 : i32
    %c0_i32_0 = arith.constant 0 : i32
    return %arg0, %arg1, %c0_i32 : i32, i32, i32
  }
  func.func @transform_7(%arg0: i32, %arg1: i32) -> (i32, i32, i32) {
    %c0_i32 = arith.constant 0 : i32
    %c0_i32_0 = arith.constant 0 : i32
    %c0_i32_1 = arith.constant 0 : i32
    return %arg0, %c0_i32, %c0_i32_0 : i32, i32, i32
  }
  func.func @transform_8(%arg0: i32, %arg1: i32) -> (i32, i32, i32) {
    %c0_i32 = arith.constant 0 : i32
    %c0_i32_0 = arith.constant 0 : i32
    %c0_i32_1 = arith.constant 0 : i32
    return %arg0, %c0_i32, %c0_i32_0 : i32, i32, i32
  }
}

module attributes {stable_mosaic.version = 11 : i64} {
  func.func @_flat_tap_kernel(%arg0: i32, %arg1: i32, %arg2: memref<1x80x32xbf16, #tpu.memory_space<vmem>>, %arg3: memref<288x128xbf16, #tpu.memory_space<vmem>>, %arg4: memref<1x32xf32, #tpu.memory_space<vmem>>, %arg5: memref<1x32xf32, #tpu.memory_space<vmem>>, %arg6: memref<1x128xf32, #tpu.memory_space<vmem>>, %arg7: memref<64x1xf32, #tpu.memory_space<vmem>>, %arg8: memref<1x64x128xbf16, #tpu.memory_space<vmem>>, %arg9: memref<1x1x128xf32, #tpu.memory_space<vmem>>, %arg10: memref<1x1x128xf32, #tpu.memory_space<vmem>>) attributes {dimension_semantics = [#tpu.dimension_semantics<parallel>, #tpu.dimension_semantics<arbitrary>], iteration_bounds = array<i64: 2, 1>, scalar_prefetch = 0 : i64, scratch_operands = 0 : i64, tpu.core_type = #tpu.core_type<tc>, window_params = [{transform_indices = @transform_0, window_bounds = array<i64: 1, 80, 32>}, {pipeline_mode = #tpu.pipeline_mode<synchronous>, transform_indices = @transform_1, window_bounds = array<i64: 288, 128>}, {pipeline_mode = #tpu.pipeline_mode<synchronous>, transform_indices = @transform_2, window_bounds = array<i64: 1, 32>}, {pipeline_mode = #tpu.pipeline_mode<synchronous>, transform_indices = @transform_3, window_bounds = array<i64: 1, 32>}, {pipeline_mode = #tpu.pipeline_mode<synchronous>, transform_indices = @transform_4, window_bounds = array<i64: 1, 128>}, {transform_indices = @transform_5, window_bounds = array<i64: 64, 1>}, {transform_indices = @transform_6, window_bounds = array<i64: 1, 64, 128>}, {transform_indices = @transform_7, window_bounds = array<i64: 1, 1, 128>}, {transform_indices = @transform_8, window_bounds = array<i64: 1, 1, 128>}]} {
    %c64_i32 = arith.constant 64 : i32
    %0 = arith.muli %arg1, %c64_i32 : i32
    %1 = tpu.assume_multiple %0, 64 : i32
    %c0 = arith.constant 0 : index
    %2 = arith.index_cast %1 : i32 to index
    %c0_0 = arith.constant 0 : index
    %3 = vector.load %arg2[%c0, %2, %c0_0] : memref<1x80x32xbf16, #tpu.memory_space<vmem>>, vector<1x80x32xbf16>
    %4 = vector.shape_cast %3 : vector<1x80x32xbf16> to vector<80x32xbf16>
    %5 = arith.extf %4 : vector<80x32xbf16> to vector<80x32xf32>
    %c0_1 = arith.constant 0 : index
    %c0_2 = arith.constant 0 : index
    %6 = vector.load %arg4[%c0_1, %c0_2] : memref<1x32xf32, #tpu.memory_space<vmem>>, vector<1x32xf32>
    %7 = vector.broadcast %6 : vector<1x32xf32> to vector<80x32xf32>
    %8 = arith.mulf %5, %7 : vector<80x32xf32>
    %c0_3 = arith.constant 0 : index
    %c0_4 = arith.constant 0 : index
    %9 = vector.load %arg5[%c0_3, %c0_4] : memref<1x32xf32, #tpu.memory_space<vmem>>, vector<1x32xf32>
    %10 = vector.broadcast %9 : vector<1x32xf32> to vector<80x32xf32>
    %11 = arith.addf %8, %10 : vector<80x32xf32>
    %cst = arith.constant 0.000000e+00 : f32
    %12 = vector.broadcast %cst : f32 to vector<80x32xf32>
    %13 = arith.maximumf %11, %12 : vector<80x32xf32>
    %14 = arith.truncf %13 : vector<80x32xf32> to vector<80x32xbf16>
    %15 = vector.extract_strided_slice %14 {offsets = [0, 0], sizes = [64, 32], strides = [1, 1]} : vector<80x32xbf16> to vector<64x32xbf16>
    %16 = vector.extract_strided_slice %14 {offsets = [1, 0], sizes = [64, 32], strides = [1, 1]} : vector<80x32xbf16> to vector<64x32xbf16>
    %17 = vector.extract_strided_slice %14 {offsets = [2, 0], sizes = [64, 32], strides = [1, 1]} : vector<80x32xbf16> to vector<64x32xbf16>
    %18 = vector.extract_strided_slice %14 {offsets = [6, 0], sizes = [64, 32], strides = [1, 1]} : vector<80x32xbf16> to vector<64x32xbf16>
    %19 = vector.extract_strided_slice %14 {offsets = [7, 0], sizes = [64, 32], strides = [1, 1]} : vector<80x32xbf16> to vector<64x32xbf16>
    %20 = vector.extract_strided_slice %14 {offsets = [8, 0], sizes = [64, 32], strides = [1, 1]} : vector<80x32xbf16> to vector<64x32xbf16>
    %21 = vector.extract_strided_slice %14 {offsets = [12, 0], sizes = [64, 32], strides = [1, 1]} : vector<80x32xbf16> to vector<64x32xbf16>
    %22 = vector.extract_strided_slice %14 {offsets = [13, 0], sizes = [64, 32], strides = [1, 1]} : vector<80x32xbf16> to vector<64x32xbf16>
    %23 = vector.extract_strided_slice %14 {offsets = [14, 0], sizes = [64, 32], strides = [1, 1]} : vector<80x32xbf16> to vector<64x32xbf16>
    %24 = tpu.concatenate %15, %16, %17, %18, %19, %20, %21, %22, %23 in 1 : vector<64x32xbf16>, vector<64x32xbf16>, vector<64x32xbf16>, vector<64x32xbf16>, vector<64x32xbf16>, vector<64x32xbf16>, vector<64x32xbf16>, vector<64x32xbf16>, vector<64x32xbf16> -> vector<64x288xbf16>
    %c0_5 = arith.constant 0 : index
    %c0_6 = arith.constant 0 : index
    %25 = vector.load %arg3[%c0_5, %c0_6] : memref<288x128xbf16, #tpu.memory_space<vmem>>, vector<288x128xbf16>
    %cst_7 = arith.constant dense<0.000000e+00> : vector<64x128xf32>
    %26 = tpu.matmul %24, %25, %cst_7 {dimension_numbers = #tpu.dot_dimension_numbers<[1], [0], [0], [1], [0, 0, 1, 1], [], []>} : vector<64x288xbf16>, vector<288x128xbf16>, vector<64x128xf32> -> vector<64x128xf32>
    %c0_8 = arith.constant 0 : index
    %c0_9 = arith.constant 0 : index
    %27 = vector.load %arg6[%c0_8, %c0_9] : memref<1x128xf32, #tpu.memory_space<vmem>>, vector<1x128xf32>
    %28 = vector.broadcast %27 : vector<1x128xf32> to vector<64x128xf32>
    %29 = arith.addf %26, %28 : vector<64x128xf32>
    %c0_i32 = arith.constant 0 : i32
    %30 = arith.cmpi eq, %arg1, %c0_i32 : i32
    %31 = arith.extui %30 : i1 to i32
    %c0_i32_10 = arith.constant 0 : i32
    %32 = arith.cmpi ne, %31, %c0_i32_10 : i32
    scf.if %32 {
      %cst_30 = arith.constant 0.000000e+00 : f32
      %59 = vector.broadcast %cst_30 : f32 to vector<1x128xf32>
      %c0_31 = arith.constant 0 : index
      %c0_32 = arith.constant 0 : index
      %c0_33 = arith.constant 0 : index
      %60 = vector.load %arg9[%c0_31, %c0_32, %c0_33] : memref<1x1x128xf32, #tpu.memory_space<vmem>>, vector<1x1x128xf32>
      %61 = vector.shape_cast %60 : vector<1x1x128xf32> to vector<1x128xf32>
      %62 = vector.shape_cast %59 : vector<1x128xf32> to vector<1x1x128xf32>
      tpu.vector_store %arg9[%c0_31, %c0_32, %c0_33], %62 {strides = array<i32>} : memref<1x1x128xf32, #tpu.memory_space<vmem>>, vector<1x1x128xf32>,
      %cst_34 = arith.constant 0.000000e+00 : f32
      %63 = vector.broadcast %cst_34 : f32 to vector<1x128xf32>
      %c0_35 = arith.constant 0 : index
      %c0_36 = arith.constant 0 : index
      %c0_37 = arith.constant 0 : index
      %64 = vector.load %arg10[%c0_35, %c0_36, %c0_37] : memref<1x1x128xf32, #tpu.memory_space<vmem>>, vector<1x1x128xf32>
      %65 = vector.shape_cast %64 : vector<1x1x128xf32> to vector<1x128xf32>
      %66 = vector.shape_cast %63 : vector<1x128xf32> to vector<1x1x128xf32>
      tpu.vector_store %arg10[%c0_35, %c0_36, %c0_37], %66 {strides = array<i32>} : memref<1x1x128xf32, #tpu.memory_space<vmem>>, vector<1x1x128xf32>,
    } else {
    }
    %c0_11 = arith.constant 0 : index
    %c0_12 = arith.constant 0 : index
    %33 = vector.load %arg7[%c0_11, %c0_12] : memref<64x1xf32, #tpu.memory_space<vmem>>, vector<64x1xf32>
    %c0_13 = arith.constant 0 : index
    %c0_14 = arith.constant 0 : index
    %c0_15 = arith.constant 0 : index
    %34 = vector.load %arg9[%c0_13, %c0_14, %c0_15] : memref<1x1x128xf32, #tpu.memory_space<vmem>>, vector<1x1x128xf32>
    %35 = vector.shape_cast %34 : vector<1x1x128xf32> to vector<1x128xf32>
    %36 = vector.broadcast %33 : vector<64x1xf32> to vector<64x128xf32>
    %37 = arith.mulf %29, %36 : vector<64x128xf32>
    %cst_16 = arith.constant dense<0.000000e+00> : vector<128xf32>
    %38 = vector.multi_reduction <add>, %37, %cst_16 [0] : vector<64x128xf32> to vector<128xf32>
    %39 = vector.shape_cast %38 : vector<128xf32> to vector<1x128xf32>
    %40 = arith.addf %35, %39 : vector<1x128xf32>
    %c0_17 = arith.constant 0 : index
    %c0_18 = arith.constant 0 : index
    %c0_19 = arith.constant 0 : index
    %41 = vector.load %arg9[%c0_17, %c0_18, %c0_19] : memref<1x1x128xf32, #tpu.memory_space<vmem>>, vector<1x1x128xf32>
    %42 = vector.shape_cast %41 : vector<1x1x128xf32> to vector<1x128xf32>
    %43 = vector.shape_cast %40 : vector<1x128xf32> to vector<1x1x128xf32>
    tpu.vector_store %arg9[%c0_17, %c0_18, %c0_19], %43 {strides = array<i32>} : memref<1x1x128xf32, #tpu.memory_space<vmem>>, vector<1x1x128xf32>,
    %c0_20 = arith.constant 0 : index
    %c0_21 = arith.constant 0 : index
    %c0_22 = arith.constant 0 : index
    %44 = vector.load %arg10[%c0_20, %c0_21, %c0_22] : memref<1x1x128xf32, #tpu.memory_space<vmem>>, vector<1x1x128xf32>
    %45 = vector.shape_cast %44 : vector<1x1x128xf32> to vector<1x128xf32>
    %46 = arith.mulf %29, %29 : vector<64x128xf32>
    %47 = vector.broadcast %33 : vector<64x1xf32> to vector<64x128xf32>
    %48 = arith.mulf %46, %47 : vector<64x128xf32>
    %cst_23 = arith.constant dense<0.000000e+00> : vector<128xf32>
    %49 = vector.multi_reduction <add>, %48, %cst_23 [0] : vector<64x128xf32> to vector<128xf32>
    %50 = vector.shape_cast %49 : vector<128xf32> to vector<1x128xf32>
    %51 = arith.addf %45, %50 : vector<1x128xf32>
    %c0_24 = arith.constant 0 : index
    %c0_25 = arith.constant 0 : index
    %c0_26 = arith.constant 0 : index
    %52 = vector.load %arg10[%c0_24, %c0_25, %c0_26] : memref<1x1x128xf32, #tpu.memory_space<vmem>>, vector<1x1x128xf32>
    %53 = vector.shape_cast %52 : vector<1x1x128xf32> to vector<1x128xf32>
    %54 = vector.shape_cast %51 : vector<1x128xf32> to vector<1x1x128xf32>
    tpu.vector_store %arg10[%c0_24, %c0_25, %c0_26], %54 {strides = array<i32>} : memref<1x1x128xf32, #tpu.memory_space<vmem>>, vector<1x1x128xf32>,
    %55 = arith.truncf %29 : vector<64x128xf32> to vector<64x128xbf16>
    %c0_27 = arith.constant 0 : index
    %c0_28 = arith.constant 0 : index
    %c0_29 = arith.constant 0 : index
    %56 = vector.load %arg8[%c0_27, %c0_28, %c0_29] : memref<1x64x128xbf16, #tpu.memory_space<vmem>>, vector<1x64x128xbf16>
    %57 = vector.shape_cast %56 : vector<1x64x128xbf16> to vector<64x128xbf16>
    %58 = vector.shape_cast %55 : vector<64x128xbf16> to vector<1x64x128xbf16>
    tpu.vector_store %arg8[%c0_27, %c0_28, %c0_29], %58 {strides = array<i32>} : memref<1x64x128xbf16, #tpu.memory_space<vmem>>, vector<1x64x128xbf16>,
    return
  }
  func.func @transform_0(%arg0: i32, %arg1: i32) -> (i32, i32, i32) {
    %c0_i32 = arith.constant 0 : i32
    %c0_i32_0 = arith.constant 0 : i32
    %c0_i32_1 = arith.constant 0 : i32
    return %arg0, %c0_i32, %c0_i32_0 : i32, i32, i32
  }
  func.func @transform_1(%arg0: i32, %arg1: i32) -> (i32, i32) {
    %c0_i32 = arith.constant 0 : i32
    %c0_i32_0 = arith.constant 0 : i32
    %c0_i32_1 = arith.constant 0 : i32
    return %c0_i32, %c0_i32_0 : i32, i32
  }
  func.func @transform_2(%arg0: i32, %arg1: i32) -> (i32, i32) {
    %c0_i32 = arith.constant 0 : i32
    %c0_i32_0 = arith.constant 0 : i32
    %c0_i32_1 = arith.constant 0 : i32
    return %c0_i32, %c0_i32_0 : i32, i32
  }
  func.func @transform_3(%arg0: i32, %arg1: i32) -> (i32, i32) {
    %c0_i32 = arith.constant 0 : i32
    %c0_i32_0 = arith.constant 0 : i32
    %c0_i32_1 = arith.constant 0 : i32
    return %c0_i32, %c0_i32_0 : i32, i32
  }
  func.func @transform_4(%arg0: i32, %arg1: i32) -> (i32, i32) {
    %c0_i32 = arith.constant 0 : i32
    %c0_i32_0 = arith.constant 0 : i32
    %c0_i32_1 = arith.constant 0 : i32
    return %c0_i32, %c0_i32_0 : i32, i32
  }
  func.func @transform_5(%arg0: i32, %arg1: i32) -> (i32, i32) {
    %c0_i32 = arith.constant 0 : i32
    %c0_i32_0 = arith.constant 0 : i32
    return %arg1, %c0_i32 : i32, i32
  }
  func.func @transform_6(%arg0: i32, %arg1: i32) -> (i32, i32, i32) {
    %c0_i32 = arith.constant 0 : i32
    %c0_i32_0 = arith.constant 0 : i32
    return %arg0, %arg1, %c0_i32 : i32, i32, i32
  }
  func.func @transform_7(%arg0: i32, %arg1: i32) -> (i32, i32, i32) {
    %c0_i32 = arith.constant 0 : i32
    %c0_i32_0 = arith.constant 0 : i32
    %c0_i32_1 = arith.constant 0 : i32
    return %arg0, %c0_i32, %c0_i32_0 : i32, i32, i32
  }
  func.func @transform_8(%arg0: i32, %arg1: i32) -> (i32, i32, i32) {
    %c0_i32 = arith.constant 0 : i32
    %c0_i32_0 = arith.constant 0 : i32
    %c0_i32_1 = arith.constant 0 : i32
    return %arg0, %c0_i32, %c0_i32_0 : i32, i32, i32
  }
}

module attributes {stable_mosaic.version = 11 : i64} {
  func.func @_flat_tap_kernel(%arg0: i32, %arg1: i32, %arg2: memref<1x152x16xbf16, #tpu.memory_space<vmem>>, %arg3: memref<144x128xbf16, #tpu.memory_space<vmem>>, %arg4: memref<1x16xf32, #tpu.memory_space<vmem>>, %arg5: memref<1x16xf32, #tpu.memory_space<vmem>>, %arg6: memref<1x128xf32, #tpu.memory_space<vmem>>, %arg7: memref<1x128x128xf32, #tpu.memory_space<vmem>>) attributes {dimension_semantics = [#tpu.dimension_semantics<parallel>, #tpu.dimension_semantics<parallel>], iteration_bounds = array<i64: 2, 1>, scalar_prefetch = 0 : i64, scratch_operands = 0 : i64, tpu.core_type = #tpu.core_type<tc>, window_params = [{transform_indices = @transform_0, window_bounds = array<i64: 1, 152, 16>}, {pipeline_mode = #tpu.pipeline_mode<synchronous>, transform_indices = @transform_1, window_bounds = array<i64: 144, 128>}, {pipeline_mode = #tpu.pipeline_mode<synchronous>, transform_indices = @transform_2, window_bounds = array<i64: 1, 16>}, {pipeline_mode = #tpu.pipeline_mode<synchronous>, transform_indices = @transform_3, window_bounds = array<i64: 1, 16>}, {pipeline_mode = #tpu.pipeline_mode<synchronous>, transform_indices = @transform_4, window_bounds = array<i64: 1, 128>}, {transform_indices = @transform_5, window_bounds = array<i64: 1, 128, 128>}]} {
    %c128_i32 = arith.constant 128 : i32
    %0 = arith.muli %arg1, %c128_i32 : i32
    %1 = tpu.assume_multiple %0, 128 : i32
    %c0 = arith.constant 0 : index
    %2 = arith.index_cast %1 : i32 to index
    %c0_0 = arith.constant 0 : index
    %3 = vector.load %arg2[%c0, %2, %c0_0] : memref<1x152x16xbf16, #tpu.memory_space<vmem>>, vector<1x152x16xbf16>
    %4 = vector.shape_cast %3 : vector<1x152x16xbf16> to vector<152x16xbf16>
    %5 = arith.extf %4 : vector<152x16xbf16> to vector<152x16xf32>
    %c0_1 = arith.constant 0 : index
    %c0_2 = arith.constant 0 : index
    %6 = vector.load %arg4[%c0_1, %c0_2] : memref<1x16xf32, #tpu.memory_space<vmem>>, vector<1x16xf32>
    %7 = vector.broadcast %6 : vector<1x16xf32> to vector<152x16xf32>
    %8 = arith.mulf %5, %7 : vector<152x16xf32>
    %c0_3 = arith.constant 0 : index
    %c0_4 = arith.constant 0 : index
    %9 = vector.load %arg5[%c0_3, %c0_4] : memref<1x16xf32, #tpu.memory_space<vmem>>, vector<1x16xf32>
    %10 = vector.broadcast %9 : vector<1x16xf32> to vector<152x16xf32>
    %11 = arith.addf %8, %10 : vector<152x16xf32>
    %cst = arith.constant 0.000000e+00 : f32
    %12 = vector.broadcast %cst : f32 to vector<152x16xf32>
    %13 = arith.maximumf %11, %12 : vector<152x16xf32>
    %14 = arith.truncf %13 : vector<152x16xf32> to vector<152x16xbf16>
    %15 = vector.extract_strided_slice %14 {offsets = [0, 0], sizes = [128, 16], strides = [1, 1]} : vector<152x16xbf16> to vector<128x16xbf16>
    %16 = vector.extract_strided_slice %14 {offsets = [1, 0], sizes = [128, 16], strides = [1, 1]} : vector<152x16xbf16> to vector<128x16xbf16>
    %17 = vector.extract_strided_slice %14 {offsets = [2, 0], sizes = [128, 16], strides = [1, 1]} : vector<152x16xbf16> to vector<128x16xbf16>
    %18 = vector.extract_strided_slice %14 {offsets = [10, 0], sizes = [128, 16], strides = [1, 1]} : vector<152x16xbf16> to vector<128x16xbf16>
    %19 = vector.extract_strided_slice %14 {offsets = [11, 0], sizes = [128, 16], strides = [1, 1]} : vector<152x16xbf16> to vector<128x16xbf16>
    %20 = vector.extract_strided_slice %14 {offsets = [12, 0], sizes = [128, 16], strides = [1, 1]} : vector<152x16xbf16> to vector<128x16xbf16>
    %21 = vector.extract_strided_slice %14 {offsets = [20, 0], sizes = [128, 16], strides = [1, 1]} : vector<152x16xbf16> to vector<128x16xbf16>
    %22 = vector.extract_strided_slice %14 {offsets = [21, 0], sizes = [128, 16], strides = [1, 1]} : vector<152x16xbf16> to vector<128x16xbf16>
    %23 = vector.extract_strided_slice %14 {offsets = [22, 0], sizes = [128, 16], strides = [1, 1]} : vector<152x16xbf16> to vector<128x16xbf16>
    %24 = tpu.concatenate %15, %16, %17, %18, %19, %20, %21, %22, %23 in 1 : vector<128x16xbf16>, vector<128x16xbf16>, vector<128x16xbf16>, vector<128x16xbf16>, vector<128x16xbf16>, vector<128x16xbf16>, vector<128x16xbf16>, vector<128x16xbf16>, vector<128x16xbf16> -> vector<128x144xbf16>
    %c0_5 = arith.constant 0 : index
    %c0_6 = arith.constant 0 : index
    %25 = vector.load %arg3[%c0_5, %c0_6] : memref<144x128xbf16, #tpu.memory_space<vmem>>, vector<144x128xbf16>
    %cst_7 = arith.constant dense<0.000000e+00> : vector<128x128xf32>
    %26 = tpu.matmul %24, %25, %cst_7 {dimension_numbers = #tpu.dot_dimension_numbers<[1], [0], [0], [1], [0, 0, 1, 1], [], []>} : vector<128x144xbf16>, vector<144x128xbf16>, vector<128x128xf32> -> vector<128x128xf32>
    %c0_8 = arith.constant 0 : index
    %c0_9 = arith.constant 0 : index
    %27 = vector.load %arg6[%c0_8, %c0_9] : memref<1x128xf32, #tpu.memory_space<vmem>>, vector<1x128xf32>
    %28 = vector.broadcast %27 : vector<1x128xf32> to vector<128x128xf32>
    %29 = arith.addf %26, %28 : vector<128x128xf32>
    %30 = math.tanh %29 : vector<128x128xf32>
    %c0_10 = arith.constant 0 : index
    %c0_11 = arith.constant 0 : index
    %c0_12 = arith.constant 0 : index
    %31 = vector.load %arg7[%c0_10, %c0_11, %c0_12] : memref<1x128x128xf32, #tpu.memory_space<vmem>>, vector<1x128x128xf32>
    %32 = vector.shape_cast %31 : vector<1x128x128xf32> to vector<128x128xf32>
    %33 = vector.shape_cast %30 : vector<128x128xf32> to vector<1x128x128xf32>
    tpu.vector_store %arg7[%c0_10, %c0_11, %c0_12], %33 {strides = array<i32>} : memref<1x128x128xf32, #tpu.memory_space<vmem>>, vector<1x128x128xf32>,
    return
  }
  func.func @transform_0(%arg0: i32, %arg1: i32) -> (i32, i32, i32) {
    %c0_i32 = arith.constant 0 : i32
    %c0_i32_0 = arith.constant 0 : i32
    %c0_i32_1 = arith.constant 0 : i32
    return %arg0, %c0_i32, %c0_i32_0 : i32, i32, i32
  }
  func.func @transform_1(%arg0: i32, %arg1: i32) -> (i32, i32) {
    %c0_i32 = arith.constant 0 : i32
    %c0_i32_0 = arith.constant 0 : i32
    %c0_i32_1 = arith.constant 0 : i32
    return %c0_i32, %c0_i32_0 : i32, i32
  }
  func.func @transform_2(%arg0: i32, %arg1: i32) -> (i32, i32) {
    %c0_i32 = arith.constant 0 : i32
    %c0_i32_0 = arith.constant 0 : i32
    %c0_i32_1 = arith.constant 0 : i32
    return %c0_i32, %c0_i32_0 : i32, i32
  }
  func.func @transform_3(%arg0: i32, %arg1: i32) -> (i32, i32) {
    %c0_i32 = arith.constant 0 : i32
    %c0_i32_0 = arith.constant 0 : i32
    %c0_i32_1 = arith.constant 0 : i32
    return %c0_i32, %c0_i32_0 : i32, i32
  }
  func.func @transform_4(%arg0: i32, %arg1: i32) -> (i32, i32) {
    %c0_i32 = arith.constant 0 : i32
    %c0_i32_0 = arith.constant 0 : i32
    %c0_i32_1 = arith.constant 0 : i32
    return %c0_i32, %c0_i32_0 : i32, i32
  }
  func.func @transform_5(%arg0: i32, %arg1: i32) -> (i32, i32, i32) {
    %c0_i32 = arith.constant 0 : i32
    %c0_i32_0 = arith.constant 0 : i32
    return %arg0, %arg1, %c0_i32 : i32, i32, i32
  }
}

</mosaic_0001>

<bundles_post_ra>
// kernel: unet_forward.6
= control target key start
LH: loop header
LB: loop body
LE: loop exit
PB: predicated region body
PF: predicated region fallthrough
CT: control target
= control target key end

     0   :  { %s1029_s18 = smov 0   ;;  %s1031_s19 = smov 0   ;;  %s1248_s0 = inlined_call_operand.vmem [shape: bf16[2,112,16], index: 0, kind: input, shape index: {}]   ;;  %s1249_s1 = inlined_call_operand.vmem [shape: bf16[64,128], index: 1, kind: input, shape index: {}]   ;;  %s1250_s2 = inlined_call_operand.vmem [shape: f32[1,16], index: 2, kind: input, shape index: {}]   ;;  %s1251_s3 = inlined_call_operand.vmem [shape: f32[1,16], index: 3, kind: input, shape index: {}]   ;;  %s1252_s4 = inlined_call_operand.vmem [shape: f32[1,128], index: 4, kind: input, shape index: {}]   ;;  %s1253_s5 = inlined_call_operand.vmem [shape: bf16[2,96,128], index: 5, kind: output, shape index: {}]  }
   0x1   :  { %s1033_s20 = smov 0  }
   0x2 LB: > { %s27_s21 = sadd.s32 1, %s990_s19  ;;  %p790_p0 = scmp.ge.s32.totalorder %s994_s20, 1  ;;  %s994_s20 = sphi %s1033_s20, %s15_s20   ;;  %s990_s19 = sphi %s1031_s19, %s1255_s19   ;;  %s986_s18 = sphi %s1029_s18, %s1254_s18  }
   0x3   : > { %p29_p1 = scmp.ge.s32.totalorder %s27_s21, 2  ;;  %p201_p2 = scmp.lt.s32.totalorder %s994_s20, 3 }
   0x5   : > { %s1257_s21 = smov (%p29_p1, %s27_s21), 0  ;;  %p202_p3 = pnand %p790_p0, %p201_p2 }
   0x6   : > { %p233_p4 = scmp.lt.s32.totalorder (!%p202_p3), %s986_s18, 1  ;;  %s996_s13 = smov (!%p202_p3), 48  }
   0x7   : > { %205 = sbr.rel (%p202_p3) target bundleno = 385 (0x181), region = 40  ;;  %s997_s14 = smov (!%p202_p3), 32  }
   0x8   : > { %s998_s15 = smov (!%p202_p3), 16  }
   0xc   : > { %s1259_s18 = smov (!%p233_p4, %s986_s18), 1  ;;  %v968_v0 = vld [vmem:[%s1249_s1 + $0x18] sm:$0xff]   ;;  %v969_v1 = vld [vmem:[%s1249_s1 + $0x10] sm:$0xff]   ;;  %v1064_v2 = vld [vmem:[%s1250_s2] ss:$0 sm:$0xff]  ;;  %vm445_vm0 = vcmask 1042432  }
   0xd   : > { %s939_s26 = smul.u32 56, %s1259_s18  ;;  %931 = vmatprep.subr.bf16.mxu1 %v968_v0  ;;  %911 = vmatprep.subr.bf16.mxu0 %v968_v0  ;;  %v970_v3 = vld [vmem:[%s1249_s1 + $0x8] sm:$0xff]   ;;  %v1076_v12 = vld [vmem:[%s1251_s3] ss:$0 sm:$0xff]  ;;  %vm396_vm1 = vsmask.f32 3328 }
   0xe   : > { %935 = vmatpush3.bf16.msra.mxu1 %v968_v0  ;;  %912 = vmatpush3.bf16.msra.mxu0 %v968_v0  ;;  %v971_v26 = vld [vmem:[%s1249_s1] sm:$0xff]   ;;  %vm331_vm2 = vsmask.f32 7424  ;;  %vm471_vm3 = vcmask 130048   ;;  %vm484_vm4 = vcmask 261120   ;;  %vm497_vm5 = vcmask 392192  }
   0xf   : > { %s1059_s29 = scalar_lea.vmem %s1248_s0, %s939_s26  ;;  %932 = vmatprep.subr.bf16.mxu1 %v969_v1  ;;  %913 = vmatprep.subr.bf16.mxu0 %v969_v1  ;;  %vm549_vm6 = vcmask 523264   ;;  %s940_s22 = smul.u32 48, %s1259_s18 }
  0x10   : > { %v892_v4 = vld [vmem:[%s1059_s29 + $0x18] sm:$0xff]   ;;  %v893_v5 = vld [vmem:[%s1059_s29 + $0x20] sm:$0xff]   ;;  %v891_v6 = vld [vmem:[%s1059_s29 + $0x10] sm:$0xff]  }
  0x11   : > { %v846_v7 = vunpack.c.l.bf16 %v892_v4  ;;  %v847_v8 = vunpack.c.h.bf16 %v892_v4  ;;  %v850_v9 = vunpack.c.l.bf16 %v893_v5  ;;  %v851_v10 = vunpack.c.h.bf16 %v893_v5  ;;  %v894_v11 = vld [vmem:[%s1059_s29 + $0x28] sm:$0xff]   ;;  %v833_v25 = vld [vmem:[%s1059_s29] sm:$0xff]   ;;  %s1231_s25 = scalar_lea.vmem %s1253_s5, %s940_s22 }
  0x12   : > { %v842_v13 = vunpack.c.l.bf16 %v891_v6  ;;  %v843_v14 = vunpack.c.h.bf16 %v891_v6  ;;  %v854_v15 = vunpack.c.l.bf16 %v894_v11  ;;  %v855_v16 = vunpack.c.h.bf16 %v894_v11  ;;  %936 = vmatpush3.bf16.msra.mxu1 %v969_v1  ;;  %914 = vmatpush3.bf16.msra.mxu0 %v969_v1  ;;  %v890_v31 = vld [vmem:[%s1059_s29 + $0x8] sm:$0xff]  }
  0x13   : > { %v295_v17 = vmul.f32 %v846_v7, %v1064_v2  ;;  %v296_v18 = vmul.f32 %v847_v8, %v1064_v2  ;;  %v297_v19 = vmul.f32 %v850_v9, %v1064_v2  ;;  %v298_v20 = vmul.f32 %v851_v10, %v1064_v2  ;;  %933 = vmatprep.subr.bf16.mxu1 %v970_v3  ;;  %v895_v9 = vld [vmem:[%s1059_s29 + $0x30] sm:$0xff]  }
  0x14   : > { %v293_v21 = vmul.f32 %v842_v13, %v1064_v2  ;;  %v294_v22 = vmul.f32 %v843_v14, %v1064_v2  ;;  %v299_v23 = vmul.f32 %v854_v15, %v1064_v2  ;;  %v300_v24 = vmul.f32 %v855_v16, %v1064_v2  ;;  %915 = vmatprep.subr.bf16.mxu0 %v970_v3 }
  0x15   : > { %v316_v27 = vadd.f32 %v1076_v12, %v295_v17  ;;  %v317_v28 = vadd.f32 %v1076_v12, %v296_v18  ;;  %v318_v29 = vadd.f32 %v1076_v12, %v297_v19  ;;  %v319_v30 = vadd.f32 %v1076_v12, %v298_v20 }
  0x16   : > { %v314_v32 = vadd.f32 %v1076_v12, %v293_v21  ;;  %v315_v33 = vadd.f32 %v1076_v12, %v294_v22  ;;  %v320_v34 = vadd.f32 %v1076_v12, %v299_v23  ;;  %v321_v35 = vadd.f32 %v1076_v12, %v300_v24  ;;  %937 = vmatpush3.bf16.msra.mxu1 %v970_v3 }
  0x17   : > { %v1099_v36 = vpack.c.bf16 %v317_v28, %v316_v27  ;;  %v1101_v37 = vpack.c.bf16 %v319_v30, %v318_v29  ;;  %v834_v38 = vunpack.c.l.bf16 %v833_v25  ;;  %v835_v39 = vunpack.c.h.bf16 %v833_v25  ;;  %934 = vmatprep.subr.bf16.mxu1 %v971_v26  ;;  %916 = vmatpush3.bf16.msra.mxu0 %v970_v3 }
  0x18   : > { %v1103_v40 = vpack.c.bf16 %v315_v33, %v314_v32  ;;  %v1105_v41 = vpack.c.bf16 %v321_v35, %v320_v34  ;;  %v838_v42 = vunpack.c.l.bf16 %v890_v31  ;;  %v839_v43 = vunpack.c.h.bf16 %v890_v31  ;;  %917 = vmatprep.subr.bf16.mxu0 %v971_v26 }
  0x19   : > { %v451_v44 = vrot.slane %v1099_v36, 5  ;;  %v453_v45 = vrot.slane %v1101_v37, 5  ;;  %v356_v46 = vshll.u32 %v1099_v36, 16  ;;  %v360_v47 = vshrl.u32 %v1099_v36, 16 }
  0x1a   : > { %v449_v48 = vrot.slane %v1103_v40, 5  ;;  %v348_v49 = vshll.u32 %v1103_v40, 16  ;;  %v352_v50 = vshrl.u32 %v1103_v40, 16  ;;  %v364_v51 = vshll.u32 %v1101_v37, 16  ;;  %938 = vmatpush3.bf16.msra.mxu1 %v971_v26 }
  0x1b   : > { %v454_v52 = vsel %vm445_vm0, %v451_v44, %v453_v45  ;;  %v408_v53 = vrot.slane %v360_v47, 4  ;;  %v409_v54 = vrot.slane %v356_v46, 5  ;;  %v358_v55 = vrot.slane %v356_v46, 1  ;;  %918 = vmatpush3.bf16.msra.mxu0 %v971_v26 }
  0x1c   : > { %465 = vrot.lane.b32.xlu1 %v454_v52, %s996_s13  ;;  %v452_v56 = vsel %vm445_vm0, %v449_v48, %v451_v44  ;;  %v404_v57 = vrot.slane %v352_v50, 4  ;;  %v405_v58 = vrot.slane %v348_v49, 5  ;;  %v1122_v59 = vrot.slane %v348_v49, 1 }
  0x1d   : > { %463 = vrot.lane.b32.xlu0 %v452_v56, %s996_s13  ;;  %v410_v60 = vor.u32 %v409_v54, %v408_v53  ;;  %v368_v61 = vshrl.u32 %v1101_v37, 16  ;;  %v413_v62 = vrot.slane %v364_v51, 5  ;;  %v362_v63 = vor.u32 %v360_v47, %v358_v55 }
  0x1e   : > { %v1126_v0 = vor.u32 %v405_v58, %v404_v57  ;;  %v354_v1 = vor.u32 %v352_v50, %v1122_v59  ;;  %v366_v3 = vrot.slane %v364_v51, 1  ;;  %v372_v4 = vshll.u32 %v1105_v41, 16 }
  0x1f   : > { %v412_v5 = vrot.slane %v368_v61, 4  ;;  %v289_v6 = vmul.f32 %v834_v38, %v1064_v2  ;;  %v290_v7 = vmul.f32 %v835_v39, %v1064_v2  ;;  %v291_v8 = vmul.f32 %v838_v42, %v1064_v2 }
  0x20   : > { %v411_v10 = vsel %vm396_vm1, %v1126_v0, %v410_v60  ;;  %v359_v11 = vsel %vm331_vm2, %v354_v1, %v358_v55  ;;  %v367_v13 = vsel %vm331_vm2, %v362_v63, %v366_v3  ;;  %v370_v14 = vor.u32 %v368_v61, %v366_v3 }
  0x21   : > { %430 = vrot.lane.b32.xlu1 %v411_v10, %s997_s14  ;;  %388 = vrot.lane.b32.xlu0 %v359_v11, %s998_s15  ;;  %v414_v15 = vor.u32 %v413_v62, %v412_v5  ;;  %v374_v16 = vrot.slane %v372_v4, 1  ;;  %v292_v17 = vmul.f32 %v839_v43, %v1064_v2  ;;  %v310_v18 = vadd.f32 %v1076_v12, %v289_v6 }
  0x22   : > { %v311_v19 = vadd.f32 %v1076_v12, %v290_v7  ;;  %v312_v20 = vadd.f32 %v1076_v12, %v291_v8  ;;  %v858_v21 = vunpack.c.l.bf16 %v895_v9  ;;  %v859_v22 = vunpack.c.h.bf16 %v895_v9 }
  0x23   : > { %v415_v23 = vsel %vm396_vm1, %v410_v60, %v414_v15  ;;  %v313_v24 = vadd.f32 %v1076_v12, %v292_v17  ;;  %v376_v28 = vshrl.u32 %v1105_v41, 16  ;;  %v375_v29 = vsel %vm331_vm2, %v370_v14, %v374_v16 }
  0x24   : > { %v1146_v25 = vpack.c.bf16 %v311_v19, %v310_v18  ;;  %v301_v26 = vmul.f32 %v858_v21, %v1064_v2  ;;  %v302_v27 = vmul.f32 %v859_v22, %v1064_v2  ;;  %v417_v39 = vrot.slane %v372_v4, 5 }
  0x25   : > { %432 = vrot.lane.b32.xlu1 %v415_v23, %s997_s14  ;;  %390 = vrot.lane.b32.xlu0 %v367_v13, %s998_s15  ;;  %v1154_v30 = vpack.c.bf16 %v313_v24, %v312_v20  ;;  %v416_v38 = vrot.slane %v376_v28, 4  ;;  %v378_v44 = vor.u32 %v376_v28, %v374_v16  ;;  %v455_v7 = vrot.slane %v1105_v41, 5 }
  0x26   : > { %v333_v31 = vshrl.u32 %v1146_v25, 16  ;;  %v335_v32 = vshll.u32 %v1146_v25, 16  ;;  %v322_v33 = vadd.f32 %v1076_v12, %v301_v26  ;;  %v323_v34 = vadd.f32 %v1076_v12, %v302_v27 }
  0x27   : > { %v340_v2 = vshll.u32 %v1154_v30, 16  ;;  %v344_v35 = vshrl.u32 %v1154_v30, 16  ;;  %v418_v55 = vor.u32 %v417_v39, %v416_v38  ;;  %v446_v8 = vrot.slane %v1146_v25, 5 }
  0x28   : > { %v337_v42 = vrot.slane %v335_v32, 1  ;;  %v330_v43 = vpack.c.bf16 %v323_v34, %v322_v33  ;;  %v397_v47 = vrot.slane %v333_v31, 4  ;;  %v398_v49 = vrot.slane %v335_v32, 5 }
  0x29   : > { %392 = vrot.lane.b32.xlu1 %v375_v29, %s998_s15  ;;  %v342_v46 = vrot.slane %v340_v2, 1  ;;  %v400_v50 = vrot.slane %v344_v35, 4  ;;  %v401_v53 = vrot.slane %v340_v2, 5  ;;  %v419_v3 = vsel %vm396_vm1, %v414_v15, %v418_v55 }
  0x2a   : > { %v338_v51 = vor.u32 %v337_v42, %v333_v31  ;;  %v380_v52 = vshll.u32 %v330_v43, 16  ;;  %v420_v54 = vshrl.u32 %v330_v43, 16  ;;  %v399_v63 = vor.u32 %v398_v49, %v397_v47 }
  0x2b   : > { %v346_v12 = vor.u32 %v344_v35, %v342_v46  ;;  %v402_v1 = vor.u32 %v401_v53, %v400_v50  ;;  %v447_v9 = vrot.slane %v1154_v30, 5  ;;  %v456_v10 = vsel %vm445_vm0, %v453_v45, %v455_v7 }
  0x2c   : > { %v343_v56 = vsel %vm331_vm2, %v338_v51, %v342_v46  ;;  %v382_v57 = vrot.slane %v380_v52, 1  ;;  %v422_v58 = vrot.slane %v420_v54, 4  ;;  %v423_v60 = vrot.slane %v380_v52, 5  ;;  %v795_v52 = vld [vmem:[%s1252_s4] ss:$0 sm:$0xff] }
  0x2d   : > { %384 = vrot.lane.b32.xlu0 %v343_v56, %s998_s15  ;;  %v351_v62 = vsel %vm331_vm2, %v346_v12, %v1122_v59  ;;  %v403_v5 = vsel %vm396_vm1, %v399_v63, %v402_v1  ;;  %v407_v59 = vsel %vm396_vm1, %v402_v1, %v1126_v0  ;;  %v457_v11 = vrot.slane %v330_v43, 5 }
  0x2e   : > { %v383_v61 = vsel %vm331_vm2, %v378_v44, %v382_v57  ;;  %v424_v4 = vor.u32 %v423_v60, %v422_v58  ;;  %v448_v13 = vsel %vm445_vm0, %v446_v8, %v447_v9  ;;  %v450_v0 = vsel %vm445_vm0, %v447_v9, %v449_v48 }
  0x2f   : > { %394 = vrot.lane.b32.xlu1 %v383_v61, %s998_s15  ;;  %v458_v14 = vsel %vm445_vm0, %v455_v7, %v457_v11 }
  0x30   : > { %v425_v6 = vsel %vm396_vm1, %v418_v55, %v424_v4 }
  0x31   : > { %386 = vrot.lane.b32.xlu0 %v351_v62, %s998_s15 }
  0x33   : > { %434 = vrot.lane.b32.xlu1 %v419_v3, %s997_s14 }
  0x35   : > { %426 = vrot.lane.b32.xlu0 %v403_v5, %s997_s14 }
  0x37   : > { %436 = vrot.lane.b32.xlu1 %v425_v6, %s997_s14 }
  0x39   : > { %428 = vrot.lane.b32.xlu0 %v407_v59, %s997_s14 }
  0x3b   : > { %467 = vrot.lane.b32.xlu1 %v456_v10, %s996_s13 }
  0x3d   : > { %459 = vrot.lane.b32.xlu0 %v448_v13, %s996_s13 }
  0x3f   : > { %469 = vrot.lane.b32.xlu1 %v458_v14, %s996_s13 }
  0x41   : > { %461 = vrot.lane.b32.xlu0 %v450_v0, %s996_s13 }
  0x8e   : > { %v466_v45 = vpop.permute.xlu1 %465 }
  0x8f   : > { %v464_v15 = vpop.permute.xlu0 %463 }
  0x93   : > { %v431_v16 = vpop.permute.xlu1 %430  ;;  %v389_v17 = vpop.permute.xlu0 %388 }
  0x94   : > { %v477_v18 = vsel %vm471_vm3, %v1103_v40, %v389_v17 }
  0x95   : > { %v490_v19 = vsel %vm484_vm4, %v477_v18, %v431_v16 }
  0x96   : > { %v503_v20 = vsel %vm497_vm5, %v490_v19, %v464_v15 }
  0x97   : > { %v433_v48 = vpop.permute.xlu1 %432  ;;  %923 = vmatprep.mubr.msk.bf16.mxu1 %vm549_vm6, %v503_v20  ;;  %v391_v21 = vpop.permute.xlu0 %390 }
  0x98   : > { %v479_v22 = vsel %vm471_vm3, %v1099_v36, %v391_v21 }
  0x99   : > { %v492_v23 = vsel %vm484_vm4, %v479_v22, %v433_v48 }
  0x9a   : > { %v505_v24 = vsel %vm497_vm5, %v492_v23, %v466_v45 }
  0x9b   : > { %v393_v26 = vpop.permute.xlu1 %392  ;;  %924 = vmatmul.mubr.msk.bf16.vlgmr.msra.gmra.mxu1 %vm549_vm6, %v505_v24 }
  0x9c   : > { %v481_v34 = vsel %vm471_vm3, %v1101_v37, %v393_v26 }
  0x9f   : > { %v385_v40 = vpop.permute.xlu0 %384 }
  0xa0   : > { %v473_v35 = vsel %vm471_vm3, %v1146_v25, %v385_v40 }
  0xa1   : > { %v395_v27 = vpop.permute.xlu1 %394 }
  0xa2   : > { %v483_v43 = vsel %vm471_vm3, %v1105_v41, %v395_v27 }
  0xa3   : > { %v387_v28 = vpop.permute.xlu0 %386 }
  0xa4   : > { %v475_v25 = vsel %vm471_vm3, %v1154_v30, %v387_v28 }
  0xa5   : > { %v435_v29 = vpop.permute.xlu1 %434 }
  0xa6   : > { %v494_v2 = vsel %vm484_vm4, %v481_v34, %v435_v29 }
  0xa7   : > { %v427_v31 = vpop.permute.xlu0 %426 }
  0xa8   : > { %v486_v39 = vsel %vm484_vm4, %v473_v35, %v427_v31 }
  0xa9   : > { %v437_v32 = vpop.permute.xlu1 %436 }
  0xaa   : > { %v496_v37 = vsel %vm484_vm4, %v483_v43, %v437_v32 }
  0xab   : > { %v429_v33 = vpop.permute.xlu0 %428 }
  0xac   : > { %v488_v49 = vsel %vm484_vm4, %v475_v25, %v429_v33 }
  0xad   : > { %v468_v36 = vpop.permute.xlu1 %467 }
  0xae   : > { %v507_v38 = vsel %vm497_vm5, %v494_v2, %v468_v36 }
  0xaf   : > { %v460_v42 = vpop.permute.xlu0 %459  ;;  %927 = vmatprep.mubr.msk.bf16.mxu1 %vm549_vm6, %v507_v38 }
  0xb0   : > { %v499_v44 = vsel %vm497_vm5, %v486_v39, %v460_v42 }
  0xb1   : > { %919 = vmatprep.mubr.msk.bf16.mxu0 %vm549_vm6, %v499_v44  ;;  %v470_v46 = vpop.permute.xlu1 %469 }
  0xb2   : > { %v509_v47 = vsel %vm497_vm5, %v496_v37, %v470_v46 }
  0xb3   : > { %v462_v50 = vpop.permute.xlu0 %461  ;;  %928 = vmatmul.mubr.msk.bf16.gmra.mxu1 %vm549_vm6, %v509_v47 }
  0xb4   : > { %v501_v51 = vsel %vm497_vm5, %v488_v49, %v462_v50 }
  0xb5   : > { %920 = vmatmul.mubr.msk.bf16.vlgmr.msra.gmra.mxu0 %vm549_vm6, %v501_v51 }
 0x15b   : > { %v925_v41 = vpop.f32.mrf.mxu1 }
 0x15c   : > { %v621_v30 = vadd.f32 %v925_v41, %v795_v52 }
 0x15d   : > { %v612_v53 = vpop.f32.mrf.mxu1 }
 0x15e   : > { %v613_v56 = vadd.f32 %v795_v52, %v612_v53 }
 0x15f   : > { %v926_v54 = vpop.f32.mrf.mxu1 }
 0x160   : > { %v624_v12 = vadd.f32 %v926_v54, %v795_v52 }
 0x161   : > { %v615_v55 = vpop.f32.mrf.mxu1 }
 0x162   : > { %v878_v57 = vpack.c.bf16 %v624_v12, %v621_v30  ;;  %v616_v58 = vadd.f32 %v795_v52, %v615_v55 }
 0x164   : > { %898 = vst [vmem:[%s1231_s25 + $0x18] sm:$0xff] %v878_v57   ;;  %v873_v60 = vpack.c.bf16 %v616_v58, %v613_v56 }
 0x166   : > { %897 = vst [vmem:[%s1231_s25 + $0x10] sm:$0xff] %v873_v60  }
 0x173   : > { %v929_v61 = vpop.f32.mrf.mxu1 }
 0x174   : > { %v637_v4 = vadd.f32 %v929_v61, %v795_v52 }
 0x175   : > { %v921_v62 = vpop.f32.mrf.mxu0  ;;  %v628_v63 = vpop.f32.mrf.mxu1 }
 0x176   : > { %v605_v6 = vadd.f32 %v921_v62, %v795_v52  ;;  %v629_v8 = vadd.f32 %v795_v52, %v628_v63 }
 0x177   : > { %v596_v1 = vpop.f32.mrf.mxu0  ;;  %v930_v3 = vpop.f32.mrf.mxu1 }
 0x178   : > { %v640_v5 = vadd.f32 %v930_v3, %v795_v52  ;;  %v597_v14 = vadd.f32 %v795_v52, %v596_v1 }
 0x179   : > { %v922_v7 = vpop.f32.mrf.mxu0  ;;  %v631_v59 = vpop.f32.mrf.mxu1 }
 0x17a   : > { %v608_v9 = vadd.f32 %v922_v7, %v795_v52  ;;  %v888_v10 = vpack.c.bf16 %v640_v5, %v637_v4  ;;  %v632_v11 = vadd.f32 %v795_v52, %v631_v59 }
 0x17b   : > { %v599_v13 = vpop.f32.mrf.mxu0 }
 0x17c   : > { %v868_v0 = vpack.c.bf16 %v608_v9, %v605_v6  ;;  %900 = vst [vmem:[%s1231_s25 + $0x28] sm:$0xff] %v888_v10   ;;  %v600_v45 = vadd.f32 %v795_v52, %v599_v13  ;;  %v883_v15 = vpack.c.bf16 %v632_v11, %v629_v8 }
 0x17e   : > { %896 = vst [vmem:[%s1231_s25 + $0x8] sm:$0xff] %v868_v0   ;;  %v863_v16 = vpack.c.bf16 %v600_v45, %v597_v14  ;;  %899 = vst [vmem:[%s1231_s25 + $0x20] sm:$0xff] %v883_v15  }
 0x180   : > { %864 = vst [vmem:[%s1231_s25] sm:$0xff] %v863_v16  }
 0x181 PF: > { %s15_s20 = sadd.s32 1, %s994_s20   ;;  %s1254_s18 = smov %s990_s19 }
 0x182   : > { %p12_p5 = scmp.ge.s32.totalorder %s15_s20, 4   ;;  %s1255_s19 = smov %s1257_s21 }
 0x184   :  { %14 = sbr.rel (!%p12_p5) target bundleno = 2 (0x2), region = 71 }

// kernel: tile.18
= control target key start
LH: loop header
LB: loop body
LE: loop exit
PB: predicated region body
PF: predicated region fallthrough
CT: control target
= control target key end

     0   :  { %s22_s0 = inlined_call_operand.vmem [shape: f32[16], index: 0, kind: input, shape index: {}]   ;;  %s23_s1 = inlined_call_operand.vmem [shape: f32[4,16], index: 1, kind: output, shape index: {}]  }
   0x1   :  { %v4_v0 = vld [vmem:[%s22_s0] ss:$0 sm:$0xff] }
   0x2   :  { %5 = vst [vmem:[%s23_s1] sm:$0xf] %v4_v0 }

// kernel: tile.19
= control target key start
LH: loop header
LB: loop body
LE: loop exit
PB: predicated region body
PF: predicated region fallthrough
CT: control target
= control target key end

     0   :  { %vm8_vm0 = vcmask 130048   ;;  %s40_s8 = smov 16   ;;  %s41_s9 = smov 32   ;;  %vm14_vm1 = vcmask 523648   ;;  %vm20_vm2 = vcmask 392448   ;;  %vm26_vm3 = vcmask 261248   ;;  %s58_s0 = inlined_call_operand.vmem [shape: f32[4,16], index: 0, kind: input, shape index: {}]   ;;  %s59_s1 = inlined_call_operand.vmem [shape: f32[1,64], index: 1, kind: output, shape index: {}]  }
   0x1   :  { %v5_v0 = vld [vmem:[%s58_s0] sm:$0xf]  ;;  %s39_s0 = smov 48  }
   0x2   :  { %6 = vst [vmem:[#allocation1] sm:$0xf] %v5_v0 }
   0x9   :  { %v11_v1 = vld [vmem:[#allocation1 + $0x3] sm:$0x1]   ;;  %v23_v2 = vld [vmem:[#allocation1 + $0x1] sm:$0x1]   ;;  %v7_v3 = vld [vmem:[#allocation1] sm:$0x1]  }
   0xa   :  { %12 = vrot.lane.b32.xlu0 %v11_v1, %s39_s0  ;;  %24 = vrot.lane.b32.xlu1 %v23_v2, %s40_s8  ;;  %v17_v4 = vld [vmem:[#allocation1 + $0x2] sm:$0x1]   ;;  %9 = vst.msk [vmem:[#allocation0] sm:$0x1] %vm8_vm0, %v7_v3  }
   0xe   :  { %18 = vrot.lane.b32.xlu0 %v17_v4, %s41_s9 }
  0x7c   :  { %v13_v5 = vpop.permute.xlu0 %12   ;;  %v25_v6 = vpop.permute.xlu1 %24  }
  0x7d   :  { %15 = vst.msk [vmem:[#allocation0] sm:$0x1] %vm14_vm1, %v13_v5  }
  0x80   :  { %v19_v7 = vpop.permute.xlu0 %18  }
  0x81   :  { %21 = vst.msk [vmem:[#allocation0] sm:$0x1] %vm20_vm2, %v19_v7  }
  0x82   :  { %27 = vst.msk [vmem:[#allocation0] sm:$0x1] %vm26_vm3, %v25_v6  }
  0x89   :  { %v32_v8 = vld [vmem:[#allocation0] sm:$0x1] }
  0x8a   :  { %35 = vst [vmem:[%s59_s1] sm:$0x1] %v32_v8 }

// kernel: unet_forward.7
= control target key start
LH: loop header
LB: loop body
LE: loop exit
PB: predicated region body
PF: predicated region fallthrough
CT: control target
= control target key end

     0   :  { %s1048_s27 = smov 0   ;;  %s1050_s28 = smov 0   ;;  %s1164_s0 = inlined_call_operand.vmem [shape: bf16[2,40,32], index: 0, kind: input, shape index: {}]   ;;  %s1165_s1 = inlined_call_operand.vmem [shape: bf16[128,128], index: 1, kind: input, shape index: {}]   ;;  %s1166_s2 = inlined_call_operand.vmem [shape: f32[1,32], index: 2, kind: input, shape index: {}]   ;;  %s1167_s3 = inlined_call_operand.vmem [shape: f32[1,32], index: 3, kind: input, shape index: {}]   ;;  %s1168_s4 = inlined_call_operand.vmem [shape: f32[1,128], index: 4, kind: input, shape index: {}]   ;;  %s1169_s5 = inlined_call_operand.vmem [shape: f32[32,1], index: 5, kind: input, shape index: {}]   ;;  %s1170_s6 = inlined_call_operand.vmem [shape: bf16[2,32,128], index: 6, kind: output, shape index: {0}]   ;;  %s1171_s7 = inlined_call_operand.vmem [shape: f32[2,1,128], index: 7, kind: output, shape index: {1}]   ;;  %s1172_s8 = inlined_call_operand.vmem [shape: f32[2,1,128], index: 8, kind: output, shape index: {2}]  }
   0x1   :  { %s1052_s29 = smov 0  }
   0x2 LB: > { %s31_s30 = sadd.s32 1, %s992_s28  ;;  %p858_p0 = scmp.ge.s32.totalorder %s996_s29, 1  ;;  %s996_s29 = sphi %s1052_s29, %s19_s29   ;;  %s992_s28 = sphi %s1050_s28, %s1174_s28   ;;  %s988_s27 = sphi %s1048_s27, %s1173_s27  }
   0x3   : > { %p33_p1 = scmp.ge.s32.totalorder %s31_s30, 2  ;;  %p292_p2 = scmp.lt.s32.totalorder %s996_s29, 3 }
   0x5   : > { %s1176_s30 = smov (%p33_p1, %s31_s30), 0  ;;  %p293_p3 = pnand %p858_p0, %p292_p2 }
   0x6   : > { %p341_p4 = scmp.lt.s32.totalorder (!%p293_p3), %s988_s27, 1  ;;  %s998_s15 = smov (!%p293_p3), 32  }
   0x7   : > { %296 = sbr.rel (%p293_p3) target bundleno = 387 (0x183), region = 44  ;;  %s1000_s16 = smov (!%p293_p3), 64  }
   0x8   : > { %s1001_s17 = smov (!%p293_p3), 96  }
   0xc   : > { %s1178_s27 = smov (!%p341_p4, %s988_s27), 1  ;;  %v966_v0 = vld [vmem:[%s1165_s1 + $0x38] sm:$0xff]   ;;  %v967_v1 = vld [vmem:[%s1165_s1 + $0x30] sm:$0xff]   ;;  %v862_v2 = vld [vmem:[%s1166_s2] ss:$0 sm:$0xff]  ;;  %v999_v63 = vmov 0  }
   0xd   : > { %s934_s13 = smul.u32 20, %s1178_s27  ;;  %914 = vmatprep.subr.bf16.mxu0 %v966_v0  ;;  %v968_v3 = vld [vmem:[%s1165_s1 + $0x28] sm:$0xff]   ;;  %v863_v11 = vld [vmem:[%s1167_s3] ss:$0 sm:$0xff]  ;;  %v970_v24 = vld [vmem:[%s1165_s1 + $0x18] sm:$0xff]   ;;  %965 = vset.pattern.permute.xlu1 %v999_v63  ;;  %vm472_vm7 = vcmask 1044480   ;;  %s1134_s10 = scalar_lea.vmem %s1171_s7, %s1178_s27 }
   0xe   : > { %915 = vmatpush3.bf16.msra.mxu0 %v966_v0  ;;  %v969_v17 = vld [vmem:[%s1165_s1 + $0x20] sm:$0xff]   ;;  %v971_v36 = vld [vmem:[%s1165_s1 + $0x10] sm:$0xff]   ;;  %vm451_vm5 = vsmask.f32 5376  ;;  %vm426_vm6 = vsmask.f32 7424  ;;  %964 = vset.pattern.permute.xlu0 %v999_v63 }
   0xf   : > { %s345_s18 = scalar_lea.vmem %s1164_s0, %s934_s13  ;;  %916 = vmatprep.subr.bf16.mxu0 %v967_v1  ;;  %v972_v48 = vld [vmem:[%s1165_s1 + $0x8] sm:$0xff]   ;;  %v973_v61 = vld [vmem:[%s1165_s1] sm:$0xff]   ;;  %vm482_vm8 = vcmask 261120   ;;  %vm487_vm9 = vcmask 523264   ;;  %vm492_vm10 = vcmask 785408   ;;  %s1140_s13 = scalar_lea.vmem %s1172_s8, %s1178_s27 }
  0x10   : > { %v885_v4 = vld [vmem:[%s345_s18] sm:$0xff]   ;;  %v902_v5 = vld [vmem:[%s345_s18 + $0x8] sm:$0xff]   ;;  %v378_v6 = vld [vmem:[%s345_s18 + $0x10] sm:$0xf] }
  0x11   : > { %v886_v7 = vunpack.c.l.bf16 %v885_v4  ;;  %v887_v8 = vunpack.c.h.bf16 %v885_v4  ;;  %v890_v9 = vunpack.c.l.bf16 %v902_v5  ;;  %v891_v10 = vunpack.c.h.bf16 %v902_v5 }
  0x12   : > { %v383_v12 = vunpack.c.l.bf16 %v378_v6  ;;  %917 = vmatpush3.bf16.msra.mxu0 %v967_v1 }
  0x13   : > { %v391_v13 = vmul.f32 %v886_v7, %v862_v2  ;;  %v392_v14 = vmul.f32 %v887_v8, %v862_v2  ;;  %v393_v15 = vmul.f32 %v890_v9, %v862_v2  ;;  %v394_v16 = vmul.f32 %v891_v10, %v862_v2  ;;  %918 = vmatprep.subr.bf16.mxu0 %v968_v3  ;;  %v625_v7 = vld [vmem:[%s1169_s5] sm:$0xff]  ;;  %v626_v8 = vld [vmem:[%s1169_s5 + $0x8] sm:$0xff]  ;;  %v628_v9 = vld [vmem:[%s1169_s5 + $0x18] sm:$0xff] }
  0x14   : > { %v395_v18 = vmul.f32 %v862_v2, %v383_v12  ;;  %v627_v10 = vld [vmem:[%s1169_s5 + $0x10] sm:$0xff] }
  0x15   : > { %v403_v19 = vadd.f32 %v863_v11, %v391_v13  ;;  %v404_v20 = vadd.f32 %v863_v11, %v392_v14  ;;  %v405_v21 = vadd.f32 %v863_v11, %v393_v15  ;;  %v406_v22 = vadd.f32 %v863_v11, %v394_v16 }
  0x16   : > { %v407_v23 = vadd.f32 %v863_v11, %v395_v18  ;;  %919 = vmatpush3.bf16.msra.mxu0 %v968_v3 }
  0x17   : > { %vm408_vm0 = vcmp.ge.f32.partialorder %v403_v19, 0.0  ;;  %vm409_vm1 = vcmp.ge.f32.partialorder %v404_v20, 0.0  ;;  %vm410_vm2 = vcmp.ge.f32.partialorder %v405_v21, 0.0  ;;  %vm411_vm3 = vcmp.ge.f32.partialorder %v406_v22, 0.0  ;;  %920 = vmatprep.subr.bf16.mxu0 %v969_v17 }
  0x18   : > { %v413_v25 = vmul.f32 0.2, %v403_v19  ;;  %v414_v26 = vmul.f32 0.2, %v404_v20  ;;  %v415_v27 = vmul.f32 0.2, %v405_v21 }
  0x19   : > { %v416_v28 = vmul.f32 0.2, %v406_v22  ;;  %vm412_vm4 = vcmp.ge.f32.partialorder %v407_v23, 0.0  ;;  %v417_v29 = vmul.f32 0.2, %v407_v23 }
  0x1a   : > { %v418_v30 = vsel %vm408_vm0, %v403_v19, %v413_v25  ;;  %v419_v31 = vsel %vm409_vm1, %v404_v20, %v414_v26  ;;  %v420_v32 = vsel %vm410_vm2, %v405_v21, %v415_v27  ;;  %921 = vmatpush3.bf16.msra.mxu0 %v969_v17  ;;  %v864_v26 = vld [vmem:[%s1168_s4] ss:$0 sm:$0xff] }
  0x1b   : > { %v421_v33 = vsel %vm411_vm3, %v406_v22, %v416_v28  ;;  %v1093_v34 = vpack.c.bf16 %v419_v31, %v418_v30  ;;  %v422_v35 = vsel %vm412_vm4, %v407_v23, %v417_v29  ;;  %922 = vmatprep.subr.bf16.mxu0 %v970_v24  ;;  %v1002_v23 = vmov 0.0  }
  0x1c   : > { %v1098_v37 = vpack.c.bf16 %v421_v33, %v420_v32  ;;  %v425_v38 = vpack.c.bf16 %v422_v35, %v422_v35  ;;  %623 = vst [vmem:[%s1134_s10] sm:$0x1] %v1002_v23  ;;  %624 = vst [vmem:[%s1140_s13] sm:$0x1] %v1002_v23 }
  0x1d   : > { %v428_v39 = vshrl.u32 %v1093_v34, 16  ;;  %v430_v40 = vshll.u32 %v1093_v34, 16  ;;  %v473_v2 = vrot.slane %v1093_v34, 3 }
  0x1e   : > { %v435_v41 = vshll.u32 %v1098_v37, 16  ;;  %v439_v42 = vshrl.u32 %v1098_v37, 16  ;;  %v443_v43 = vshll.u32 %v425_v38, 16  ;;  %v459_v44 = vshrl.u32 %v425_v38, 16  ;;  %923 = vmatpush3.bf16.msra.mxu0 %v970_v24 }
  0x1f   : > { %v452_v45 = vrot.slane %v428_v39, 2  ;;  %v453_v46 = vrot.slane %v430_v40, 3  ;;  %v432_v47 = vrot.slane %v430_v40, 1  ;;  %924 = vmatprep.subr.bf16.mxu0 %v971_v36  ;;  %v474_v1 = vrot.slane %v1098_v37, 3 }
  0x20   : > { %v455_v49 = vrot.slane %v439_v42, 2  ;;  %v456_v50 = vrot.slane %v435_v41, 3  ;;  %v437_v51 = vrot.slane %v435_v41, 1  ;;  %v461_v52 = vrot.slane %v459_v44, 2 }
  0x21   : > { %v454_v53 = vor.u32 %v453_v46, %v452_v45  ;;  %v433_v54 = vor.u32 %v432_v47, %v428_v39  ;;  %v462_v55 = vrot.slane %v443_v43, 3  ;;  %v445_v56 = vrot.slane %v443_v43, 1 }
  0x22   : > { %v457_v57 = vor.u32 %v456_v50, %v455_v49  ;;  %v441_v58 = vor.u32 %v439_v42, %v437_v51  ;;  %925 = vmatpush3.bf16.msra.mxu0 %v971_v36  ;;  %v476_v4 = vrot.slane %v425_v38, 3  ;;  %v475_v5 = vsel %vm472_vm7, %v473_v2, %v474_v1 }
  0x23   : > { %v438_v59 = vsel %vm426_vm6, %v433_v54, %v437_v51  ;;  %v463_v60 = vor.u32 %v462_v55, %v461_v52  ;;  %926 = vmatprep.subr.bf16.mxu0 %v972_v48  ;;  %v629_v2 = vld [vmem:[%s1134_s10] sm:$0x1] }
  0x24   : > { %v458_v62 = vsel %vm451_vm5, %v454_v53, %v457_v57  ;;  %447 = vrot.lane.b32.xlu0 %v438_v59, %s998_s15  ;;  %v446_v0 = vsel %vm426_vm6, %v441_v58, %v445_v56  ;;  %v477_v6 = vsel %vm472_vm7, %v474_v1, %v476_v4 }
  0x25   : > { %465 = vrot.lane.b32.xlu1 %v458_v62, %s1000_s16  ;;  %v464_v3 = vsel %vm451_vm5, %v457_v57, %v463_v60 }
  0x26   : > { %927 = vmatpush3.bf16.msra.mxu0 %v972_v48 }
  0x27   : > { %928 = vmatprep.subr.bf16.mxu0 %v973_v61 }
  0x28   : > { %449 = vrot.lane.b32.xlu0 %v446_v0, %s998_s15 }
  0x29   : > { %467 = vrot.lane.b32.xlu1 %v464_v3, %s1000_s16  ;;  %s879_s16 = sshll.u32 %s1178_s27, 4 }
  0x2a   : > { %929 = vmatpush3.bf16.msra.mxu0 %v973_v61  ;;  %s360_s19 = scalar_lea.vmem %s1170_s6, %s879_s16 }
  0x2c   : > { %478 = vrot.lane.b32.xlu0 %v475_v5, %s1001_s17  ;;  %v665_v5 = vld [vmem:[%s1140_s13] sm:$0x1] }
  0x2d   : > { %480 = vrot.lane.b32.xlu1 %v477_v6, %s1001_s17 }
  0x30   : > { %632 = vperm.xlu0 %964, %v625_v7  }
  0x31   : > { %637 = vperm.xlu1 %965, %v626_v8  }
  0x34   : > { %647 = vperm.xlu0 %964, %v628_v9  }
  0x35   : > { %642 = vperm.xlu1 %965, %v627_v10  }
  0x96   : > { %v448_v11 = vpop.permute.xlu0 %447 }
  0x97   : > { %v466_v12 = vpop.permute.xlu1 %465  ;;  %v484_v14 = vsel %vm482_vm8, %v1093_v34, %v448_v11 }
  0x98   : > { %v489_v18 = vsel %vm487_vm9, %v484_v14, %v466_v12 }
  0x9a   : > { %v450_v13 = vpop.permute.xlu0 %449 }
  0x9b   : > { %v468_v15 = vpop.permute.xlu1 %467  ;;  %v486_v16 = vsel %vm482_vm8, %v1098_v37, %v450_v13 }
  0x9c   : > { %v491_v21 = vsel %vm487_vm9, %v486_v16, %v468_v15 }
  0x9e   : > { %v479_v17 = vpop.permute.xlu0 %478 }
  0x9f   : > { %v481_v19 = vpop.permute.xlu1 %480  ;;  %v494_v20 = vsel %vm492_vm10, %v489_v18, %v479_v17 }
  0xa0   : > { %930 = vmatprep.mubr.bf16.mxu0 %v494_v20  ;;  %v497_v22 = vsel %vm492_vm10, %v491_v21, %v481_v19 }
  0xa1   : > { %931 = vmatmul.mubr.bf16.vlgmr.msra.gmra.mxu0 %v497_v22 }
  0xab   : > { %v633_v30 = vpop.permute.xlu0 %632 }
  0xac   : > { %v638_v25 = vpop.permute.xlu1 %637 }
  0xaf   : > { %v648_v44 = vpop.permute.xlu0 %647 }
  0xb0   : > { %v643_v34 = vpop.permute.xlu1 %642 }
 0x161   : > { %v932_v24 = vpop.f32.mrf.mxu0 }
 0x162   : > { %v613_v29 = vadd.f32 %v932_v24, %v864_v26 }
 0x163   : > { %v604_v27 = vpop.f32.mrf.mxu0 }
 0x164   : > { %v605_v28 = vadd.f32 %v864_v26, %v604_v27  ;;  %v668_v38 = vmul.f32 %v613_v29, %v613_v29  ;;  %v652_v43 = vmul.f32 %v643_v34, %v613_v29 }
 0x165   : > { %v933_v31 = vpop.f32.mrf.mxu0 }
 0x166   : > { %v616_v32 = vadd.f32 %v933_v31, %v864_v26  ;;  %v666_v35 = vmul.f32 %v605_v28, %v605_v28  ;;  %v650_v39 = vmul.f32 %v633_v30, %v605_v28  ;;  %v672_v49 = vmul.f32 %v668_v38, %v643_v34 }
 0x167   : > { %v607_v33 = vpop.f32.mrf.mxu0 }
 0x168   : > { %v900_v36 = vpack.c.bf16 %v616_v32, %v613_v29  ;;  %v608_v37 = vadd.f32 %v864_v26, %v607_v33  ;;  %v670_v45 = vmul.f32 %v666_v35, %v633_v30  ;;  %v669_v48 = vmul.f32 %v616_v32, %v616_v32 }
 0x169   : > { %v653_v52 = vmul.f32 %v648_v44, %v616_v32 }
 0x16a   : > { %903 = vst [vmem:[%s360_s19 + $0x8] sm:$0xff] %v900_v36   ;;  %v651_v40 = vmul.f32 %v638_v25, %v608_v37  ;;  %v667_v41 = vmul.f32 %v608_v37, %v608_v37  ;;  %v895_v42 = vpack.c.bf16 %v608_v37, %v605_v28  ;;  %v673_v55 = vmul.f32 %v669_v48, %v648_v44 }
 0x16c   : > { %v671_v46 = vmul.f32 %v667_v41, %v638_v25  ;;  %896 = vst [vmem:[%s360_s19] sm:$0xff] %v895_v42   ;;  %v654_v47 = vadd.f32 %v651_v40, %v650_v39 }
 0x16e   : > { %v655_v50 = vadd.f32 %v654_v47, %v652_v43  ;;  %v674_v51 = vadd.f32 %v671_v46, %v670_v45 }
 0x170   : > { %v675_v53 = vadd.f32 %v674_v51, %v672_v49  ;;  %v656_v54 = vadd.f32 %v655_v50, %v653_v52 }
 0x172   : > { %v657_v56 = vrot.slane %v656_v54, 4  ;;  %v676_v57 = vadd.f32 %v675_v53, %v673_v55 }
 0x174   : > { %v658_v58 = vadd.f32 %v657_v56, %v656_v54  ;;  %v677_v59 = vrot.slane %v676_v57, 4 }
 0x176   : > { %v659_v60 = vrot.slane %v658_v58, 2  ;;  %v678_v61 = vadd.f32 %v677_v59, %v676_v57 }
 0x178   : > { %v660_v62 = vadd.f32 %v659_v60, %v658_v58  ;;  %v679_v63 = vrot.slane %v678_v61, 2 }
 0x17a   : > { %v661_v0 = vrot.slane %v660_v62, 1  ;;  %v680_v1 = vadd.f32 %v679_v63, %v678_v61 }
 0x17c   : > { %v662_v3 = vadd.f32 %v661_v0, %v660_v62  ;;  %v681_v4 = vrot.slane %v680_v1, 1 }
 0x17e   : > { %v663_v6 = vadd.f32 %v662_v3, %v629_v2  ;;  %v682_v7 = vadd.f32 %v681_v4, %v680_v1 }
 0x180   : > { %664 = vst [vmem:[%s1134_s10] sm:$0x1] %v663_v6  ;;  %v683_v8 = vadd.f32 %v682_v7, %v665_v5 }
 0x182   : > { %684 = vst [vmem:[%s1140_s13] sm:$0x1] %v683_v8 }
 0x183 PF: > { %s19_s29 = sadd.s32 1, %s996_s29   ;;  %s1173_s27 = smov %s992_s28 }
 0x184   : > { %p16_p5 = scmp.ge.s32.totalorder %s19_s29, 4   ;;  %s1174_s28 = smov %s1176_s30 }
 0x186   :  { %18 = sbr.rel (!%p16_p5) target bundleno = 2 (0x2), region = 106 }

// kernel: unet_forward.8
= control target key start
LH: loop header
LB: loop body
LE: loop exit
PB: predicated region body
PF: predicated region fallthrough
CT: control target
= control target key end

     0   :  { %s859_s18 = smov 0   ;;  %s861_s19 = smov 0   ;;  %s972_s0 = inlined_call_operand.vmem [shape: bf16[2,40,64], index: 0, kind: input, shape index: {}]   ;;  %s973_s1 = inlined_call_operand.vmem [shape: bf16[256,128], index: 1, kind: input, shape index: {}]   ;;  %s974_s2 = inlined_call_operand.vmem [shape: f32[1,64], index: 2, kind: input, shape index: {}]   ;;  %s975_s3 = inlined_call_operand.vmem [shape: f32[1,64], index: 3, kind: input, shape index: {}]   ;;  %s976_s4 = inlined_call_operand.vmem [shape: f32[1,128], index: 4, kind: input, shape index: {}]   ;;  %s977_s5 = inlined_call_operand.vmem [shape: bf16[2,32,128], index: 5, kind: output, shape index: {}]  }
   0x1   :  { %s863_s20 = smov 0  }
   0x2 LB: > { %s27_s21 = sadd.s32 1, %s822_s19  ;;  %p664_p0 = scmp.ge.s32.totalorder %s826_s20, 1  ;;  %s826_s20 = sphi %s863_s20, %s15_s20   ;;  %s822_s19 = sphi %s861_s19, %s979_s19   ;;  %s818_s18 = sphi %s859_s18, %s978_s18  }
   0x3   : > { %p29_p1 = scmp.ge.s32.totalorder %s27_s21, 2  ;;  %p201_p2 = scmp.lt.s32.totalorder %s826_s20, 3 }
   0x5   : > { %s981_s21 = smov (%p29_p1, %s27_s21), 0  ;;  %p202_p3 = pnand %p664_p0, %p201_p2 }
   0x6   : > { %p233_p4 = scmp.lt.s32.totalorder (!%p202_p3), %s818_s18, 1 }
   0x7   : > { %205 = sbr.rel (%p202_p3) target bundleno = 362 (0x16a), region = 40 }
   0xc   : > { %v788_v0 = vld [vmem:[%s973_s1 + $0x78] sm:$0xff]   ;;  %s983_s18 = smov (!%p233_p4, %s818_s18), 1  ;;  %v790_v2 = vld [vmem:[%s973_s1 + $0x70] sm:$0xff]   ;;  %v668_v3 = vld [vmem:[%s974_s2] ss:$0 sm:$0xff]  ;;  %vm348_vm5 = vcmask 1045504  }
   0xd   : > { %v789_v1 = vld [vmem:[%s973_s1 + $0x38] sm:$0xff]   ;;  %718 = vmatprep.subr.bf16.mxu0 %v788_v0  ;;  %746 = vmatprep.subr.bf16.mxu1 %v788_v0  ;;  %s762_s26 = smul.u32 20, %s983_s18  ;;  %v791_v4 = vld [vmem:[%s973_s1 + $0x30] sm:$0xff]   ;;  %v792_v5 = vld [vmem:[%s973_s1 + $0x68] sm:$0xff]   ;;  %vm306_vm6 = vsmask.f32 7424 }
   0xe   : > { %719 = vmatpush3.bf16.msra.mxu0 %v789_v1  ;;  %754 = vmatpush3.bf16.msra.mxu1 %v789_v1  ;;  %v669_v8 = vld [vmem:[%s975_s3] ss:$0 sm:$0xff]  ;;  %v793_v14 = vld [vmem:[%s973_s1 + $0x28] sm:$0xff]   ;;  %v796_v28 = vld [vmem:[%s973_s1 + $0x58] sm:$0xff]   ;;  %vm331_vm7 = vsmask.f32 6400 }
   0xf   : > { %s237_s10 = scalar_lea.vmem %s972_s0, %s762_s26  ;;  %720 = vmatprep.subr.bf16.mxu0 %v790_v2  ;;  %747 = vmatprep.subr.bf16.mxu1 %v790_v2  ;;  %v794_v16 = vld [vmem:[%s973_s1 + $0x60] sm:$0xff]   ;;  %v797_v29 = vld [vmem:[%s973_s1 + $0x18] sm:$0xff]   ;;  %v798_v35 = vld [vmem:[%s973_s1 + $0x50] sm:$0xff]   ;;  %vm358_vm8 = vcmask 523264   ;;  %s693_s23 = sshll.u32 %s983_s18, 4 }
  0x10   : > { %v699_v6 = vld [vmem:[%s237_s10] sm:$0xff]   ;;  %v716_v7 = vld [vmem:[%s237_s10 + $0x8] sm:$0xff]   ;;  %v258_v9 = vld [vmem:[%s237_s10 + $0x10] sm:$0xf]  ;;  %s828_s10 = smov 64   ;;  %s246_s26 = scalar_lea.vmem %s977_s5, %s693_s23 }
  0x11   : > { %v700_v10 = vunpack.c.l.bf16 %v699_v6  ;;  %v701_v11 = vunpack.c.h.bf16 %v699_v6  ;;  %v704_v12 = vunpack.c.l.bf16 %v716_v7  ;;  %v705_v13 = vunpack.c.h.bf16 %v716_v7  ;;  %v795_v26 = vld [vmem:[%s973_s1 + $0x20] sm:$0xff]   ;;  %v799_v47 = vld [vmem:[%s973_s1 + $0x10] sm:$0xff]   ;;  %v800_v52 = vld [vmem:[%s973_s1 + $0x48] sm:$0xff]  }
  0x12   : > { %721 = vmatpush3.bf16.msra.mxu0 %v791_v4  ;;  %755 = vmatpush3.bf16.msra.mxu1 %v791_v4  ;;  %v263_v15 = vunpack.c.l.bf16 %v258_v9  ;;  %v801_v62 = vld [vmem:[%s973_s1 + $0x8] sm:$0xff]  }
  0x13   : > { %722 = vmatprep.subr.bf16.mxu0 %v792_v5  ;;  %748 = vmatprep.subr.bf16.mxu1 %v792_v5  ;;  %v271_v17 = vmul.f32 %v700_v10, %v668_v3  ;;  %v272_v18 = vmul.f32 %v701_v11, %v668_v3  ;;  %v273_v19 = vmul.f32 %v704_v12, %v668_v3  ;;  %v803_v10 = vld [vmem:[%s973_s1] sm:$0xff]  }
  0x14   : > { %v274_v20 = vmul.f32 %v705_v13, %v668_v3  ;;  %v275_v21 = vmul.f32 %v668_v3, %v263_v15  ;;  %v802_v3 = vld [vmem:[%s973_s1 + $0x40] sm:$0xff]  }
  0x15   : > { %v283_v22 = vadd.f32 %v669_v8, %v271_v17  ;;  %v284_v23 = vadd.f32 %v669_v8, %v272_v18  ;;  %v285_v24 = vadd.f32 %v669_v8, %v273_v19 }
  0x16   : > { %v286_v25 = vadd.f32 %v669_v8, %v274_v20  ;;  %723 = vmatpush3.bf16.msra.mxu0 %v793_v14  ;;  %v287_v27 = vadd.f32 %v669_v8, %v275_v21  ;;  %756 = vmatpush3.bf16.msra.mxu1 %v793_v14 }
  0x17   : > { %724 = vmatprep.subr.bf16.mxu0 %v794_v16  ;;  %vm288_vm0 = vcmp.ge.f32.partialorder %v283_v22, 0.0  ;;  %vm289_vm1 = vcmp.ge.f32.partialorder %v284_v23, 0.0  ;;  %vm290_vm2 = vcmp.ge.f32.partialorder %v285_v24, 0.0  ;;  %749 = vmatprep.subr.bf16.mxu1 %v794_v16  ;;  %v293_v30 = vmul.f32 0.2, %v283_v22 }
  0x18   : > { %vm291_vm3 = vcmp.ge.f32.partialorder %v286_v25, 0.0  ;;  %v294_v31 = vmul.f32 0.2, %v284_v23  ;;  %v295_v32 = vmul.f32 0.2, %v285_v24  ;;  %vm292_vm4 = vcmp.ge.f32.partialorder %v287_v27, 0.0 }
  0x19   : > { %v296_v33 = vmul.f32 0.2, %v286_v25  ;;  %v297_v34 = vmul.f32 0.2, %v287_v27  ;;  %v298_v36 = vsel %vm288_vm0, %v283_v22, %v293_v30 }
  0x1a   : > { %725 = vmatpush3.bf16.msra.mxu0 %v795_v26  ;;  %v299_v37 = vsel %vm289_vm1, %v284_v23, %v294_v31  ;;  %v300_v38 = vsel %vm290_vm2, %v285_v24, %v295_v32  ;;  %757 = vmatpush3.bf16.msra.mxu1 %v795_v26 }
  0x1b   : > { %726 = vmatprep.subr.bf16.mxu0 %v796_v28  ;;  %v301_v39 = vsel %vm291_vm3, %v286_v25, %v296_v33  ;;  %v923_v40 = vpack.c.bf16 %v299_v37, %v298_v36  ;;  %v302_v41 = vsel %vm292_vm4, %v287_v27, %v297_v34  ;;  %750 = vmatprep.subr.bf16.mxu1 %v796_v28  ;;  %v670_v27 = vld [vmem:[%s976_s4] ss:$0 sm:$0xff] }
  0x1c   : > { %v925_v42 = vpack.c.bf16 %v301_v39, %v300_v38  ;;  %v305_v43 = vpack.c.bf16 %v302_v41, %v302_v41 }
  0x1d   : > { %v349_v44 = vrot.slane %v923_v40, 2  ;;  %v308_v45 = vshrl.u32 %v923_v40, 16  ;;  %v310_v46 = vshll.u32 %v923_v40, 16 }
  0x1e   : > { %727 = vmatpush3.bf16.msra.mxu0 %v797_v29  ;;  %v350_v48 = vrot.slane %v925_v42, 2  ;;  %v315_v49 = vshll.u32 %v925_v42, 16  ;;  %v352_v50 = vrot.slane %v305_v43, 2  ;;  %v319_v51 = vshrl.u32 %v925_v42, 16  ;;  %758 = vmatpush3.bf16.msra.mxu1 %v797_v29 }
  0x1f   : > { %728 = vmatprep.subr.bf16.mxu0 %v798_v35  ;;  %v312_v53 = vrot.slane %v310_v46, 1  ;;  %v323_v54 = vshll.u32 %v305_v43, 16  ;;  %751 = vmatprep.subr.bf16.mxu1 %v798_v35  ;;  %v332_v55 = vrot.slane %v308_v45, 1  ;;  %v333_v56 = vrot.slane %v310_v46, 2 }
  0x20   : > { %v351_v57 = vsel %vm348_vm5, %v349_v44, %v350_v48  ;;  %v317_v58 = vrot.slane %v315_v49, 1  ;;  %v335_v59 = vrot.slane %v319_v51, 1  ;;  %v336_v0 = vrot.slane %v315_v49, 2 }
  0x21   : > { %354 = vrot.lane.b32.xlu0 %v351_v57, %s828_s10  ;;  %v313_v60 = vor.u32 %v312_v53, %v308_v45  ;;  %v325_v61 = vrot.slane %v323_v54, 1  ;;  %v334_v63 = vor.u32 %v333_v56, %v332_v55  ;;  %v353_v1 = vsel %vm348_vm5, %v350_v48, %v352_v50 }
  0x22   : > { %729 = vmatpush3.bf16.msra.mxu0 %v799_v47  ;;  %v321_v2 = vor.u32 %v319_v51, %v317_v58  ;;  %759 = vmatpush3.bf16.msra.mxu1 %v799_v47  ;;  %v339_v4 = vshrl.u32 %v305_v43, 16  ;;  %v342_v5 = vrot.slane %v323_v54, 2  ;;  %v337_v7 = vor.u32 %v336_v0, %v335_v59 }
  0x23   : > { %730 = vmatprep.subr.bf16.mxu0 %v800_v52  ;;  %v318_v6 = vsel %vm306_vm6, %v313_v60, %v317_v58  ;;  %752 = vmatprep.subr.bf16.mxu1 %v800_v52 }
  0x24   : > { %327 = vrot.lane.b32.xlu1 %v318_v6, %s828_s10  ;;  %v341_v8 = vrot.slane %v339_v4, 1  ;;  %v326_v9 = vsel %vm306_vm6, %v321_v2, %v325_v61  ;;  %v338_v11 = vsel %vm331_vm7, %v334_v63, %v337_v7 }
  0x25   : > { %356 = vrot.lane.b32.xlu0 %v353_v1, %s828_s10 }
  0x26   : > { %731 = vmatpush3.bf16.msra.mxu0 %v801_v62  ;;  %760 = vmatpush3.bf16.msra.mxu1 %v801_v62  ;;  %v343_v12 = vor.u32 %v342_v5, %v341_v8 }
  0x27   : > { %732 = vmatprep.subr.bf16.mxu0 %v802_v3  ;;  %753 = vmatprep.subr.bf16.mxu1 %v802_v3 }
  0x28   : > { %329 = vrot.lane.b32.xlu1 %v326_v9, %s828_s10  ;;  %v344_v13 = vsel %vm331_vm7, %v337_v7, %v343_v12 }
  0x2a   : > { %733 = vmatpush3.bf16.msra.mxu0 %v803_v10  ;;  %761 = vmatpush3.bf16.msra.mxu1 %v803_v10 }
  0x93   : > { %v355_v14 = vpop.permute.xlu0 %354 }
  0x94   : > { %v367_v15 = vsel %vm358_vm8, %v338_v11, %v355_v14 }
  0x95   : > { %540 = vmatprep.mubr.bf16.mxu0 %v367_v15 }
  0x96   : > { %v328_v16 = vpop.permute.xlu1 %327 }
  0x97   : > { %v360_v17 = vsel %vm358_vm8, %v923_v40, %v328_v16  ;;  %v357_v18 = vpop.permute.xlu0 %356 }
  0x98   : > { %541 = vmatmul.mubr.bf16.vlgmr.msra.gmra.mxu0 %v360_v17  ;;  %v371_v19 = vsel %vm358_vm8, %v344_v13, %v357_v18 }
  0x99   : > { %548 = vmatprep.mubr.bf16.mxu1 %v371_v19 }
  0x9a   : > { %v330_v20 = vpop.permute.xlu1 %329 }
  0x9b   : > { %v363_v21 = vsel %vm358_vm8, %v925_v42, %v330_v20 }
  0x9c   : > { %549 = vmatmul.mubr.bf16.vlgmr.msra.gmra.mxu1 %v363_v21 }
 0x158   : > { %v734_v22 = vpop.f32.mrf.mxu0 }
 0x15a   : > { %v735_v23 = vpop.f32.mrf.mxu0 }
 0x15b   : > { %v736_v26 = vadd.f32 %v735_v23, %v734_v22 }
 0x15c   : > { %v737_v24 = vpop.f32.mrf.mxu0  ;;  %v740_v25 = vpop.f32.mrf.mxu1 }
 0x15d   : > { %v543_v32 = vadd.f32 %v736_v26, %v670_v27 }
 0x15e   : > { %v738_v28 = vpop.f32.mrf.mxu0  ;;  %v741_v29 = vpop.f32.mrf.mxu1 }
 0x15f   : > { %v739_v30 = vadd.f32 %v738_v28, %v737_v24  ;;  %v742_v34 = vadd.f32 %v741_v29, %v740_v25 }
 0x160   : > { %v743_v31 = vpop.f32.mrf.mxu1 }
 0x161   : > { %v546_v33 = vadd.f32 %v739_v30, %v670_v27  ;;  %v551_v38 = vadd.f32 %v742_v34, %v670_v27 }
 0x162   : > { %v744_v35 = vpop.f32.mrf.mxu1 }
 0x163   : > { %v709_v36 = vpack.c.bf16 %v546_v33, %v543_v32  ;;  %v745_v37 = vadd.f32 %v744_v35, %v743_v31 }
 0x165   : > { %710 = vst [vmem:[%s246_s26] sm:$0xff] %v709_v36   ;;  %v554_v39 = vadd.f32 %v745_v37, %v670_v27 }
 0x167   : > { %v714_v40 = vpack.c.bf16 %v554_v39, %v551_v38 }
 0x169   : > { %717 = vst [vmem:[%s246_s26 + $0x8] sm:$0xff] %v714_v40  }
 0x16a PF: > { %s15_s20 = sadd.s32 1, %s826_s20   ;;  %s978_s18 = smov %s822_s19 }
 0x16b   : > { %p12_p5 = scmp.ge.s32.totalorder %s15_s20, 4   ;;  %s979_s19 = smov %s981_s21 }
 0x16d   :  { %14 = sbr.rel (!%p12_p5) target bundleno = 2 (0x2), region = 71 }

// kernel: unet_forward.9
= control target key start
LH: loop header
LB: loop body
LE: loop exit
PB: predicated region body
PF: predicated region fallthrough
CT: control target
= control target key end

     0   :  { %s1279_s27 = smov 0   ;;  %s1281_s28 = smov 0   ;;  %s1493_s0 = inlined_call_operand.vmem [shape: bf16[2,48,32], index: 0, kind: input, shape index: {}]   ;;  %s1494_s1 = inlined_call_operand.vmem [shape: bf16[288,128], index: 1, kind: input, shape index: {}]   ;;  %s1495_s2 = inlined_call_operand.vmem [shape: f32[1,32], index: 2, kind: input, shape index: {}]   ;;  %s1496_s3 = inlined_call_operand.vmem [shape: f32[1,32], index: 3, kind: input, shape index: {}]   ;;  %s1497_s4 = inlined_call_operand.vmem [shape: f32[1,128], index: 4, kind: input, shape index: {}]   ;;  %s1498_s5 = inlined_call_operand.vmem [shape: f32[32,1], index: 5, kind: input, shape index: {}]   ;;  %s1499_s6 = inlined_call_operand.vmem [shape: bf16[2,32,128], index: 6, kind: output, shape index: {0}]   ;;  %s1500_s7 = inlined_call_operand.vmem [shape: f32[2,1,128], index: 7, kind: output, shape index: {1}]   ;;  %s1501_s8 = inlined_call_operand.vmem [shape: f32[2,1,128], index: 8, kind: output, shape index: {2}]  }
   0x1   :  { %s1283_s29 = smov 0  }
   0x2 LB: > { %s31_s30 = sadd.s32 1, %s1223_s28  ;;  %p1052_p0 = scmp.ge.s32.totalorder %s1227_s29, 1  ;;  %s1227_s29 = sphi %s1283_s29, %s19_s29   ;;  %s1223_s28 = sphi %s1281_s28, %s1503_s28   ;;  %s1219_s27 = sphi %s1279_s27, %s1502_s27  }
   0x3   : > { %p33_p1 = scmp.ge.s32.totalorder %s31_s30, 2  ;;  %p292_p2 = scmp.lt.s32.totalorder %s1227_s29, 3 }
   0x5   : > { %s1505_s30 = smov (%p33_p1, %s31_s30), 0  ;;  %p293_p3 = pnand %p1052_p0, %p292_p2 }
   0x6   : > { %p341_p4 = scmp.lt.s32.totalorder (!%p293_p3), %s1219_s27, 1  ;;  %s1229_s23 = smov (!%p293_p3), 64  }
   0x7   : > { %296 = sbr.rel (%p293_p3) target bundleno = 393 (0x189), region = 44  ;;  %s1230_s24 = smov (!%p293_p3), 32  }
   0x8   : > { %s1231_s17 = smov (!%p293_p3), 96  }
   0xc   : > { %s1507_s27 = smov (!%p341_p4, %s1219_s27), 1  ;;  %v1187_v0 = vld [vmem:[%s1494_s1 + $0x78] sm:$0xff]   ;;  %v1056_v2 = vld [vmem:[%s1495_s2] ss:$0 sm:$0xff]  ;;  %v1189_v3 = vld [vmem:[%s1494_s1 + $0x70] sm:$0xff]   ;;  %vm493_vm0 = vcmask 1043456  }
   0xd   : > { %s1155_s11 = smul.u32 24, %s1507_s27  ;;  %1115 = vmatprep.subr.bf16.mxu0 %v1187_v0  ;;  %v1188_v1 = vld [vmem:[%s1494_s1 + $0x38] sm:$0xff]   ;;  %v1190_v4 = vld [vmem:[%s1494_s1 + $0x30] sm:$0xff]   ;;  %v1057_v7 = vld [vmem:[%s1496_s3] ss:$0 sm:$0xff]  ;;  %vm483_vm1 = vcmask 1044480   ;;  %s1463_s12 = scalar_lea.vmem %s1500_s7, %s1507_s27 }
   0xe   : > { %1116 = vmatpush3.bf16.msra.mxu0 %v1188_v1  ;;  %v1191_v13 = vld [vmem:[%s1494_s1 + $0x68] sm:$0xff]   ;;  %v1193_v23 = vld [vmem:[%s1494_s1 + $0x60] sm:$0xff]   ;;  %vm449_vm2 = vcmask 1046528   ;;  %vm459_vm3 = vcmask 1045504   ;;  %v1195_v37 = vld [vmem:[%s1494_s1 + $0x58] sm:$0xff]   ;;  %vm519_vm7 = vcmask 1042432   ;;  %s1469_s15 = scalar_lea.vmem %s1501_s8, %s1507_s27 }
   0xf   : > { %s345_s20 = scalar_lea.vmem %s1493_s0, %s1155_s11  ;;  %1117 = vmatprep.subr.bf16.mxu0 %v1189_v3  ;;  %v1192_v20 = vld [vmem:[%s1494_s1 + $0x28] sm:$0xff]   ;;  %v1194_v30 = vld [vmem:[%s1494_s1 + $0x20] sm:$0xff]   ;;  %vm421_vm4 = vsmask.f32 7424  ;;  %v1196_v45 = vld [vmem:[%s1494_s1 + $0x18] sm:$0xff]   ;;  %vm525_vm8 = vcmask 261120  }
  0x10   : > { %v1091_v5 = vld [vmem:[%s345_s20] sm:$0xff]   ;;  %v1112_v6 = vld [vmem:[%s345_s20 + $0x8] sm:$0xff]   ;;  %v1113_v8 = vld [vmem:[%s345_s20 + $0x10] sm:$0xff]   ;;  %vm503_vm5 = vsmask.f32 3328  ;;  %vm530_vm9 = vcmask 523264  }
  0x11   : > { %v1092_v9 = vunpack.c.l.bf16 %v1091_v5  ;;  %v1093_v10 = vunpack.c.h.bf16 %v1091_v5  ;;  %v1096_v11 = vunpack.c.l.bf16 %v1112_v6  ;;  %v1097_v12 = vunpack.c.h.bf16 %v1112_v6  ;;  %v1201_v46 = vld [vmem:[%s1494_s1 + $0x88] sm:$0xff]   ;;  %v1197_v50 = vld [vmem:[%s1494_s1 + $0x50] sm:$0xff]   ;;  %s1085_s18 = sshll.u32 %s1507_s27, 4 }
  0x12   : > { %v1100_v14 = vunpack.c.l.bf16 %v1113_v8  ;;  %v1101_v15 = vunpack.c.h.bf16 %v1113_v8  ;;  %1118 = vmatpush3.bf16.msra.mxu0 %v1190_v4  ;;  %1147 = vmatprep.subr.bf16.mxu1 %v1201_v46  ;;  %v1198_v59 = vld [vmem:[%s1494_s1 + $0x10] sm:$0xff]   ;;  %v1199_v0 = vld [vmem:[%s1494_s1 + $0x48] sm:$0xff]   ;;  %vm469_vm6 = vsmask.f32 5376  ;;  %vm535_vm10 = vcmask 785408   ;;  %s360_s21 = scalar_lea.vmem %s1499_s6, %s1085_s18 }
  0x13   : > { %v393_v16 = vmul.f32 %v1092_v9, %v1056_v2  ;;  %v394_v17 = vmul.f32 %v1093_v10, %v1056_v2  ;;  %v395_v18 = vmul.f32 %v1096_v11, %v1056_v2  ;;  %v396_v19 = vmul.f32 %v1097_v12, %v1056_v2  ;;  %1119 = vmatprep.subr.bf16.mxu0 %v1191_v13 }
  0x14   : > { %v397_v21 = vmul.f32 %v1100_v14, %v1056_v2  ;;  %v398_v22 = vmul.f32 %v1101_v15, %v1056_v2  ;;  %1148 = vmatpush3.bf16.msra.mxu1 %v1201_v46  ;;  %v1200_v14 = vld [vmem:[%s1494_s1 + $0x8] sm:$0xff]  }
  0x15   : > { %v406_v24 = vadd.f32 %v1057_v7, %v393_v16  ;;  %v407_v25 = vadd.f32 %v1057_v7, %v394_v17  ;;  %v408_v26 = vadd.f32 %v1057_v7, %v395_v18  ;;  %v409_v27 = vadd.f32 %v1057_v7, %v396_v19  ;;  %v1202_v19 = vld [vmem:[%s1494_s1 + $0x40] sm:$0xff]  }
  0x16   : > { %v410_v28 = vadd.f32 %v1057_v7, %v397_v21  ;;  %v411_v29 = vadd.f32 %v1057_v7, %v398_v22  ;;  %1120 = vmatpush3.bf16.msra.mxu0 %v1192_v20  ;;  %v1204_v7 = vld [vmem:[%s1494_s1 + $0x80] sm:$0xff]  }
  0x17   : > { %v412_v31 = vmax.f32 %v406_v24, 0.0  ;;  %v413_v32 = vmax.f32 %v407_v25, 0.0  ;;  %v414_v33 = vmax.f32 %v408_v26, 0.0  ;;  %v415_v34 = vmax.f32 %v409_v27, 0.0  ;;  %1121 = vmatprep.subr.bf16.mxu0 %v1193_v23  ;;  %1149 = vmatprep.subr.bf16.mxu1 %v1204_v7 }
  0x18   : > { %v416_v35 = vmax.f32 %v410_v28, 0.0  ;;  %v417_v36 = vmax.f32 %v411_v29, 0.0  ;;  %1150 = vmatpush3.bf16.msra.mxu1 %v1204_v7 }
  0x19   : > { %v1336_v38 = vpack.c.bf16 %v413_v32, %v412_v31  ;;  %v1338_v39 = vpack.c.bf16 %v415_v34, %v414_v33 }
  0x1a   : > { %v1340_v40 = vpack.c.bf16 %v417_v36, %v416_v35  ;;  %1122 = vmatpush3.bf16.msra.mxu0 %v1194_v30  ;;  %v1203_v30 = vld [vmem:[%s1494_s1] sm:$0xff]  }
  0x1b   : > { %v494_v41 = vrot.slane %v1336_v38, 4  ;;  %v495_v42 = vrot.slane %v1338_v39, 4  ;;  %v484_v43 = vrot.slane %v1336_v38, 3  ;;  %v485_v44 = vrot.slane %v1338_v39, 3  ;;  %1123 = vmatprep.subr.bf16.mxu0 %v1195_v37 }
  0x1c   : > { %v487_v47 = vrot.slane %v1340_v40, 3  ;;  %v450_v48 = vrot.slane %v1336_v38, 1  ;;  %v451_v49 = vrot.slane %v1338_v39, 1  ;;  %v460_v53 = vrot.slane %v1336_v38, 2 }
  0x1d   : > { %v496_v51 = vsel %vm493_vm0, %v494_v41, %v495_v42  ;;  %v486_v52 = vsel %vm483_vm1, %v484_v43, %v485_v44  ;;  %v1364_v54 = vshrl.u32 %v1336_v38, 16  ;;  %v461_v56 = vrot.slane %v1338_v39, 2 }
  0x1e   : > { %499 = vrot.lane.b32.xlu1 %v496_v51, %s1229_s23  ;;  %489 = vrot.lane.b32.xlu0 %v486_v52, %s1230_s24  ;;  %v488_v55 = vsel %vm483_vm1, %v485_v44, %v487_v47  ;;  %v425_v57 = vshll.u32 %v1336_v38, 16  ;;  %v430_v58 = vshll.u32 %v1338_v39, 16  ;;  %v452_v60 = vsel %vm449_vm2, %v450_v48, %v451_v49  ;;  %v821_v51 = vld [vmem:[%s1498_s5 + $0x10] sm:$0xff]  ;;  %v822_v52 = vld [vmem:[%s1498_s5 + $0x18] sm:$0xff] }
  0x1f   : > { %v453_v61 = vrot.slane %v1340_v40, 1  ;;  %v434_v62 = vshrl.u32 %v1338_v39, 16  ;;  %v504_v63 = vrot.slane %v1364_v54, 4  ;;  %1124 = vmatpush3.bf16.msra.mxu0 %v1196_v45  ;;  %v438_v6 = vshll.u32 %v1340_v40, 16 }
  0x20   : > { %v427_v1 = vrot.slane %v425_v57, 1  ;;  %v432_v2 = vrot.slane %v430_v58, 1  ;;  %v505_v3 = vrot.slane %v425_v57, 5  ;;  %v508_v4 = vrot.slane %v430_v58, 5  ;;  %1125 = vmatprep.subr.bf16.mxu0 %v1197_v50  ;;  %v820_v50 = vld [vmem:[%s1498_s5 + $0x8] sm:$0xff] }
  0x21   : > { %v507_v5 = vrot.slane %v434_v62, 4  ;;  %v462_v10 = vsel %vm459_vm3, %v460_v53, %v461_v56  ;;  %v454_v11 = vsel %vm449_vm2, %v451_v49, %v453_v61  ;;  %v477_v13 = vshrl.u32 %v1340_v40, 16  ;;  %v819_v49 = vld [vmem:[%s1498_s5] sm:$0xff] }
  0x22   : > { %491 = vrot.lane.b32.xlu0 %v488_v55, %s1230_s24  ;;  %455 = vrot.lane.b32.xlu1 %v452_v60, %s1229_s23  ;;  %v428_v8 = vor.u32 %v427_v1, %v1364_v54  ;;  %v506_v9 = vor.u32 %v505_v3, %v504_v63  ;;  %v436_v16 = vor.u32 %v434_v62, %v432_v2  ;;  %v497_v17 = vrot.slane %v1340_v40, 4 }
  0x23   : > { %v509_v12 = vor.u32 %v508_v4, %v507_v5  ;;  %1126 = vmatpush3.bf16.msra.mxu0 %v1198_v59  ;;  %v473_v18 = vrot.slane %v434_v62, 2  ;;  %v440_v21 = vrot.slane %v438_v6, 1  ;;  %v512_v22 = vrot.slane %v438_v6, 5 }
  0x24   : > { %v433_v15 = vsel %vm421_vm4, %v428_v8, %v432_v2  ;;  %1127 = vmatprep.subr.bf16.mxu0 %v1199_v0  ;;  %v474_v23 = vrot.slane %v430_v58, 3  ;;  %v470_v24 = vrot.slane %v1364_v54, 2  ;;  %v471_v25 = vrot.slane %v425_v57, 3 }
  0x25   : > { %v510_v20 = vsel %vm503_vm5, %v506_v9, %v509_v12  ;;  %v479_v26 = vrot.slane %v477_v13, 2  ;;  %v480_v27 = vrot.slane %v438_v6, 3  ;;  %v511_v28 = vrot.slane %v477_v13, 4 }
  0x26   : > { %465 = vrot.lane.b32.xlu1 %v462_v10, %s1231_s17  ;;  %442 = vrot.lane.b32.xlu0 %v433_v15, %s1230_s24  ;;  %v475_v29 = vor.u32 %v474_v23, %v473_v18  ;;  %v520_v31 = vrot.slane %v1336_v38, 5  ;;  %v472_v32 = vor.u32 %v471_v25, %v470_v24  ;;  %v521_v34 = vrot.slane %v1338_v39, 5 }
  0x27   : > { %1128 = vmatpush3.bf16.msra.mxu0 %v1200_v14  ;;  %v481_v33 = vor.u32 %v480_v27, %v479_v26  ;;  %v523_v35 = vrot.slane %v1340_v40, 5  ;;  %v498_v36 = vsel %vm493_vm0, %v495_v42, %v497_v17  ;;  %v441_v44 = vsel %vm421_vm4, %v436_v16, %v440_v21  ;;  %v1058_v17 = vld [vmem:[%s1497_s4] ss:$0 sm:$0xff] }
  0x28   : > { %1129 = vmatprep.subr.bf16.mxu0 %v1202_v19  ;;  %v476_v37 = vsel %vm469_vm6, %v472_v32, %v475_v29  ;;  %v522_v43 = vsel %vm519_vm7, %v520_v31, %v521_v34  ;;  %v463_v45 = vrot.slane %v1340_v40, 2  ;;  %v513_v46 = vor.u32 %v512_v22, %v511_v28 }
  0x29   : > { %v482_v41 = vsel %vm469_vm6, %v475_v29, %v481_v33  ;;  %1151 = vmatprep.mubr.msk.bf16.mxu1 %vm525_vm8, %v522_v43  ;;  %v524_v42 = vsel %vm519_vm7, %v521_v34, %v523_v35  ;;  %v1232_v47 = vmov 0  }
  0x2a   : > { %457 = vrot.lane.b32.xlu1 %v454_v11, %s1229_s23  ;;  %515 = vrot.lane.b32.xlu0 %v510_v20, %s1231_s17  ;;  %v464_v48 = vsel %vm459_vm3, %v461_v56, %v463_v45  ;;  %v514_v40 = vsel %vm503_vm5, %v509_v12, %v513_v46 }
  0x2b   : > { %1130 = vmatpush3.bf16.msra.mxu0 %v1203_v30  ;;  %1152 = vmatmul.mubr.msk.bf16.vlgmr.msra.gmra.mxu1 %vm525_vm8, %v524_v42 }
  0x2c   : > { %1185 = vset.pattern.permute.xlu0 %v1232_v47  ;;  %1186 = vset.pattern.permute.xlu1 %v1232_v47 }
  0x2e   : > { %444 = vrot.lane.b32.xlu1 %v441_v44, %s1230_s24  ;;  %501 = vrot.lane.b32.xlu0 %v498_v36, %s1229_s23 }
  0x32   : > { %467 = vrot.lane.b32.xlu1 %v464_v48, %s1231_s17  ;;  %517 = vrot.lane.b32.xlu0 %v514_v40, %s1231_s17 }
  0x36   : > { %826 = vperm.xlu0 %1185, %v819_v49   ;;  %831 = vperm.xlu1 %1186, %v820_v50  }
  0x3a   : > { %836 = vperm.xlu1 %1186, %v821_v51   ;;  %841 = vperm.xlu0 %1185, %v822_v52  }
  0x90   : > { %v500_v53 = vpop.permute.xlu1 %499  ;;  %v490_v54 = vpop.permute.xlu0 %489 }
  0x91   : > { %v544_v59 = vsel %vm525_vm8, %v476_v37, %v490_v54 }
  0x92   : > { %v549_v0 = vsel %vm530_vm9, %v544_v59, %v500_v53 }
  0x94   : > { %v492_v55 = vpop.permute.xlu0 %491  ;;  %v456_v56 = vpop.permute.xlu1 %455 }
  0x95   : > { %v547_v5 = vsel %vm525_vm8, %v482_v41, %v492_v55 }
  0x98   : > { %v466_v57 = vpop.permute.xlu1 %465  ;;  %v443_v58 = vpop.permute.xlu0 %442 }
  0x99   : > { %v527_v60 = vsel %vm525_vm8, %v1336_v38, %v443_v58 }
  0x9a   : > { %v532_v61 = vsel %vm530_vm9, %v527_v60, %v456_v56 }
  0x9b   : > { %v537_v2 = vsel %vm535_vm10, %v532_v61, %v466_v57 }
  0x9c   : > { %v458_v62 = vpop.permute.xlu1 %457  ;;  %v516_v63 = vpop.permute.xlu0 %515 }
  0x9d   : > { %v553_v1 = vsel %vm535_vm10, %v549_v0, %v516_v63 }
  0x9e   : > { %747 = vmatprep.mubr.bf16.mxu0 %v553_v1 }
  0x9f   : > { %748 = vmatmul.mubr.bf16.vlgmr.msra.gmra.mxu0 %v537_v2 }
  0xa0   : > { %v445_v3 = vpop.permute.xlu1 %444  ;;  %v502_v4 = vpop.permute.xlu0 %501 }
  0xa1   : > { %v529_v38 = vsel %vm525_vm8, %v1338_v39, %v445_v3  ;;  %v551_v6 = vsel %vm530_vm9, %v547_v5, %v502_v4  ;;  %v1233_v39 = vmov 0.0  }
  0xa2   : > { %v534_v9 = vsel %vm530_vm9, %v529_v38, %v458_v62  ;;  %817 = vst [vmem:[%s1463_s12] sm:$0x1] %v1233_v39  ;;  %818 = vst [vmem:[%s1469_s15] sm:$0x1] %v1233_v39 }
  0xa4   : > { %v468_v7 = vpop.permute.xlu1 %467  ;;  %v518_v8 = vpop.permute.xlu0 %517 }
  0xa5   : > { %v556_v10 = vsel %vm535_vm10, %v551_v6, %v518_v8  ;;  %v540_v11 = vsel %vm535_vm10, %v534_v9, %v468_v7 }
  0xa6   : > { %755 = vmatprep.mubr.bf16.mxu0 %v556_v10 }
  0xa7   : > { %756 = vmatmul.mubr.bf16.gmra.mxu0 %v540_v11 }
  0xa9   : > { %v823_v7 = vld [vmem:[%s1463_s12] sm:$0x1] }
  0xaa   : > { %v859_v10 = vld [vmem:[%s1469_s15] sm:$0x1] }
  0xb1   : > { %v832_v24 = vpop.permute.xlu1 %831  ;;  %v827_v33 = vpop.permute.xlu0 %826 }
  0xb5   : > { %v837_v41 = vpop.permute.xlu1 %836  ;;  %v842_v54 = vpop.permute.xlu0 %841 }
  0xeb   : > { %v1153_v12 = vpop.f32.mrf.mxu1 }
  0xed   : > { %v798_v15 = vpop.f32.mrf.mxu1 }
  0xef   : > { %v1154_v21 = vpop.f32.mrf.mxu1 }
  0xf1   : > { %v801_v27 = vpop.f32.mrf.mxu1 }
 0x15f   : > { %v1131_v13 = vpop.f32.mrf.mxu0 }
 0x161   : > { %v1132_v14 = vpop.f32.mrf.mxu0 }
 0x162   : > { %v1133_v16 = vadd.f32 %v1132_v14, %v1131_v13 }
 0x163   : > { %v1134_v18 = vpop.f32.mrf.mxu0 }
 0x164   : > { %v750_v19 = vadd.f32 %v1133_v16, %v1058_v17 }
 0x165   : > { %v1135_v20 = vpop.f32.mrf.mxu0 }
 0x166   : > { %v1136_v22 = vadd.f32 %v1135_v20, %v1134_v18  ;;  %v799_v26 = vadd.f32 %v798_v15, %v750_v19 }
 0x167   : > { %v1137_v23 = vpop.f32.mrf.mxu0 }
 0x168   : > { %v753_v25 = vadd.f32 %v1136_v22, %v1058_v17  ;;  %v860_v36 = vmul.f32 %v799_v26, %v799_v26  ;;  %v844_v42 = vmul.f32 %v827_v33, %v799_v26 }
 0x169   : > { %v1138_v28 = vpop.f32.mrf.mxu0 }
 0x16a   : > { %v802_v29 = vadd.f32 %v801_v27, %v753_v25  ;;  %v1139_v30 = vadd.f32 %v1138_v28, %v1137_v23  ;;  %v864_v49 = vmul.f32 %v860_v36, %v827_v33 }
 0x16b   : > { %v1140_v31 = vpop.f32.mrf.mxu0 }
 0x16c   : > { %v1105_v32 = vpack.c.bf16 %v802_v29, %v799_v26  ;;  %v758_v34 = vadd.f32 %v1139_v30, %v1058_v17  ;;  %v861_v35 = vmul.f32 %v802_v29, %v802_v29  ;;  %v845_v44 = vmul.f32 %v832_v24, %v802_v29 }
 0x16d   : > { %v1141_v37 = vpop.f32.mrf.mxu0 }
 0x16e   : > { %1106 = vst [vmem:[%s360_s21] sm:$0xff] %v1105_v32   ;;  %v807_v43 = vadd.f32 %v1153_v12, %v758_v34  ;;  %v1142_v45 = vadd.f32 %v1141_v37, %v1140_v31  ;;  %v865_v46 = vmul.f32 %v861_v35, %v832_v24  ;;  %v848_v50 = vadd.f32 %v845_v44, %v844_v42 }
 0x170   : > { %v761_v47 = vadd.f32 %v1142_v45, %v1058_v17  ;;  %v846_v48 = vmul.f32 %v837_v41, %v807_v43  ;;  %v862_v40 = vmul.f32 %v807_v43, %v807_v43  ;;  %v868_v53 = vadd.f32 %v865_v46, %v864_v49 }
 0x172   : > { %v810_v51 = vadd.f32 %v1154_v21, %v761_v47  ;;  %v866_v52 = vmul.f32 %v862_v40, %v837_v41  ;;  %v849_v56 = vadd.f32 %v848_v50, %v846_v48 }
 0x174   : > { %v1110_v55 = vpack.c.bf16 %v810_v51, %v807_v43  ;;  %v863_v57 = vmul.f32 %v810_v51, %v810_v51  ;;  %v847_v58 = vmul.f32 %v842_v54, %v810_v51  ;;  %v869_v59 = vadd.f32 %v868_v53, %v866_v52 }
 0x176   : > { %1114 = vst [vmem:[%s360_s21 + $0x8] sm:$0xff] %v1110_v55   ;;  %v850_v60 = vadd.f32 %v849_v56, %v847_v58  ;;  %v867_v61 = vmul.f32 %v863_v57, %v842_v54 }
 0x178   : > { %v851_v62 = vrot.slane %v850_v60, 4  ;;  %v870_v63 = vadd.f32 %v869_v59, %v867_v61 }
 0x17a   : > { %v852_v0 = vadd.f32 %v851_v62, %v850_v60  ;;  %v871_v1 = vrot.slane %v870_v63, 4 }
 0x17c   : > { %v853_v2 = vrot.slane %v852_v0, 2  ;;  %v872_v3 = vadd.f32 %v871_v1, %v870_v63 }
 0x17e   : > { %v854_v4 = vadd.f32 %v853_v2, %v852_v0  ;;  %v873_v38 = vrot.slane %v872_v3, 2 }
 0x180   : > { %v855_v5 = vrot.slane %v854_v4, 1  ;;  %v874_v6 = vadd.f32 %v873_v38, %v872_v3 }
 0x182   : > { %v856_v8 = vadd.f32 %v855_v5, %v854_v4  ;;  %v875_v9 = vrot.slane %v874_v6, 1 }
 0x184   : > { %v857_v11 = vadd.f32 %v856_v8, %v823_v7  ;;  %v876_v39 = vadd.f32 %v875_v9, %v874_v6 }
 0x186   : > { %858 = vst [vmem:[%s1463_s12] sm:$0x1] %v857_v11  ;;  %v877_v12 = vadd.f32 %v876_v39, %v859_v10 }
 0x188   : > { %878 = vst [vmem:[%s1469_s15] sm:$0x1] %v877_v12 }
 0x189 PF: > { %s19_s29 = sadd.s32 1, %s1227_s29   ;;  %s1502_s27 = smov %s1223_s28 }
 0x18a   : > { %p16_p5 = scmp.ge.s32.totalorder %s19_s29, 4   ;;  %s1503_s28 = smov %s1505_s30 }
 0x18c   :  { %18 = sbr.rel (!%p16_p5) target bundleno = 2 (0x2), region = 106 }

// kernel: unet_forward.10
= control target key start
LH: loop header
LB: loop body
LE: loop exit
PB: predicated region body
PF: predicated region fallthrough
CT: control target
= control target key end

     0   :  { %s1577_s27 = smov 0   ;;  %s1579_s28 = smov 0   ;;  %s1992_s0 = inlined_call_operand.vmem [shape: bf16[2,80,32], index: 0, kind: input, shape index: {}]   ;;  %s1993_s1 = inlined_call_operand.vmem [shape: bf16[288,128], index: 1, kind: input, shape index: {}]   ;;  %s1994_s2 = inlined_call_operand.vmem [shape: f32[1,32], index: 2, kind: input, shape index: {}]   ;;  %s1995_s3 = inlined_call_operand.vmem [shape: f32[1,32], index: 3, kind: input, shape index: {}]   ;;  %s1996_s4 = inlined_call_operand.vmem [shape: f32[1,128], index: 4, kind: input, shape index: {}]   ;;  %s1997_s5 = inlined_call_operand.vmem [shape: f32[64,1], index: 5, kind: input, shape index: {}]   ;;  %s1998_s6 = inlined_call_operand.vmem [shape: bf16[2,64,128], index: 6, kind: output, shape index: {0}]   ;;  %s1999_s7 = inlined_call_operand.vmem [shape: f32[2,1,128], index: 7, kind: output, shape index: {1}]   ;;  %s2000_s8 = inlined_call_operand.vmem [shape: f32[2,1,128], index: 8, kind: output, shape index: {2}]  }
   0x1   :  { %s1581_s29 = smov 0  }
   0x2 LB: > { %s31_s30 = sadd.s32 1, %s1521_s28  ;;  %p1284_p0 = scmp.ge.s32.totalorder %s1525_s29, 1  ;;  %s1525_s29 = sphi %s1581_s29, %s19_s29   ;;  %s1521_s28 = sphi %s1579_s28, %s2002_s28   ;;  %s1517_s27 = sphi %s1577_s27, %s2001_s27  }
   0x3   : > { %p33_p1 = scmp.ge.s32.totalorder %s31_s30, 2  ;;  %p292_p2 = scmp.lt.s32.totalorder %s1525_s29, 3 }
   0x5   : > { %s2004_s30 = smov (%p33_p1, %s31_s30), 0  ;;  %p293_p3 = pnand %p1284_p0, %p292_p2 }
   0x6   : > { %p341_p4 = scmp.lt.s32.totalorder (!%p293_p3), %s1517_s27, 1  ;;  %s1527_s21 = smov (!%p293_p3), 64  }
   0x7   : > { %296 = sbr.rel (%p293_p3) target bundleno = 421 (0x1a5), region = 44  ;;  %s1528_s22 = smov (!%p293_p3), 32  }
   0x8   : > { %s1529_s13 = smov (!%p293_p3), 96  }
   0xc   : > { %s2006_s27 = smov (!%p341_p4, %s1517_s27), 1  ;;  %v1485_v0 = vld [vmem:[%s1993_s1 + $0x78] sm:$0xff]   ;;  %v1607_v2 = vld [vmem:[%s1994_s2] ss:$0 sm:$0xff]  ;;  %v1487_v3 = vld [vmem:[%s1993_s1 + $0x70] sm:$0xff]   ;;  %vm569_vm0 = vcmask 1041408  }
   0xd   : > { %s1453_s11 = smul.u32 40, %s2006_s27  ;;  %1379 = vmatprep.subr.bf16.mxu0 %v1485_v0  ;;  %v1486_v1 = vld [vmem:[%s1993_s1 + $0x38] sm:$0xff]   ;;  %1437 = vmatprep.subr.bf16.mxu1 %v1485_v0  ;;  %v1488_v4 = vld [vmem:[%s1993_s1 + $0x30] sm:$0xff]   ;;  %v1626_v12 = vld [vmem:[%s1995_s3] ss:$0 sm:$0xff]  ;;  %vm551_vm1 = vcmask 1043456   ;;  %s1952_s23 = scalar_lea.vmem %s2000_s8, %s2006_s27 }
   0xe   : > { %1380 = vmatpush3.bf16.msra.mxu0 %v1486_v1  ;;  %1445 = vmatpush3.bf16.msra.mxu1 %v1486_v1  ;;  %v1489_v18 = vld [vmem:[%s1993_s1 + $0x68] sm:$0xff]   ;;  %v1491_v28 = vld [vmem:[%s1993_s1 + $0x60] sm:$0xff]   ;;  %v1493_v43 = vld [vmem:[%s1993_s1 + $0x58] sm:$0xff]   ;;  %vm493_vm2 = vcmask 1046528   ;;  %vm511_vm3 = vcmask 1044480   ;;  %vm625_vm7 = vcmask 261120  }
   0xf   : > { %s1615_s20 = scalar_lea.vmem %s1992_s0, %s1453_s11  ;;  %1381 = vmatprep.subr.bf16.mxu0 %v1487_v3  ;;  %1438 = vmatprep.subr.bf16.mxu1 %v1487_v3  ;;  %v1490_v23 = vld [vmem:[%s1993_s1 + $0x28] sm:$0xff]   ;;  %v1492_v42 = vld [vmem:[%s1993_s1 + $0x20] sm:$0xff]   ;;  %v1494_v50 = vld [vmem:[%s1993_s1 + $0x18] sm:$0xff]   ;;  %vm443_vm4 = vsmask.f32 7424  ;;  %vm634_vm8 = vcmask 523264  }
  0x10   : > { %v1333_v5 = vld [vmem:[%s1615_s20] sm:$0xff]   ;;  %v1372_v6 = vld [vmem:[%s1615_s20 + $0x8] sm:$0xff]   ;;  %v1374_v7 = vld [vmem:[%s1615_s20 + $0x18] sm:$0xff]   ;;  %vm587_vm5 = vsmask.f32 1280  ;;  %vm643_vm9 = vcmask 785408  }
  0x11   : > { %v1334_v8 = vunpack.c.l.bf16 %v1333_v5  ;;  %v1335_v9 = vunpack.c.h.bf16 %v1333_v5  ;;  %v1338_v10 = vunpack.c.l.bf16 %v1372_v6  ;;  %v1339_v11 = vunpack.c.h.bf16 %v1372_v6  ;;  %v1375_v13 = vld [vmem:[%s1615_s20 + $0x20] sm:$0xff]   ;;  %v1373_v37 = vld [vmem:[%s1615_s20 + $0x10] sm:$0xff]   ;;  %s1946_s20 = scalar_lea.vmem %s1999_s7, %s2006_s27  ;;  %s1323_s26 = sshll.u32 %s2006_s27, 5 }
  0x12   : > { %v1346_v14 = vunpack.c.l.bf16 %v1374_v7  ;;  %v1347_v15 = vunpack.c.h.bf16 %v1374_v7  ;;  %v1350_v16 = vunpack.c.l.bf16 %v1375_v13  ;;  %v1351_v17 = vunpack.c.h.bf16 %v1375_v13  ;;  %1382 = vmatpush3.bf16.msra.mxu0 %v1488_v4  ;;  %1446 = vmatpush3.bf16.msra.mxu1 %v1488_v4  ;;  %v1495_v55 = vld [vmem:[%s1993_s1 + $0x50] sm:$0xff]   ;;  %s1968_s11 = scalar_lea.vmem %s1998_s6, %s1323_s26 }
  0x13   : > { %v401_v19 = vmul.f32 %v1334_v8, %v1607_v2  ;;  %v402_v20 = vmul.f32 %v1335_v9, %v1607_v2  ;;  %v403_v21 = vmul.f32 %v1338_v10, %v1607_v2  ;;  %v404_v22 = vmul.f32 %v1339_v11, %v1607_v2  ;;  %1383 = vmatprep.subr.bf16.mxu0 %v1489_v18  ;;  %v1496_v11 = vld [vmem:[%s1993_s1 + $0x10] sm:$0xff]  }
  0x14   : > { %v407_v24 = vmul.f32 %v1346_v14, %v1607_v2  ;;  %v408_v25 = vmul.f32 %v1347_v15, %v1607_v2  ;;  %v409_v26 = vmul.f32 %v1350_v16, %v1607_v2  ;;  %v410_v27 = vmul.f32 %v1351_v17, %v1607_v2  ;;  %1439 = vmatprep.subr.bf16.mxu1 %v1489_v18  ;;  %v1497_v15 = vld [vmem:[%s1993_s1 + $0x48] sm:$0xff]  }
  0x15   : > { %v418_v29 = vadd.f32 %v1626_v12, %v401_v19  ;;  %v419_v30 = vadd.f32 %v1626_v12, %v402_v20  ;;  %v420_v31 = vadd.f32 %v1626_v12, %v403_v21  ;;  %v421_v32 = vadd.f32 %v1626_v12, %v404_v22 }
  0x16   : > { %v424_v33 = vadd.f32 %v1626_v12, %v407_v24  ;;  %v425_v34 = vadd.f32 %v1626_v12, %v408_v25  ;;  %v426_v35 = vadd.f32 %v1626_v12, %v409_v26  ;;  %v427_v36 = vadd.f32 %v1626_v12, %v410_v27  ;;  %1384 = vmatpush3.bf16.msra.mxu0 %v1490_v23  ;;  %v1498_v26 = vld [vmem:[%s1993_s1 + $0x8] sm:$0xff]  }
  0x17   : > { %v428_v38 = vmax.f32 %v418_v29, 0.0  ;;  %v429_v39 = vmax.f32 %v419_v30, 0.0  ;;  %v430_v40 = vmax.f32 %v420_v31, 0.0  ;;  %v431_v41 = vmax.f32 %v421_v32, 0.0  ;;  %1385 = vmatprep.subr.bf16.mxu0 %v1491_v28  ;;  %1447 = vmatpush3.bf16.msra.mxu1 %v1490_v23  ;;  %v1499_v31 = vld [vmem:[%s1993_s1 + $0x40] sm:$0xff]  }
  0x18   : > { %v434_v44 = vmax.f32 %v424_v33, 0.0  ;;  %v435_v45 = vmax.f32 %v425_v34, 0.0  ;;  %v436_v46 = vmax.f32 %v426_v35, 0.0  ;;  %v437_v47 = vmax.f32 %v427_v36, 0.0  ;;  %1440 = vmatprep.subr.bf16.mxu1 %v1491_v28 }
  0x19   : > { %v1661_v48 = vpack.c.bf16 %v429_v39, %v428_v38  ;;  %v1663_v49 = vpack.c.bf16 %v431_v41, %v430_v40  ;;  %v1342_v53 = vunpack.c.l.bf16 %v1373_v37  ;;  %v1343_v54 = vunpack.c.h.bf16 %v1373_v37 }
  0x1a   : > { %v1668_v51 = vpack.c.bf16 %v435_v45, %v434_v44  ;;  %v1670_v52 = vpack.c.bf16 %v437_v47, %v436_v46  ;;  %1386 = vmatpush3.bf16.msra.mxu0 %v1492_v42  ;;  %vm529_vm6 = vsmask.f32 4352  ;;  %vm615_vm10 = vcmask 1040384  }
  0x1b   : > { %v570_v56 = vrot.slane %v1661_v48, 6  ;;  %v571_v57 = vrot.slane %v1663_v49, 6  ;;  %v552_v58 = vrot.slane %v1661_v48, 4  ;;  %v553_v59 = vrot.slane %v1663_v49, 4  ;;  %1387 = vmatprep.subr.bf16.mxu0 %v1493_v43  ;;  %1448 = vmatpush3.bf16.msra.mxu1 %v1492_v42  ;;  %v1500_v42 = vld [vmem:[%s1993_s1] sm:$0xff]  }
  0x1c   : > { %v557_v60 = vrot.slane %v1668_v51, 4  ;;  %v559_v61 = vrot.slane %v1670_v52, 4  ;;  %v494_v62 = vrot.slane %v1661_v48, 1  ;;  %v495_v63 = vrot.slane %v1663_v49, 1  ;;  %1441 = vmatprep.subr.bf16.mxu1 %v1493_v43 }
  0x1d   : > { %v572_v0 = vsel %vm569_vm0, %v570_v56, %v571_v57  ;;  %v554_v1 = vsel %vm551_vm1, %v552_v58, %v553_v59  ;;  %v575_v3 = vrot.slane %v1668_v51, 6  ;;  %v577_v4 = vrot.slane %v1670_v52, 6 }
  0x1e   : > { %579 = vrot.lane.b32.xlu1 %v572_v0, %s1527_s21  ;;  %561 = vrot.lane.b32.xlu0 %v554_v1, %s1528_s22  ;;  %v560_v5 = vsel %vm551_vm1, %v557_v60, %v559_v61  ;;  %v512_v6 = vrot.slane %v1661_v48, 3  ;;  %v513_v7 = vrot.slane %v1663_v49, 3  ;;  %v496_v8 = vsel %vm493_vm2, %v494_v62, %v495_v63  ;;  %v1794_v62 = vld [vmem:[%s1993_s1 + $0x88] sm:$0xff]  }
  0x1f   : > { %v405_v9 = vmul.f32 %v1342_v53, %v1607_v2  ;;  %v406_v10 = vmul.f32 %v1343_v54, %v1607_v2  ;;  %1388 = vmatpush3.bf16.msra.mxu0 %v1494_v50  ;;  %v499_v13 = vrot.slane %v1668_v51, 1  ;;  %v501_v14 = vrot.slane %v1670_v52, 1  ;;  %1449 = vmatpush3.bf16.msra.mxu1 %v1494_v50 }
  0x20   : > { %1389 = vmatprep.subr.bf16.mxu0 %v1495_v55  ;;  %v1714_v2 = vshrl.u32 %v1661_v48, 16  ;;  %v1717_v18 = vshll.u32 %v1661_v48, 16  ;;  %v578_v19 = vsel %vm569_vm0, %v575_v3, %v577_v4  ;;  %v514_v20 = vsel %vm511_vm3, %v512_v6, %v513_v7  ;;  %1442 = vmatprep.subr.bf16.mxu1 %v1495_v55 }
  0x21   : > { %v422_v16 = vadd.f32 %v1626_v12, %v405_v9  ;;  %v423_v17 = vadd.f32 %v1626_v12, %v406_v10  ;;  %v1728_v12 = vshll.u32 %v1663_v49, 16  ;;  %v1731_v21 = vshll.u32 %v1668_v51, 16 }
  0x22   : > { %567 = vrot.lane.b32.xlu0 %v560_v5, %s1528_s22  ;;  %503 = vrot.lane.b32.xlu1 %v496_v8, %s1527_s21  ;;  %v517_v24 = vrot.slane %v1668_v51, 3  ;;  %v449_v25 = vrot.slane %v1717_v18, 1  ;;  %v519_v27 = vrot.slane %v1670_v52, 3  ;;  %v1741_v29 = vshrl.u32 %v1668_v51, 16 }
  0x23   : > { %v432_v22 = vmax.f32 %v422_v16, 0.0  ;;  %v433_v23 = vmax.f32 %v423_v17, 0.0  ;;  %1390 = vmatpush3.bf16.msra.mxu0 %v1496_v11  ;;  %v454_v28 = vrot.slane %v1728_v12, 1  ;;  %v1744_v30 = vshrl.u32 %v1663_v49, 16  ;;  %1450 = vmatpush3.bf16.msra.mxu1 %v1496_v11 }
  0x24   : > { %1391 = vmatprep.subr.bf16.mxu0 %v1497_v15  ;;  %v450_v33 = vor.u32 %v449_v25, %v1714_v2  ;;  %v470_v34 = vrot.slane %v1731_v21, 1  ;;  %v1754_v35 = vshll.u32 %v1670_v52, 16  ;;  %v588_v36 = vrot.slane %v1714_v2, 6  ;;  %1443 = vmatprep.subr.bf16.mxu1 %v1497_v15 }
  0x25   : > { %v1749_v32 = vpack.c.bf16 %v433_v23, %v432_v22  ;;  %v589_v37 = vrot.slane %v1717_v18, 7  ;;  %v591_v38 = vrot.slane %v1744_v30, 6  ;;  %v592_v39 = vrot.slane %v1728_v12, 7 }
  0x26   : > { %585 = vrot.lane.b32.xlu0 %v578_v19, %s1527_s21  ;;  %521 = vrot.lane.b32.xlu1 %v514_v20, %s1529_s13  ;;  %v502_v41 = vsel %vm493_vm2, %v499_v13, %v501_v14  ;;  %v545_v43 = vshrl.u32 %v1670_v52, 16  ;;  %v520_v45 = vsel %vm511_vm3, %v517_v24, %v519_v27  ;;  %v474_v46 = vor.u32 %v1741_v29, %v470_v34 }
  0x27   : > { %v555_v40 = vrot.slane %v1749_v32, 4  ;;  %1392 = vmatpush3.bf16.msra.mxu0 %v1498_v26  ;;  %v1782_v47 = vshll.u32 %v1749_v32, 16  ;;  %1451 = vmatpush3.bf16.msra.mxu1 %v1498_v26  ;;  %v455_v50 = vsel %vm443_vm4, %v450_v33, %v454_v28  ;;  %v478_v53 = vrot.slane %v1754_v35, 1 }
  0x28   : > { %1393 = vmatprep.subr.bf16.mxu0 %v1499_v31  ;;  %v590_v54 = vor.u32 %v589_v37, %v588_v36  ;;  %v593_v55 = vor.u32 %v592_v39, %v591_v38  ;;  %v599_v56 = vrot.slane %v1741_v29, 6  ;;  %v600_v58 = vrot.slane %v1731_v21, 7  ;;  %1444 = vmatprep.subr.bf16.mxu1 %v1499_v31 }
  0x29   : > { %v556_v44 = vsel %vm551_vm1, %v553_v59, %v555_v40  ;;  %v603_v59 = vrot.slane %v545_v43, 6  ;;  %v604_v61 = vrot.slane %v1754_v35, 7  ;;  %v458_v0 = vor.u32 %v1744_v30, %v454_v28 }
  0x2a   : > { %563 = vrot.lane.b32.xlu0 %v556_v44, %s1528_s22  ;;  %509 = vrot.lane.b32.xlu1 %v502_v41, %s1527_s21  ;;  %v462_v1 = vrot.slane %v1782_v47, 1  ;;  %v479_v4 = vsel %vm443_vm4, %v474_v46, %v478_v53  ;;  %v594_v5 = vsel %vm587_vm5, %v590_v54, %v593_v55  ;;  %v497_v6 = vrot.slane %v1749_v32, 1  ;;  %v992_v53 = vld [vmem:[%s1997_s5 + $0x28] sm:$0xff]  ;;  %v993_v54 = vld [vmem:[%s1997_s5 + $0x30] sm:$0xff] }
  0x2b   : > { %1394 = vmatpush3.bf16.msra.mxu0 %v1500_v42  ;;  %1452 = vmatpush3.bf16.msra.mxu1 %v1500_v42  ;;  %v533_v8 = vrot.slane %v1744_v30, 3  ;;  %v601_v9 = vor.u32 %v600_v58, %v599_v56  ;;  %v605_v10 = vor.u32 %v604_v61, %v603_v59  ;;  %v573_v11 = vrot.slane %v1749_v32, 6 }
  0x2c   : > { %v464_v14 = vshrl.u32 %v1749_v32, 16  ;;  %1425 = vmatprep.subr.bf16.mxu1 %v1794_v62  ;;  %v534_v15 = vrot.slane %v1728_v12, 4  ;;  %v530_v16 = vrot.slane %v1714_v2, 3  ;;  %v531_v17 = vrot.slane %v1717_v18, 4 }
  0x2d   : > { %v541_v19 = vrot.slane %v1741_v29, 3  ;;  %v463_v20 = vsel %vm443_vm4, %v458_v0, %v462_v1  ;;  %v596_v22 = vrot.slane %v1782_v47, 7  ;;  %v542_v23 = vrot.slane %v1731_v21, 4 }
  0x2e   : > { %527 = vrot.lane.b32.xlu1 %v520_v45, %s1529_s13  ;;  %480 = vrot.lane.b32.xlu0 %v455_v50, %s1528_s22  ;;  %v547_v25 = vrot.slane %v545_v43, 3  ;;  %v535_v26 = vor.u32 %v534_v15, %v533_v8  ;;  %v532_v27 = vor.u32 %v531_v17, %v530_v16  ;;  %v548_v12 = vrot.slane %v1754_v35, 4  ;;  %v991_v50 = vld [vmem:[%s1997_s5 + $0x20] sm:$0xff] }
  0x2f   : > { %v537_v2 = vrot.slane %v464_v14, 3  ;;  %v606_v18 = vsel %vm587_vm5, %v601_v9, %v605_v10  ;;  %v595_v28 = vrot.slane %v464_v14, 6  ;;  %v543_v29 = vor.u32 %v542_v23, %v541_v19 }
  0x30   : > { %v538_v30 = vrot.slane %v1782_v47, 4  ;;  %v536_v31 = vsel %vm529_vm6, %v532_v27, %v535_v26  ;;  %v549_v33 = vor.u32 %v548_v12, %v547_v25  ;;  %v498_v37 = vsel %vm493_vm2, %v495_v63, %v497_v6 }
  0x31   : > { %v515_v35 = vrot.slane %v1749_v32, 3  ;;  %v574_v39 = vsel %vm569_vm0, %v571_v57, %v573_v11  ;;  %v597_v41 = vor.u32 %v596_v22, %v595_v28  ;;  %v466_v45 = vor.u32 %v464_v14, %v462_v1 }
  0x32   : > { %486 = vrot.lane.b32.xlu1 %v479_v4, %s1528_s22  ;;  %607 = vrot.lane.b32.xlu0 %v594_v5, %s1529_s13  ;;  %v539_v36 = vor.u32 %v538_v30, %v537_v2  ;;  %v1827_v38 = vsel %vm529_vm6, %v543_v29, %v549_v33  ;;  %v558_v46 = vsel %vm551_vm1, %v555_v40, %v557_v60  ;;  %v1530_v47 = vmov 0   ;;  %v990_v40 = vld [vmem:[%s1997_s5 + $0x18] sm:$0xff] }
  0x33   : > { %v516_v63 = vsel %vm511_vm3, %v513_v7, %v515_v35  ;;  %v598_v44 = vsel %vm587_vm5, %v593_v55, %v597_v41  ;;  %v471_v57 = vsel %vm443_vm4, %v466_v45, %v470_v34  ;;  %1484 = vset.pattern.permute.xlu1 %v1530_v47  ;;  %1483 = vset.pattern.permute.xlu0 %v1530_v47  ;;  %v994_v55 = vld [vmem:[%s1997_s5 + $0x38] sm:$0xff]  ;;  %v617_v22 = vrot.slane %v1663_v49, 7 }
  0x34   : > { %v1833_v42 = vsel %vm529_vm6, %v535_v26, %v539_v36  ;;  %v1836_v43 = vsel %vm529_vm6, %v539_v36, %v543_v29  ;;  %v500_v7 = vsel %vm493_vm2, %v497_v6, %v499_v13  ;;  %v576_v21 = vsel %vm569_vm0, %v573_v11, %v575_v3  ;;  %v988_v13 = vld [vmem:[%s1997_s5 + $0x8] sm:$0xff]  ;;  %v987_v3 = vld [vmem:[%s1997_s5] sm:$0xff] }
  0x35   : > { %v518_v60 = vsel %vm511_vm3, %v515_v35, %v517_v24  ;;  %v602_v34 = vsel %vm587_vm5, %v597_v41, %v601_v9  ;;  %v989_v24 = vld [vmem:[%s1997_s5 + $0x10] sm:$0xff]  ;;  %v619_v33 = vrot.slane %v1749_v32, 7  ;;  %v621_v36 = vrot.slane %v1668_v51, 7 }
  0x36   : > { %482 = vrot.lane.b32.xlu1 %v463_v20, %s1528_s22  ;;  %613 = vrot.lane.b32.xlu0 %v606_v18, %s1529_s13  ;;  %v616_v20 = vrot.slane %v1661_v48, 7 }
  0x38   : > { %v618_v28 = vsel %vm615_vm10, %v616_v20, %v617_v22 }
  0x3a   : > { %505 = vrot.lane.b32.xlu1 %v498_v37, %s1527_s21  ;;  %581 = vrot.lane.b32.xlu0 %v574_v39, %s1527_s21 }
  0x3e   : > { %523 = vrot.lane.b32.xlu1 %v516_v63, %s1529_s13  ;;  %609 = vrot.lane.b32.xlu0 %v598_v44, %s1529_s13  ;;  %v620_v63 = vsel %vm615_vm10, %v617_v22, %v619_v33 }
  0x42   : > { %484 = vrot.lane.b32.xlu1 %v471_v57, %s1528_s22  ;;  %565 = vrot.lane.b32.xlu0 %v558_v46, %s1528_s22  ;;  %v623_v57 = vrot.slane %v1670_v52, 7 }
  0x46   : > { %507 = vrot.lane.b32.xlu1 %v500_v7, %s1527_s21  ;;  %583 = vrot.lane.b32.xlu0 %v576_v21, %s1527_s21  ;;  %v624_v7 = vsel %vm615_vm10, %v621_v36, %v623_v57 }
  0x4a   : > { %525 = vrot.lane.b32.xlu1 %v518_v60, %s1529_s13  ;;  %611 = vrot.lane.b32.xlu0 %v602_v34, %s1529_s13 }
  0x4e   : > { %1003 = vperm.xlu1 %1484, %v988_v13   ;;  %998 = vperm.xlu0 %1483, %v987_v3  }
  0x52   : > { %1008 = vperm.xlu1 %1484, %v989_v24   ;;  %1013 = vperm.xlu0 %1483, %v990_v40  }
  0x56   : > { %1018 = vperm.xlu1 %1484, %v991_v50   ;;  %1023 = vperm.xlu0 %1483, %v992_v53  }
  0x5a   : > { %1028 = vperm.xlu1 %1484, %v993_v54   ;;  %1033 = vperm.xlu0 %1483, %v994_v55  }
  0x90   : > { %v580_v56 = vpop.permute.xlu1 %579  ;;  %v562_v58 = vpop.permute.xlu0 %561 }
  0x91   : > { %v658_v9 = vsel %vm625_vm7, %v536_v31, %v562_v58 }
  0x92   : > { %v669_v16 = vsel %vm634_vm8, %v658_v9, %v580_v56 }
  0x94   : > { %v568_v59 = vpop.permute.xlu0 %567  ;;  %v504_v61 = vpop.permute.xlu1 %503 }
  0x95   : > { %v667_v25 = vsel %vm625_vm7, %v1827_v38, %v568_v59 }
  0x98   : > { %v586_v0 = vpop.permute.xlu0 %585  ;;  %v522_v1 = vpop.permute.xlu1 %521 }
  0x99   : > { %v675_v27 = vsel %vm634_vm8, %v667_v25, %v586_v0 }
  0x9c   : > { %v564_v4 = vpop.permute.xlu0 %563  ;;  %v510_v5 = vpop.permute.xlu1 %509 }
  0x9d   : > { %v661_v37 = vsel %vm625_vm7, %v1833_v42, %v564_v4 }
  0xa0   : > { %v528_v6 = vpop.permute.xlu1 %527  ;;  %v481_v8 = vpop.permute.xlu0 %480 }
  0xa1   : > { %v627_v10 = vsel %vm625_vm7, %v1661_v48, %v481_v8  ;;  %v1502_v48 = vld [vmem:[%s1993_s1 + $0x80] sm:$0xff]  }
  0xa2   : > { %v636_v11 = vsel %vm634_vm8, %v627_v10, %v504_v61 }
  0xa3   : > { %v645_v23 = vsel %vm643_vm9, %v636_v11, %v522_v1 }
  0xa4   : > { %v487_v14 = vpop.permute.xlu1 %486  ;;  %v608_v15 = vpop.permute.xlu0 %607 }
  0xa5   : > { %v633_v17 = vsel %vm625_vm7, %v1668_v51, %v487_v14  ;;  %v677_v19 = vsel %vm643_vm9, %v669_v16, %v608_v15  ;;  %v622_v51 = vsel %vm615_vm10, %v619_v33, %v621_v36 }
  0xa6   : > { %883 = vmatprep.mubr.bf16.mxu0 %v677_v19  ;;  %v642_v26 = vsel %vm634_vm8, %v633_v17, %v510_v5  ;;  %v1959_v5 = vld [vmem:[%s1996_s4] ss:$0 sm:$0xff] }
  0xa7   : > { %884 = vmatmul.mubr.bf16.vlgmr.msra.gmra.mxu0 %v645_v23  ;;  %v654_v29 = vsel %vm643_vm9, %v642_v26, %v528_v6 }
  0xa8   : > { %v483_v12 = vpop.permute.xlu1 %482  ;;  %v614_v2 = vpop.permute.xlu0 %613 }
  0xa9   : > { %v686_v18 = vsel %vm643_vm9, %v675_v27, %v614_v2  ;;  %v629_v35 = vsel %vm625_vm7, %v1663_v49, %v483_v12 }
  0xaa   : > { %907 = vmatprep.mubr.bf16.mxu1 %v686_v18 }
  0xab   : > { %908 = vmatmul.mubr.bf16.vlgmr.msra.gmra.mxu1 %v654_v29 }
  0xac   : > { %v506_v30 = vpop.permute.xlu1 %505  ;;  %1426 = vmatpush3.bf16.msra.mxu1 %v1794_v62  ;;  %v582_v31 = vpop.permute.xlu0 %581  ;;  %1429 = vmatprep.mubr.msk.bf16.mxu1 %vm625_vm7, %v618_v28 }
  0xad   : > { %1427 = vmatprep.subr.bf16.mxu1 %v1502_v48  ;;  %v638_v38 = vsel %vm634_vm8, %v629_v35, %v506_v30  ;;  %v671_v39 = vsel %vm634_vm8, %v661_v37, %v582_v31 }
  0xb0   : > { %v524_v41 = vpop.permute.xlu1 %523  ;;  %1428 = vmatpush3.bf16.msra.mxu1 %v1502_v48  ;;  %v610_v62 = vpop.permute.xlu0 %609 }
  0xb1   : > { %v680_v44 = vsel %vm643_vm9, %v671_v39, %v610_v62  ;;  %v648_v45 = vsel %vm643_vm9, %v638_v38, %v524_v41 }
  0xb2   : > { %891 = vmatprep.mubr.bf16.mxu0 %v680_v44 }
  0xb3   : > { %892 = vmatmul.mubr.bf16.gmra.mxu0 %v648_v45  ;;  %1430 = vmatmul.mubr.msk.bf16.vlgmr.msra.gmra.mxu1 %vm625_vm7, %v620_v63 }
  0xb4   : > { %v485_v49 = vpop.permute.xlu1 %484  ;;  %v566_v42 = vpop.permute.xlu0 %565  ;;  %1433 = vmatprep.mubr.msk.bf16.mxu1 %vm625_vm7, %v622_v51 }
  0xb5   : > { %v631_v21 = vsel %vm625_vm7, %v1749_v32, %v485_v49  ;;  %v664_v60 = vsel %vm625_vm7, %v1836_v43, %v566_v42  ;;  %v1531_v32 = vmov 0.0  }
  0xb6   : > { %985 = vst [vmem:[%s1946_s20] sm:$0x1] %v1531_v32  ;;  %986 = vst [vmem:[%s1952_s23] sm:$0x1] %v1531_v32 }
  0xb8   : > { %v508_v46 = vpop.permute.xlu1 %507  ;;  %v584_v47 = vpop.permute.xlu0 %583 }
  0xb9   : > { %v640_v34 = vsel %vm634_vm8, %v631_v21, %v508_v46  ;;  %v673_v13 = vsel %vm634_vm8, %v664_v60, %v584_v47 }
  0xbb   : > { %1434 = vmatmul.mubr.msk.bf16.gmra.mxu1 %vm625_vm7, %v624_v7 }
  0xbc   : > { %v526_v3 = vpop.permute.xlu1 %525  ;;  %v612_v24 = vpop.permute.xlu0 %611 }
  0xbd   : > { %v683_v52 = vsel %vm643_vm9, %v673_v13, %v612_v24  ;;  %v651_v40 = vsel %vm643_vm9, %v640_v34, %v526_v3 }
  0xbe   : > { %899 = vmatprep.mubr.bf16.mxu0 %v683_v52 }
  0xbf   : > { %900 = vmatmul.mubr.bf16.gmra.mxu0 %v651_v40 }
  0xc9   : > { %v1004_v15 = vpop.permute.xlu1 %1003  ;;  %v999_v12 = vpop.permute.xlu0 %998 }
  0xcd   : > { %v1009_v33 = vpop.permute.xlu1 %1008  ;;  %v1014_v49 = vpop.permute.xlu0 %1013 }
  0xd1   : > { %v1019_v3 = vpop.permute.xlu1 %1018 }
 0x167   : > { %v1395_v43 = vpop.f32.mrf.mxu0 }
 0x169   : > { %v1396_v50 = vpop.f32.mrf.mxu0 }
 0x16a   : > { %v1397_v61 = vadd.f32 %v1396_v50, %v1395_v43 }
 0x16b   : > { %v1413_v53 = vpop.f32.mrf.mxu1  ;;  %v1398_v54 = vpop.f32.mrf.mxu0 }
 0x16c   : > { %v886_v10 = vadd.f32 %v1397_v61, %v1959_v5 }
 0x16d   : > { %v1414_v55 = vpop.f32.mrf.mxu1  ;;  %v1399_v58 = vpop.f32.mrf.mxu0 }
 0x16e   : > { %v1400_v4 = vadd.f32 %v1399_v58, %v1398_v54  ;;  %v1415_v26 = vadd.f32 %v1414_v55, %v1413_v53  ;;  %v1024_v58 = vpop.permute.xlu0 %1023 }
 0x16f   : > { %v1416_v56 = vpop.f32.mrf.mxu1 }
 0x170   : > { %v889_v16 = vadd.f32 %v1400_v4, %v1959_v5  ;;  %v910_v38 = vadd.f32 %v1415_v26, %v1959_v5 }
 0x171   : > { %v1417_v59 = vpop.f32.mrf.mxu1 }
 0x172   : > { %v1418_v27 = vadd.f32 %v1417_v59, %v1416_v56 }
 0x173   : > { %v1401_v0 = vpop.f32.mrf.mxu0  ;;  %v1431_v1 = vpop.f32.mrf.mxu1 }
 0x174   : > { %v913_v41 = vadd.f32 %v1418_v27, %v1959_v5 }
 0x175   : > { %v1402_v6 = vpop.f32.mrf.mxu0  ;;  %v950_v8 = vpop.f32.mrf.mxu1 }
 0x176   : > { %v1403_v9 = vadd.f32 %v1402_v6, %v1401_v0  ;;  %v951_v19 = vadd.f32 %v950_v8, %v886_v10  ;;  %v1029_v6 = vpop.permute.xlu1 %1028 }
 0x177   : > { %v1404_v11 = vpop.f32.mrf.mxu0  ;;  %v1432_v14 = vpop.f32.mrf.mxu1 }
 0x178   : > { %v894_v17 = vadd.f32 %v1403_v9, %v1959_v5  ;;  %v1060_v29 = vmul.f32 %v951_v19, %v951_v19  ;;  %v1036_v63 = vmul.f32 %v999_v12, %v951_v19 }
 0x179   : > { %v1405_v20 = vpop.f32.mrf.mxu0  ;;  %v953_v22 = vpop.f32.mrf.mxu1 }
 0x17a   : > { %v1406_v23 = vadd.f32 %v1405_v20, %v1404_v11  ;;  %v954_v25 = vadd.f32 %v953_v22, %v889_v16  ;;  %v959_v28 = vadd.f32 %v1431_v1, %v894_v17  ;;  %v1068_v51 = vmul.f32 %v1060_v29, %v999_v12  ;;  %v1034_v20 = vpop.permute.xlu0 %1033 }
 0x17b   : > { %v1435_v2 = vpop.f32.mrf.mxu1 }
 0x17c   : > { %v897_v18 = vadd.f32 %v1406_v23, %v1959_v5  ;;  %v1061_v48 = vmul.f32 %v954_v25, %v954_v25  ;;  %v1355_v30 = vpack.c.bf16 %v954_v25, %v951_v19  ;;  %v1037_v37 = vmul.f32 %v1004_v15, %v954_v25 }
 0x17d   : > { %v966_v31 = vpop.f32.mrf.mxu1  ;;  %v1062_v45 = vmul.f32 %v959_v28, %v959_v28  ;;  %v975_v42 = vadd.f32 %v1435_v2, %v910_v38  ;;  %v1038_v24 = vmul.f32 %v1009_v33, %v959_v28 }
 0x17e   : > { %v962_v36 = vadd.f32 %v1432_v14, %v897_v18  ;;  %v1069_v35 = vmul.f32 %v1061_v48, %v1004_v15  ;;  %1356 = vst [vmem:[%s1968_s11] sm:$0xff] %v1355_v30   ;;  %v1044_v47 = vadd.f32 %v1037_v37, %v1036_v63 }
 0x17f   : > { %v1407_v39 = vpop.f32.mrf.mxu0  ;;  %v1436_v62 = vpop.f32.mrf.mxu1  ;;  %v1070_v40 = vmul.f32 %v1062_v45, %v1009_v33  ;;  %v1066_v11 = vmul.f32 %v975_v42, %v975_v42  ;;  %v1042_v19 = vmul.f32 %v1029_v6, %v975_v42  ;;  %v1059_v45 = vld [vmem:[%s1952_s23] sm:$0x1] }
 0x180   : > { %v1360_v44 = vpack.c.bf16 %v962_v36, %v959_v28  ;;  %v978_v57 = vadd.f32 %v1436_v62, %v913_v41  ;;  %v1063_v21 = vmul.f32 %v962_v36, %v962_v36  ;;  %v1076_v60 = vadd.f32 %v1069_v35, %v1068_v51  ;;  %v995_v62 = vld [vmem:[%s1946_s20] sm:$0x1] }
 0x181   : > { %v1408_v46 = vpop.f32.mrf.mxu0  ;;  %v1045_v43 = vadd.f32 %v1044_v47, %v1038_v24  ;;  %v1039_v50 = vmul.f32 %v1014_v49, %v962_v36  ;;  %v969_v1 = vpop.f32.mrf.mxu1 }
 0x182   : > { %1376 = vst [vmem:[%s1968_s11 + $0x8] sm:$0xff] %v1360_v44   ;;  %v1409_v7 = vadd.f32 %v1408_v46, %v1407_v39  ;;  %v1370_v34 = vpack.c.bf16 %v978_v57, %v975_v42  ;;  %v1077_v55 = vadd.f32 %v1076_v60, %v1070_v40  ;;  %v1071_v56 = vmul.f32 %v1063_v21, %v1014_v49 }
 0x183   : > { %v1410_v13 = vpop.f32.mrf.mxu0  ;;  %v1046_v4 = vadd.f32 %v1045_v43, %v1039_v50  ;;  %v1067_v23 = vmul.f32 %v978_v57, %v978_v57  ;;  %v1043_v27 = vmul.f32 %v1034_v20, %v978_v57 }
 0x184   : > { %v902_v52 = vadd.f32 %v1409_v7, %v1959_v5  ;;  %1378 = vst [vmem:[%s1968_s11 + $0x18] sm:$0xff] %v1370_v34   ;;  %v1078_v10 = vadd.f32 %v1077_v55, %v1071_v56 }
 0x185   : > { %v1411_v32 = vpop.f32.mrf.mxu0  ;;  %v1075_v18 = vmul.f32 %v1067_v23, %v1034_v20 }
 0x186   : > { %v967_v53 = vadd.f32 %v966_v31, %v902_v52  ;;  %v1412_v54 = vadd.f32 %v1411_v32, %v1410_v13 }
 0x188   : > { %v1040_v59 = vmul.f32 %v1019_v3, %v967_v53  ;;  %v1064_v61 = vmul.f32 %v967_v53, %v967_v53  ;;  %v905_v0 = vadd.f32 %v1412_v54, %v1959_v5  ;;  %v1074_v5 = vmul.f32 %v1066_v11, %v1029_v6 }
 0x18a   : > { %v1072_v8 = vmul.f32 %v1064_v61, %v1019_v3  ;;  %v970_v9 = vadd.f32 %v969_v1, %v905_v0  ;;  %v1047_v14 = vadd.f32 %v1046_v4, %v1040_v59 }
 0x18c   : > { %v1041_v15 = vmul.f32 %v1024_v58, %v970_v9  ;;  %v1065_v16 = vmul.f32 %v970_v9, %v970_v9  ;;  %v1365_v17 = vpack.c.bf16 %v970_v9, %v967_v53  ;;  %v1079_v22 = vadd.f32 %v1078_v10, %v1072_v8 }
 0x18e   : > { %v1048_v25 = vadd.f32 %v1047_v14, %v1041_v15  ;;  %v1073_v26 = vmul.f32 %v1065_v16, %v1024_v58  ;;  %1377 = vst [vmem:[%s1968_s11 + $0x10] sm:$0xff] %v1365_v17  }
 0x190   : > { %v1049_v12 = vadd.f32 %v1048_v25, %v1042_v19  ;;  %v1080_v2 = vadd.f32 %v1079_v22, %v1073_v26 }
 0x192   : > { %v1050_v48 = vadd.f32 %v1049_v12, %v1043_v27  ;;  %v1081_v28 = vadd.f32 %v1080_v2, %v1074_v5 }
 0x194   : > { %v1051_v29 = vrot.slane %v1050_v48, 4  ;;  %v1082_v30 = vadd.f32 %v1081_v28, %v1075_v18 }
 0x196   : > { %v1052_v31 = vadd.f32 %v1051_v29, %v1050_v48  ;;  %v1083_v33 = vrot.slane %v1082_v30, 4 }
 0x198   : > { %v1053_v36 = vrot.slane %v1052_v31, 2  ;;  %v1084_v37 = vadd.f32 %v1083_v33, %v1082_v30 }
 0x19a   : > { %v1054_v35 = vadd.f32 %v1053_v36, %v1052_v31  ;;  %v1085_v38 = vrot.slane %v1084_v37, 2 }
 0x19c   : > { %v1055_v39 = vrot.slane %v1054_v35, 1  ;;  %v1086_v41 = vadd.f32 %v1085_v38, %v1084_v37 }
 0x19e   : > { %v1056_v63 = vadd.f32 %v1055_v39, %v1054_v35  ;;  %v1087_v44 = vrot.slane %v1086_v41, 1 }
 0x1a0   : > { %v1057_v51 = vadd.f32 %v1056_v63, %v995_v62  ;;  %v1088_v49 = vadd.f32 %v1087_v44, %v1086_v41 }
 0x1a2   : > { %1058 = vst [vmem:[%s1946_s20] sm:$0x1] %v1057_v51  ;;  %v1089_v42 = vadd.f32 %v1088_v49, %v1059_v45 }
 0x1a4   : > { %1090 = vst [vmem:[%s1952_s23] sm:$0x1] %v1089_v42 }
 0x1a5 PF: > { %s19_s29 = sadd.s32 1, %s1525_s29   ;;  %s2001_s27 = smov %s1521_s28 }
 0x1a6   : > { %p16_p5 = scmp.ge.s32.totalorder %s19_s29, 4   ;;  %s2002_s28 = smov %s2004_s30 }
 0x1a8   :  { %18 = sbr.rel (!%p16_p5) target bundleno = 2 (0x2), region = 106 }

// kernel: tile.28
= control target key start
LH: loop header
LB: loop body
LE: loop exit
PB: predicated region body
PF: predicated region fallthrough
CT: control target
= control target key end

     0   :  { %s22_s0 = inlined_call_operand.vmem [shape: f32[3], index: 0, kind: input, shape index: {}]   ;;  %s23_s1 = inlined_call_operand.vmem [shape: f32[4,3], index: 1, kind: output, shape index: {}]  }
   0x1   :  { %v4_v0 = vld [vmem:[%s22_s0] ss:$0 sm:$0xff] }
   0x2   :  { %5 = vst [vmem:[%s23_s1] sm:$0xf] %v4_v0 }

// kernel: tile.29
= control target key start
LH: loop header
LB: loop body
LE: loop exit
PB: predicated region body
PF: predicated region fallthrough
CT: control target
= control target key end

     0   :  { %vm8_vm0 = vcmask 23552   ;;  %s40_s8 = smov 3   ;;  %s41_s9 = smov 6   ;;  %vm14_vm1 = vcmask 97352   ;;  %vm20_vm2 = vcmask 72752   ;;  %vm26_vm3 = vcmask 48152   ;;  %s58_s0 = inlined_call_operand.vmem [shape: f32[4,3], index: 0, kind: input, shape index: {}]   ;;  %s59_s1 = inlined_call_operand.vmem [shape: f32[1,12], index: 1, kind: output, shape index: {}]  }
   0x1   :  { %v5_v0 = vld [vmem:[%s58_s0] sm:$0xf]  ;;  %s39_s0 = smov 9  }
   0x2   :  { %6 = vst [vmem:[#allocation1] sm:$0xf] %v5_v0 }
   0x9   :  { %v11_v1 = vld [vmem:[#allocation1 + $0x3] sm:$0x1]   ;;  %v23_v2 = vld [vmem:[#allocation1 + $0x1] sm:$0x1]   ;;  %v7_v3 = vld [vmem:[#allocation1] sm:$0x1]  }
   0xa   :  { %12 = vrot.lane.b32.xlu0 %v11_v1, %s39_s0  ;;  %24 = vrot.lane.b32.xlu1 %v23_v2, %s40_s8  ;;  %v17_v4 = vld [vmem:[#allocation1 + $0x2] sm:$0x1]   ;;  %9 = vst.msk [vmem:[#allocation0] sm:$0x1] %vm8_vm0, %v7_v3  }
   0xe   :  { %18 = vrot.lane.b32.xlu0 %v17_v4, %s41_s9 }
  0x7c   :  { %v13_v5 = vpop.permute.xlu0 %12   ;;  %v25_v6 = vpop.permute.xlu1 %24  }
  0x7d   :  { %15 = vst.msk [vmem:[#allocation0] sm:$0x1] %vm14_vm1, %v13_v5  }
  0x80   :  { %v19_v7 = vpop.permute.xlu0 %18  }
  0x81   :  { %21 = vst.msk [vmem:[#allocation0] sm:$0x1] %vm20_vm2, %v19_v7  }
  0x82   :  { %27 = vst.msk [vmem:[#allocation0] sm:$0x1] %vm26_vm3, %v25_v6  }
  0x89   :  { %v32_v8 = vld [vmem:[#allocation0] sm:$0x1] }
  0x8a   :  { %35 = vst [vmem:[%s59_s1] sm:$0x1] %v32_v8 }

// kernel: unet_forward.11
= control target key start
LH: loop header
LB: loop body
LE: loop exit
PB: predicated region body
PF: predicated region fallthrough
CT: control target
= control target key end

     0   :  { %s1404_s18 = smov 0   ;;  %s1406_s19 = smov 0   ;;  %s2153_s0 = inlined_call_operand.vmem [shape: bf16[2,152,16], index: 0, kind: input, shape index: {}]   ;;  %s2154_s1 = inlined_call_operand.vmem [shape: bf16[144,128], index: 1, kind: input, shape index: {}]   ;;  %s2155_s2 = inlined_call_operand.vmem [shape: f32[1,16], index: 2, kind: input, shape index: {}]   ;;  %s2156_s3 = inlined_call_operand.vmem [shape: f32[1,16], index: 3, kind: input, shape index: {}]   ;;  %s2157_s4 = inlined_call_operand.vmem [shape: f32[1,128], index: 4, kind: input, shape index: {}]   ;;  %s2158_s5 = inlined_call_operand.vmem [shape: f32[2,128,128], index: 5, kind: output, shape index: {}]  }
   0x1   :  { %s1408_s20 = smov 0  }
   0x2 LB: > { %s27_s21 = sadd.s32 1, %s1360_s19  ;;  %p1179_p0 = scmp.ge.s32.totalorder %s1364_s20, 1  ;;  %s1364_s20 = sphi %s1408_s20, %s15_s20   ;;  %s1360_s19 = sphi %s1406_s19, %s2160_s19   ;;  %s1356_s18 = sphi %s1404_s18, %s2159_s18  }
   0x3   : > { %p29_p1 = scmp.ge.s32.totalorder %s27_s21, 2  ;;  %p201_p2 = scmp.lt.s32.totalorder %s1364_s20, 3 }
   0x5   : > { %s2162_s21 = smov (%p29_p1, %s27_s21), 0  ;;  %p202_p3 = pnand %p1179_p0, %p201_p2 }
   0x6   : > { %p233_p4 = scmp.lt.s32.totalorder (!%p202_p3), %s1356_s18, 1  ;;  %s1367_s17 = smov (!%p202_p3), 48  }
   0x7   : > { %205 = sbr.rel (%p202_p3) target bundleno = 470 (0x1d6), region = 40  ;;  %s1368_s22 = smov (!%p202_p3), 32  }
   0x8   : > { %s1369_s25 = smov (!%p202_p3), 80   ;;  %s1370_s28 = smov (!%p202_p3), 96  }
   0x9   : > { %s1371_s7 = smov (!%p202_p3), 16   ;;  %s1372_s8 = smov (!%p202_p3), 64  }
   0xa   : > { %s1373_s9 = smov (!%p202_p3), 112  }
   0xc   : > { %s2164_s18 = smov (!%p233_p4, %s1356_s18), 1  ;;  %v1366_v0 = vmov 0   ;;  %v1301_v1 = vld [vmem:[%s2154_s1 + $0x38] sm:$0xff]   ;;  %v1302_v2 = vld [vmem:[%s2154_s1 + $0x30] sm:$0xff]   ;;  %v1443_v3 = vld [vmem:[%s2155_s2] ss:$0 sm:$0xff] }
   0xd   : > { %963 = vmatprep.subr.bf16.mxu0 %v1366_v0  ;;  %1250 = vmatprep.subr.bf16.mxu1 %v1366_v0  ;;  %s1268_s24 = smul.u32 76, %s2164_s18  ;;  %v1303_v12 = vld [vmem:[%s2154_s1 + $0x28] sm:$0xff]   ;;  %v1455_v13 = vld [vmem:[%s2156_s3] ss:$0 sm:$0xff]  ;;  %vm501_vm0 = vcmask 1042432   ;;  %vm467_vm1 = vcmask 1046528  }
   0xe   : > { %964 = vmatpush1.bf16.msra.mxu0 %v1301_v1  ;;  %1259 = vmatpush1.bf16.msra.mxu1 %v1301_v1  ;;  %v1304_v27 = vld [vmem:[%s2154_s1 + $0x20] sm:$0xff]   ;;  %v1305_v49 = vld [vmem:[%s2154_s1 + $0x18] sm:$0xff]   ;;  %vm589_vm2 = vcmask 1041408   ;;  %vm373_vm3 = vsmask.f32 7424  ;;  %vm624_vm4 = vcmask 1045504  }
   0xf   : > { %965 = vmatprep.subr.bf16.mxu0 %v1366_v0  ;;  %1251 = vmatprep.subr.bf16.mxu1 %v1366_v0  ;;  %s1438_s29 = scalar_lea.vmem %s2153_s0, %s1268_s24  ;;  %vm535_vm5 = vsmask.f32 2304  ;;  %vm658_vm6 = vsmask.f32 5376  ;;  %vm715_vm7 = vcmask 1044480   ;;  %vm733_vm8 = vcmask 130048  }
  0x10   : > { %v1207_v4 = vld [vmem:[%s1438_s29] sm:$0xff]   ;;  %v1242_v5 = vld [vmem:[%s1438_s29 + $0x8] sm:$0xff]   ;;  %v1243_v26 = vld [vmem:[%s1438_s29 + $0x10] sm:$0xff]   ;;  %vm750_vm9 = vcmask 261120   ;;  %vm767_vm10 = vcmask 392192   ;;  %vm784_vm11 = vcmask 523264  }
  0x11   : > { %v1245_v6 = vld [vmem:[%s1438_s29 + $0x20] sm:$0xff]   ;;  %v1208_v7 = vunpack.c.l.bf16 %v1207_v4  ;;  %v1209_v8 = vunpack.c.h.bf16 %v1207_v4  ;;  %v1212_v9 = vunpack.c.l.bf16 %v1242_v5  ;;  %v1213_v10 = vunpack.c.h.bf16 %v1242_v5  ;;  %v1246_v11 = vld [vmem:[%s1438_s29 + $0x28] sm:$0xff]   ;;  %v1476_v32 = vld [vmem:[%s1438_s29 + $0x30] sm:$0xff]   ;;  %s1205_s11 = sshll.u32 %s2164_s18, 7 }
  0x12   : > { %966 = vmatpush1.bf16.msra.mxu0 %v1302_v2  ;;  %1260 = vmatpush1.bf16.msra.mxu1 %v1302_v2  ;;  %v1224_v14 = vunpack.c.l.bf16 %v1245_v6  ;;  %v1225_v15 = vunpack.c.h.bf16 %v1245_v6  ;;  %v1228_v16 = vunpack.c.l.bf16 %v1246_v11  ;;  %v1229_v17 = vunpack.c.h.bf16 %v1246_v11  ;;  %v1306_v2 = vld [vmem:[%s2154_s1 + $0x10] sm:$0xff]   ;;  %s2114_s14 = scalar_lea.vmem %s2158_s5, %s1205_s11 }
  0x13   : > { %967 = vmatprep.subr.bf16.mxu0 %v1366_v0  ;;  %1252 = vmatprep.subr.bf16.mxu1 %v1366_v0  ;;  %v299_v18 = vmul.f32 %v1208_v7, %v1443_v3  ;;  %v300_v19 = vmul.f32 %v1209_v8, %v1443_v3  ;;  %v301_v20 = vmul.f32 %v1212_v9, %v1443_v3  ;;  %v1216_v47 = vunpack.c.l.bf16 %v1243_v26 }
  0x14   : > { %v302_v21 = vmul.f32 %v1213_v10, %v1443_v3  ;;  %v307_v22 = vmul.f32 %v1224_v14, %v1443_v3  ;;  %v308_v23 = vmul.f32 %v1225_v15, %v1443_v3  ;;  %v309_v24 = vmul.f32 %v1228_v16, %v1443_v3 }
  0x15   : > { %v310_v25 = vmul.f32 %v1229_v17, %v1443_v3  ;;  %v325_v28 = vadd.f32 %v1455_v13, %v299_v18  ;;  %v326_v29 = vadd.f32 %v1455_v13, %v300_v19  ;;  %v327_v30 = vadd.f32 %v1455_v13, %v301_v20 }
  0x16   : > { %v328_v31 = vadd.f32 %v1455_v13, %v302_v21  ;;  %968 = vmatpush1.bf16.msra.mxu0 %v1303_v12  ;;  %v333_v33 = vadd.f32 %v1455_v13, %v307_v22  ;;  %v334_v34 = vadd.f32 %v1455_v13, %v308_v23  ;;  %v335_v35 = vadd.f32 %v1455_v13, %v309_v24  ;;  %v1307_v21 = vld [vmem:[%s2154_s1 + $0x8] sm:$0xff]  }
  0x17   : > { %v336_v36 = vadd.f32 %v1455_v13, %v310_v25  ;;  %1261 = vmatpush1.bf16.msra.mxu1 %v1303_v12  ;;  %v344_v37 = vmax.f32 %v325_v28, 0.0  ;;  %v345_v38 = vmax.f32 %v326_v29, 0.0  ;;  %v346_v39 = vmax.f32 %v327_v30, 0.0  ;;  %969 = vmatprep.subr.bf16.mxu0 %v1366_v0 }
  0x18   : > { %v347_v40 = vmax.f32 %v328_v31, 0.0  ;;  %1253 = vmatprep.subr.bf16.mxu1 %v1366_v0  ;;  %v352_v41 = vmax.f32 %v333_v33, 0.0  ;;  %v353_v42 = vmax.f32 %v334_v34, 0.0  ;;  %v354_v43 = vmax.f32 %v335_v35, 0.0 }
  0x19   : > { %v355_v44 = vmax.f32 %v336_v36, 0.0  ;;  %v1484_v45 = vpack.c.bf16 %v345_v38, %v344_v37  ;;  %v1217_v48 = vunpack.c.h.bf16 %v1243_v26  ;;  %v1232_v52 = vunpack.c.l.bf16 %v1476_v32  ;;  %v1308_v38 = vld [vmem:[%s2154_s1] sm:$0xff]  }
  0x1a   : > { %v1486_v46 = vpack.c.bf16 %v347_v40, %v346_v39  ;;  %970 = vmatpush1.bf16.msra.mxu0 %v1304_v27  ;;  %v1491_v50 = vpack.c.bf16 %v353_v42, %v352_v41  ;;  %v303_v63 = vmul.f32 %v1216_v47, %v1443_v3  ;;  %v1233_v7 = vunpack.c.h.bf16 %v1476_v32 }
  0x1b   : > { %v1493_v51 = vpack.c.bf16 %v355_v44, %v354_v43  ;;  %1262 = vmatpush1.bf16.msra.mxu1 %v1304_v27  ;;  %971 = vmatprep.subr.bf16.mxu0 %v1366_v0  ;;  %v502_v53 = vrot.slane %v1484_v45, 5  ;;  %v468_v55 = vrot.slane %v1484_v45, 1  ;;  %v590_v57 = vrot.slane %v1484_v45, 6 }
  0x1c   : > { %v503_v54 = vrot.slane %v1486_v46, 5  ;;  %v469_v56 = vrot.slane %v1486_v46, 1  ;;  %1254 = vmatprep.subr.bf16.mxu1 %v1366_v0  ;;  %v591_v58 = vrot.slane %v1486_v46, 6  ;;  %v475_v59 = vrot.slane %v1491_v50, 1 }
  0x1d   : > { %v477_v60 = vrot.slane %v1493_v51, 1  ;;  %v304_v1 = vmul.f32 %v1217_v48, %v1443_v3  ;;  %v509_v6 = vrot.slane %v1491_v50, 5  ;;  %v329_v8 = vadd.f32 %v1455_v13, %v303_v63 }
  0x1e   : > { %v504_v61 = vsel %vm501_vm0, %v502_v53, %v503_v54  ;;  %v470_v62 = vsel %vm467_vm1, %v468_v55, %v469_v56  ;;  %972 = vmatpush1.bf16.msra.mxu0 %v1305_v49  ;;  %v592_v4 = vsel %vm589_vm2, %v590_v57, %v591_v58  ;;  %v511_v10 = vrot.slane %v1493_v51, 5 }
  0x1f   : > { %519 = vrot.lane.b32.xlu0 %v504_v61, %s1367_s17  ;;  %485 = vrot.lane.b32.xlu1 %v470_v62, %s1368_s22  ;;  %v478_v5 = vsel %vm467_vm1, %v475_v59, %v477_v60  ;;  %v330_v9 = vadd.f32 %v1455_v13, %v304_v1  ;;  %v597_v11 = vrot.slane %v1491_v50, 6  ;;  %v599_v12 = vrot.slane %v1493_v51, 6  ;;  %v1309_v1 = vld [vmem:[%s2154_s1 + $0x40] sm:$0xff]  }
  0x20   : > { %1263 = vmatpush1.bf16.msra.mxu1 %v1305_v49  ;;  %973 = vmatprep.subr.bf16.mxu0 %v1366_v0  ;;  %v375_v14 = vshrl.u32 %v1484_v45, 16  ;;  %v377_v15 = vshll.u32 %v1484_v45, 16  ;;  %v1538_v16 = vshll.u32 %v1486_v46, 16  ;;  %v348_v17 = vmax.f32 %v329_v8, 0.0 }
  0x21   : > { %1255 = vmatprep.subr.bf16.mxu1 %v1366_v0  ;;  %v349_v18 = vmax.f32 %v330_v9, 0.0  ;;  %v625_v19 = vrot.slane %v1486_v46, 2  ;;  %v311_v20 = vmul.f32 %v1232_v52, %v1443_v3  ;;  %v512_v22 = vsel %vm501_vm0, %v509_v6, %v511_v10 }
  0x22   : > { %974 = vmatpush1.bf16.msra.mxu0 %v1306_v2  ;;  %v379_v23 = vrot.slane %v377_v15, 1  ;;  %v384_v24 = vrot.slane %v1538_v16, 1  ;;  %v312_v25 = vmul.f32 %v1233_v7, %v1443_v3  ;;  %v600_v27 = vsel %vm589_vm2, %v597_v11, %v599_v12 }
  0x23   : > { %607 = vrot.lane.b32.xlu0 %v592_v4, %s1369_s25  ;;  %493 = vrot.lane.b32.xlu1 %v478_v5, %s1368_s22  ;;  %v1555_v26 = vpack.c.bf16 %v349_v18, %v348_v17  ;;  %v337_v28 = vadd.f32 %v1455_v13, %v311_v20  ;;  %v1564_v29 = vshll.u32 %v1491_v50, 16  ;;  %v1569_v32 = vshrl.u32 %v1491_v50, 16 }
  0x24   : > { %1264 = vmatpush1.bf16.msra.mxu1 %v1306_v2  ;;  %975 = vmatprep.subr.bf16.mxu0 %v1366_v0  ;;  %v380_v30 = vor.u32 %v379_v23, %v375_v14  ;;  %v338_v31 = vadd.f32 %v1455_v13, %v312_v25  ;;  %v1572_v33 = vshll.u32 %v1493_v51, 16  ;;  %v1578_v37 = vshrl.u32 %v1493_v51, 16 }
  0x25   : > { %1256 = vmatprep.subr.bf16.mxu1 %v1366_v0  ;;  %v626_v34 = vrot.slane %v1555_v26, 2  ;;  %v356_v35 = vmax.f32 %v337_v28, 0.0  ;;  %v408_v36 = vrot.slane %v1564_v29, 1  ;;  %v632_v41 = vrot.slane %v1493_v51, 2 }
  0x26   : > { %976 = vmatpush1.bf16.msra.mxu0 %v1307_v21  ;;  %v385_v39 = vsel %vm373_vm3, %v380_v30, %v384_v24  ;;  %v357_v40 = vmax.f32 %v338_v31, 0.0  ;;  %v551_v42 = vrot.slane %v1569_v32, 5  ;;  %v416_v44 = vrot.slane %v1572_v33, 1 }
  0x27   : > { %527 = vrot.lane.b32.xlu1 %v512_v22, %s1367_s17  ;;  %977 = vmatprep.subr.bf16.mxu0 %v1366_v0  ;;  %v627_v43 = vsel %vm624_vm4, %v625_v19, %v626_v34  ;;  %v552_v47 = vrot.slane %v1564_v29, 6  ;;  %v555_v48 = vrot.slane %v1578_v37, 5  ;;  %v556_v52 = vrot.slane %v1572_v33, 6 }
  0x28   : > { %1265 = vmatpush1.bf16.msra.mxu1 %v1307_v21  ;;  %642 = vrot.lane.b32.xlu0 %v627_v43, %s1370_s28  ;;  %v1597_v49 = vpack.c.bf16 %v357_v40, %v356_v35  ;;  %v386_v53 = vshrl.u32 %v1486_v46, 16  ;;  %v536_v55 = vrot.slane %v375_v14, 5  ;;  %v412_v57 = vor.u32 %v1569_v32, %v408_v36 }
  0x29   : > { %1257 = vmatprep.subr.bf16.mxu1 %v1366_v0  ;;  %v1605_v61 = vor.u32 %v552_v47, %v551_v42  ;;  %v537_v62 = vrot.slane %v377_v15, 6  ;;  %v540_v63 = vrot.slane %v1538_v16, 6  ;;  %v1613_v4 = vor.u32 %v556_v52, %v555_v48  ;;  %v1248_v48 = vld [vmem:[%s1438_s29 + $0x38] sm:$0xff]  }
  0x2a   : > { %978 = vmatpush1.bf16.msra.mxu0 %v1308_v38  ;;  %v634_v2 = vrot.slane %v1597_v49, 2  ;;  %v539_v5 = vrot.slane %v386_v53, 5  ;;  %v1616_v7 = vshll.u32 %v1597_v49, 16  ;;  %v1620_v8 = vshrl.u32 %v1597_v49, 16 }
  0x2b   : > { %615 = vrot.lane.b32.xlu1 %v600_v27, %s1369_s25  ;;  %993 = vmatprep.subr.bf16.mxu0 %v1366_v0  ;;  %v674_v9 = vrot.slane %v1578_v37, 2  ;;  %v675_v14 = vrot.slane %v1572_v33, 3  ;;  %v538_v17 = vor.u32 %v537_v62, %v536_v55  ;;  %v417_v20 = vsel %vm373_vm3, %v412_v57, %v416_v44  ;;  %v1244_v57 = vld [vmem:[%s1438_s29 + $0x18] sm:$0xff]  }
  0x2c   : > { %1266 = vmatpush1.bf16.msra.mxu1 %v1308_v38  ;;  %442 = vrot.lane.b32.xlu0 %v385_v39, %s1371_s7  ;;  %v635_v15 = vsel %vm624_vm4, %v632_v41, %v634_v2  ;;  %v1630_v18 = vor.u32 %v540_v63, %v539_v5  ;;  %v679_v19 = vrot.slane %v1616_v7, 3  ;;  %v678_v21 = vrot.slane %v1620_v8, 2  ;;  %v1249_v5 = vld [vmem:[%s1438_s29 + $0x40] sm:$0xff]  }
  0x2d   : > { %1258 = vmatprep.subr.bf16.mxu1 %v1366_v0  ;;  %v1637_v22 = vshll.u32 %v1555_v26, 16  ;;  %v1640_v23 = vshrl.u32 %v1555_v26, 16  ;;  %v558_v25 = vsel %vm535_vm5, %v1605_v61, %v1613_v4  ;;  %v659_v27 = vrot.slane %v386_v53, 2 }
  0x2e   : > { %994 = vmatpush2.bf16.msra.mxu0 %v1309_v1  ;;  %v660_v0 = vrot.slane %v1538_v16, 3  ;;  %v1647_v28 = vor.u32 %v675_v14, %v674_v9  ;;  %v1649_v30 = vor.u32 %v679_v19, %v678_v21  ;;  %v542_v35 = vsel %vm535_vm5, %v538_v17, %v1630_v18 }
  0x2f   : > { %650 = vrot.lane.b32.xlu1 %v635_v15, %s1370_s28  ;;  %v662_v31 = vrot.slane %v1640_v23, 2  ;;  %v663_v33 = vrot.slane %v1637_v22, 3  ;;  %v420_v40 = vor.u32 %v1578_v37, %v416_v44  ;;  %v424_v42 = vrot.slane %v1616_v7, 1 }
  0x30   : > { %1267 = vmatpush2.bf16.msra.mxu1 %v1309_v1  ;;  %450 = vrot.lane.b32.xlu0 %v417_v20, %s1371_s7  ;;  %v661_v38 = vor.u32 %v660_v0, %v659_v27  ;;  %v388_v43 = vor.u32 %v386_v53, %v384_v24  ;;  %v392_v47 = vrot.slane %v1637_v22, 1  ;;  %v681_v52 = vsel %vm658_vm6, %v1647_v28, %v1649_v30 }
  0x31   : > { %v1656_v39 = vor.u32 %v663_v33, %v662_v31  ;;  %v479_v55 = vrot.slane %v1597_v49, 1  ;;  %v425_v16 = vsel %vm373_vm3, %v420_v40, %v424_v42  ;;  %v471_v24 = vrot.slane %v1555_v26, 1 }
  0x32   : > { %v1236_v44 = vunpack.c.l.bf16 %v1248_v48  ;;  %v393_v53 = vsel %vm373_vm3, %v388_v43, %v392_v47  ;;  %v1237_v62 = vunpack.c.h.bf16 %v1248_v48  ;;  %v1220_v63 = vunpack.c.l.bf16 %v1244_v57  ;;  %v272_v43 = vld [vmem:[%s1438_s29 + $0x48] sm:$0xf] }
  0x33   : > { %581 = vrot.lane.b32.xlu1 %v558_v25, %s1372_s8  ;;  %v665_v37 = vsel %vm658_vm6, %v661_v38, %v1656_v39  ;;  %v1221_v1 = vunpack.c.h.bf16 %v1244_v57  ;;  %v480_v9 = vsel %vm467_vm1, %v477_v60, %v479_v55  ;;  %v513_v14 = vrot.slane %v1597_v49, 5 }
  0x34   : > { %573 = vrot.lane.b32.xlu0 %v542_v35, %s1372_s8  ;;  %v505_v15 = vrot.slane %v1555_v26, 5  ;;  %v313_v17 = vmul.f32 %v1236_v44, %v1443_v3  ;;  %v559_v19 = vrot.slane %v1620_v8, 5  ;;  %v314_v20 = vmul.f32 %v1237_v62, %v1443_v3 }
  0x35   : > { %v305_v21 = vmul.f32 %v1220_v63, %v1443_v3  ;;  %v306_v25 = vmul.f32 %v1221_v1, %v1443_v3  ;;  %v560_v27 = vrot.slane %v1616_v7, 6  ;;  %v543_v60 = vrot.slane %v1640_v23, 5 }
  0x36   : > { %v339_v0 = vadd.f32 %v1455_v13, %v313_v17  ;;  %v1240_v31 = vunpack.c.l.bf16 %v1249_v5  ;;  %v340_v33 = vadd.f32 %v1455_v13, %v314_v20  ;;  %v1241_v40 = vunpack.c.h.bf16 %v1249_v5 }
  0x37   : > { %707 = vrot.lane.b32.xlu1 %v681_v52, %s1373_s9  ;;  %v331_v35 = vadd.f32 %v1455_v13, %v305_v21  ;;  %v332_v38 = vadd.f32 %v1455_v13, %v306_v25  ;;  %v544_v48 = vrot.slane %v1637_v22, 6  ;;  %v472_v1 = vsel %vm467_vm1, %v469_v56, %v471_v24 }
  0x38   : > { %699 = vrot.lane.b32.xlu0 %v665_v37, %s1373_s9  ;;  %v358_v52 = vmax.f32 %v339_v0, 0.0  ;;  %v315_v57 = vmul.f32 %v1240_v31, %v1443_v3  ;;  %v630_v37 = vrot.slane %v1491_v50, 2  ;;  %v359_v44 = vmax.f32 %v340_v33, 0.0 }
  0x39   : > { %v350_v62 = vmax.f32 %v331_v35, 0.0  ;;  %v316_v63 = vmul.f32 %v1241_v40, %v1443_v3  ;;  %v291_v17 = vunpack.c.l.bf16 %v272_v43  ;;  %v514_v56 = vsel %vm501_vm0, %v511_v10, %v513_v14 }
  0x3a   : > { %v341_v5 = vadd.f32 %v1455_v13, %v315_v57  ;;  %v1722_v20 = vpack.c.bf16 %v359_v44, %v358_v52  ;;  %v1732_v0 = vor.u32 %v560_v27, %v559_v19  ;;  %v601_v31 = vrot.slane %v1597_v49, 6 }
  0x3b   : > { %452 = vrot.lane.b32.xlu1 %v425_v16, %s1371_s7  ;;  %v351_v16 = vmax.f32 %v332_v38, 0.0  ;;  %v342_v25 = vadd.f32 %v1455_v13, %v316_v63  ;;  %v593_v33 = vrot.slane %v1555_v26, 6  ;;  %v506_v10 = vsel %vm501_vm0, %v503_v54, %v505_v15 }
  0x3c   : > { %444 = vrot.lane.b32.xlu0 %v393_v53, %s1371_s7  ;;  %v1719_v53 = vsel %vm624_vm4, %v630_v37, %v632_v41  ;;  %v1736_v41 = vmul.f32 %v1443_v3, %v291_v17  ;;  %v1743_v35 = vshll.u32 %v1722_v20, 16  ;;  %v1746_v38 = vshrl.u32 %v1722_v20, 16 }
  0x3d   : > { %v1724_v21 = vpack.c.bf16 %v351_v16, %v350_v62  ;;  %v670_v40 = vrot.slane %v1569_v32, 2  ;;  %v671_v43 = vrot.slane %v1564_v29, 3  ;;  %v636_v54 = vrot.slane %v1722_v20, 2 }
  0x3e   : > { %v682_v27 = vrot.slane %v1746_v38, 2  ;;  %v602_v32 = vsel %vm589_vm2, %v599_v12, %v601_v31  ;;  %v396_v12 = vor.u32 %v1640_v23, %v392_v47  ;;  %v481_v63 = vrot.slane %v1722_v20, 1 }
  0x3f   : > { %495 = vrot.lane.b32.xlu1 %v480_v9, %s1368_s22  ;;  %v1739_v9 = vor.u32 %v544_v48, %v543_v60  ;;  %v1754_v3 = vshll.u32 %v1724_v21, 16  ;;  %v402_v19 = vshrl.u32 %v1724_v21, 16  ;;  %v683_v60 = vrot.slane %v1743_v35, 3 }
  0x40   : > { %487 = vrot.lane.b32.xlu0 %v472_v1, %s1368_s22  ;;  %v562_v48 = vsel %vm535_vm5, %v1613_v4, %v1732_v0  ;;  %v594_v4 = vsel %vm589_vm2, %v591_v58, %v593_v33  ;;  %v628_v57 = vrot.slane %v1724_v21, 2  ;;  %v360_v58 = vmax.f32 %v341_v5, 0.0 }
  0x41   : > { %v546_v52 = vsel %vm535_vm5, %v1630_v18, %v1739_v9  ;;  %v1781_v44 = vor.u32 %v683_v60, %v682_v27  ;;  %v666_v62 = vrot.slane %v402_v19, 2  ;;  %v667_v16 = vrot.slane %v1754_v3, 3 }
  0x42   : > { %v428_v18 = vor.u32 %v1620_v8, %v424_v42  ;;  %v1792_v1 = vor.u32 %v671_v43, %v670_v40  ;;  %v637_v17 = vsel %vm624_vm4, %v634_v2, %v636_v54  ;;  %v547_v7 = vrot.slane %v402_v19, 5 }
  0x43   : > { %529 = vrot.lane.b32.xlu1 %v514_v56, %s1367_s17  ;;  %v473_v56 = vrot.slane %v1724_v21, 1  ;;  %v548_v8 = vrot.slane %v1754_v3, 6  ;;  %v629_v22 = vsel %vm624_vm4, %v626_v34, %v628_v57  ;;  %v432_v23 = vrot.slane %v1743_v35, 1 }
  0x44   : > { %521 = vrot.lane.b32.xlu0 %v506_v10, %s1367_s17  ;;  %v400_v42 = vrot.slane %v1754_v3, 1  ;;  %v361_v47 = vmax.f32 %v342_v25, 0.0  ;;  %v685_v2 = vsel %vm658_vm6, %v1649_v30, %v1781_v44  ;;  %v1810_v5 = vor.u32 %v667_v16, %v666_v62 }
  0x45   : > { %v515_v10 = vrot.slane %v1722_v20, 5  ;;  %v507_v27 = vrot.slane %v1724_v21, 5  ;;  %v563_v60 = vrot.slane %v1746_v38, 5  ;;  %v564_v34 = vrot.slane %v1743_v35, 6 }
  0x46   : > { %v1817_v40 = vor.u32 %v548_v8, %v547_v7  ;;  %v1819_v3 = vpack.c.bf16 %v361_v47, %v360_v58  ;;  %v436_v25 = vor.u32 %v1746_v38, %v432_v23  ;;  %v404_v43 = vor.u32 %v402_v19, %v400_v42 }
  0x47   : > { %583 = vrot.lane.b32.xlu1 %v562_v48, %s1372_s8  ;;  %v1827_v30 = vsel %vm467_vm1, %v473_v56, %v475_v59  ;;  %v1834_v35 = vsel %vm501_vm0, %v507_v27, %v509_v6  ;;  %v603_v62 = vrot.slane %v1722_v20, 6  ;;  %v595_v16 = vrot.slane %v1724_v21, 6 }
  0x48   : > { %575 = vrot.lane.b32.xlu0 %v546_v52, %s1372_s8  ;;  %v638_v48 = vrot.slane %v1819_v3, 2  ;;  %v438_v38 = vshll.u32 %v1819_v3, 16  ;;  %v567_v19 = vshrl.u32 %v1819_v3, 16  ;;  %v483_v52 = vrot.slane %v1819_v3, 1 }
  0x49   : > { %v1844_v59 = vsel %vm373_vm3, %v404_v43, %v408_v36  ;;  %v1850_v6 = vsel %vm535_vm5, %v1817_v40, %v1605_v61  ;;  %v1886_v43 = vsel %vm589_vm2, %v595_v16, %v597_v11  ;;  %vm801_vm12 = vcmask 654336  }
  0x4a   : > { %v1857_v29 = vsel %vm624_vm4, %v636_v54, %v638_v48  ;;  %v440_v36 = vrot.slane %v438_v38, 1  ;;  %v1862_v58 = vsel %vm467_vm1, %v481_v63, %v483_v52  ;;  %v569_v7 = vrot.slane %v567_v19, 5 }
  0x4b   : > { %617 = vrot.lane.b32.xlu1 %v602_v32, %s1369_s25  ;;  %v517_v32 = vrot.slane %v1819_v3, 5  ;;  %v669_v54 = vsel %vm658_vm6, %v1656_v39, %v1810_v5  ;;  %v343_v39 = vadd.f32 %v1455_v13, %v1736_v41  ;;  %v401_v13 = vsel %vm373_vm3, %v396_v12, %v400_v42 }
  0x4c   : > { %609 = vrot.lane.b32.xlu0 %v594_v4, %s1369_s25  ;;  %v605_v4 = vrot.slane %v1819_v3, 6  ;;  %v1874_v8 = vsel %vm373_vm3, %v436_v25, %v440_v36  ;;  %v1893_v25 = vsel %vm658_vm6, %v1792_v1, %v1647_v28  ;;  %v723_v28 = vrot.slane %v1493_v51, 3 }
  0x4d   : > { %v1867_v61 = vsel %vm501_vm0, %v515_v10, %v517_v32  ;;  %v433_v32 = vsel %vm373_vm3, %v428_v18, %v432_v23  ;;  %v362_v11 = vmax.f32 %v343_v39, 0.0  ;;  %v725_v41 = vrot.slane %v1597_v49, 3 }
  0x4e   : > { %v1879_v47 = vsel %vm589_vm2, %v603_v62, %v605_v4  ;;  %v719_v23 = vrot.slane %v1724_v21, 3  ;;  %v727_v36 = vrot.slane %v1722_v20, 3  ;;  %v482_v12 = vsel %vm467_vm1, %v479_v55, %v481_v63 }
  0x4f   : > { %652 = vrot.lane.b32.xlu1 %v637_v17, %s1370_s28  ;;  %v570_v17 = vrot.slane %v438_v38, 6  ;;  %v686_v42 = vrot.slane %v567_v19, 2  ;;  %v474_v63 = vsel %vm467_vm1, %v471_v24, %v473_v56  ;;  %v508_v24 = vsel %vm501_vm0, %v505_v15, %v507_v27 }
  0x50   : > { %644 = vrot.lane.b32.xlu0 %v629_v22, %s1370_s28  ;;  %v565_v22 = vor.u32 %v564_v34, %v563_v60  ;;  %v716_v60 = vrot.slane %v1486_v46, 3  ;;  %v717_v34 = vrot.slane %v1555_v26, 3  ;;  %v1925_v55 = vsel %vm715_vm7, %v725_v41, %v727_v36 }
  0x51   : > { %v571_v52 = vor.u32 %v570_v17, %v569_v7  ;;  %v687_v7 = vrot.slane %v438_v38, 3  ;;  %v726_v17 = vsel %vm715_vm7, %v723_v28, %v725_v41  ;;  %v604_v15 = vsel %vm589_vm2, %v601_v31, %v603_v62 }
  0x52   : > { %v718_v18 = vsel %vm715_vm7, %v716_v60, %v717_v34  ;;  %1199 = vmatprep.mubr.msk.bf16.mxu1 %vm733_vm8, %v726_v17  ;;  %v516_v60 = vsel %vm501_vm0, %v513_v14, %v515_v10  ;;  %v729_v14 = vrot.slane %v1819_v3, 3  ;;  %v550_v10 = vsel %vm535_vm5, %v1739_v9, %v1817_v40 }
  0x53   : > { %709 = vrot.lane.b32.xlu1 %v685_v2, %s1373_s9  ;;  %v1898_v4 = vsel %vm535_vm5, %v565_v22, %v571_v52  ;;  %v372_v2 = vpack.c.bf16 %v362_v11, %v362_v11  ;;  %1195 = vmatprep.mubr.msk.bf16.mxu0 %vm733_vm8, %v718_v18  ;;  %v631_v9 = vsel %vm624_vm4, %v628_v57, %v630_v37  ;;  %v721_v37 = vrot.slane %v1491_v50, 3 }
  0x54   : > { %701 = vrot.lane.b32.xlu0 %v669_v54, %s1373_s9  ;;  %v1956_v41 = vsel %vm715_vm7, %v727_v36, %v729_v14  ;;  %vm818_vm13 = vcmask 785408   ;;  %vm835_vm14 = vcmask 916480  }
  0x55   : > { %v640_v54 = vrot.slane %v372_v2, 2  ;;  %v691_v52 = vshrl.u32 %v372_v2, 16  ;;  %v694_v39 = vshll.u32 %v372_v2, 16  ;;  %v731_v57 = vrot.slane %v372_v2, 3 }
  0x57   : > { %454 = vrot.lane.b32.xlu1 %v433_v32, %s1371_s7  ;;  %v1921_v32 = vsel %vm715_vm7, %v717_v34, %v719_v23  ;;  %v641_v38 = vsel %vm624_vm4, %v638_v48, %v640_v54  ;;  %v693_v19 = vrot.slane %v691_v52, 2  ;;  %v696_v11 = vrot.slane %v694_v39, 3 }
  0x58   : > { %446 = vrot.lane.b32.xlu0 %v401_v13, %s1371_s7  ;;  %v688_v34 = vor.u32 %v687_v7, %v686_v42  ;;  %v566_v48 = vsel %vm535_vm5, %v1732_v0, %v565_v22  ;;  %v596_v0 = vsel %vm589_vm2, %v593_v33, %v595_v16  ;;  %v673_v33 = vsel %vm658_vm6, %v1810_v5, %v1792_v1 }
  0x59   : > { %v697_v13 = vor.u32 %v696_v11, %v693_v19  ;;  %v2007_v1 = vsel %vm715_vm7, %v729_v14, %v731_v57 }
  0x5a   : > { %v689_v31 = vsel %vm658_vm6, %v1781_v44, %v688_v34  ;;  %v2004_v44 = vsel %vm715_vm7, %v721_v37, %v723_v28 }
  0x5b   : > { %497 = vrot.lane.b32.xlu1 %v482_v12, %s1368_s22  ;;  %v698_v56 = vsel %vm658_vm6, %v688_v34, %v697_v13 }
  0x5c   : > { %489 = vrot.lane.b32.xlu0 %v474_v63, %s1368_s22 }
  0x5f   : > { %531 = vrot.lane.b32.xlu1 %v516_v60, %s1367_s17 }
  0x60   : > { %523 = vrot.lane.b32.xlu0 %v508_v24, %s1367_s17 }
  0x63   : > { %585 = vrot.lane.b32.xlu1 %v566_v48, %s1372_s8 }
  0x64   : > { %577 = vrot.lane.b32.xlu0 %v550_v10, %s1372_s8 }
  0x67   : > { %619 = vrot.lane.b32.xlu1 %v604_v15, %s1369_s25 }
  0x68   : > { %611 = vrot.lane.b32.xlu0 %v596_v0, %s1369_s25 }
  0x6b   : > { %654 = vrot.lane.b32.xlu1 %v1857_v29, %s1370_s28 }
  0x6c   : > { %646 = vrot.lane.b32.xlu0 %v631_v9, %s1370_s28 }
  0x6f   : > { %711 = vrot.lane.b32.xlu1 %v689_v31, %s1373_s9 }
  0x70   : > { %703 = vrot.lane.b32.xlu0 %v673_v33, %s1373_s9 }
  0x73   : > { %456 = vrot.lane.b32.xlu1 %v1874_v8, %s1371_s7 }
  0x74   : > { %448 = vrot.lane.b32.xlu0 %v1844_v59, %s1371_s7 }
  0x77   : > { %499 = vrot.lane.b32.xlu1 %v1862_v58, %s1368_s22 }
  0x78   : > { %491 = vrot.lane.b32.xlu0 %v1827_v30, %s1368_s22 }
  0x7b   : > { %533 = vrot.lane.b32.xlu1 %v1867_v61, %s1367_s17 }
  0x7c   : > { %525 = vrot.lane.b32.xlu0 %v1834_v35, %s1367_s17 }
  0x7f   : > { %587 = vrot.lane.b32.xlu1 %v1898_v4, %s1372_s8 }
  0x80   : > { %579 = vrot.lane.b32.xlu0 %v1850_v6, %s1372_s8 }
  0x83   : > { %621 = vrot.lane.b32.xlu1 %v1879_v47, %s1369_s25 }
  0x84   : > { %613 = vrot.lane.b32.xlu0 %v1886_v43, %s1369_s25 }
  0x87   : > { %656 = vrot.lane.b32.xlu1 %v641_v38, %s1370_s28 }
  0x88   : > { %648 = vrot.lane.b32.xlu0 %v1719_v53, %s1370_s28 }
  0x8b   : > { %713 = vrot.lane.b32.xlu1 %v698_v56, %s1373_s9 }
  0x8c   : > { %705 = vrot.lane.b32.xlu0 %v1893_v25, %s1373_s9 }
  0x91   : > { %v520_v5 = vpop.permute.xlu0 %519  ;;  %v486_v27 = vpop.permute.xlu1 %485 }
  0x95   : > { %v608_v40 = vpop.permute.xlu0 %607  ;;  %v494_v3 = vpop.permute.xlu1 %493 }
  0x99   : > { %v528_v30 = vpop.permute.xlu1 %527 }
  0x9a   : > { %v643_v35 = vpop.permute.xlu0 %642 }
  0x9d   : > { %v616_v59 = vpop.permute.xlu1 %615 }
  0x9e   : > { %v443_v6 = vpop.permute.xlu0 %442 }
  0x9f   : > { %v735_v62 = vsel %vm733_vm8, %v1484_v45, %v443_v6 }
  0xa0   : > { %v752_v53 = vsel %vm750_vm9, %v735_v62, %v486_v27  ;;  %v722_v27 = vsel %vm715_vm7, %v719_v23, %v721_v37 }
  0xa1   : > { %v651_v16 = vpop.permute.xlu1 %650  ;;  %v769_v45 = vsel %vm767_vm10, %v752_v53, %v520_v5 }
  0xa2   : > { %v451_v29 = vpop.permute.xlu0 %450 }
  0xa3   : > { %v743_v58 = vsel %vm733_vm8, %v1491_v50, %v451_v29 }
  0xa4   : > { %v760_v61 = vsel %vm750_vm9, %v743_v58, %v494_v3 }
  0xa5   : > { %v582_v8 = vpop.permute.xlu1 %581  ;;  %v777_v47 = vsel %vm767_vm10, %v760_v61, %v528_v30 }
  0xa6   : > { %v794_v43 = vsel %vm784_vm11, %v777_v47, %v582_v8  ;;  %v574_v22 = vpop.permute.xlu0 %573 }
  0xa7   : > { %v811_v25 = vsel %vm801_vm12, %v794_v43, %v616_v59  ;;  %v786_v4 = vsel %vm784_vm11, %v769_v45, %v574_v22 }
  0xa8   : > { %v803_v28 = vsel %vm801_vm12, %v786_v4, %v608_v40  ;;  %v828_v18 = vsel %vm818_vm13, %v811_v25, %v651_v16 }
  0xa9   : > { %v708_v2 = vpop.permute.xlu1 %707  ;;  %v820_v36 = vsel %vm818_vm13, %v803_v28, %v643_v35 }
  0xaa   : > { %v849_v12 = vsel %vm835_vm14, %v828_v18, %v708_v2  ;;  %v700_v42 = vpop.permute.xlu0 %699 }
  0xab   : > { %1028 = vmatmul.mubr.bf16.vlgmr.msra.gmra.mxu1 %v849_v12  ;;  %v837_v7 = vsel %vm835_vm14, %v820_v36, %v700_v42 }
  0xac   : > { %1200 = vmatprep.mubr.msk.bf16.mxu1 %vm733_vm8, %v1925_v55  ;;  %996 = vmatmul.mubr.bf16.vlgmr.msra.gmra.mxu0 %v837_v7 }
  0xad   : > { %v453_v17 = vpop.permute.xlu1 %452  ;;  %1196 = vmatprep.mubr.msk.bf16.mxu0 %vm733_vm8, %v1921_v32 }
  0xae   : > { %v445_v54 = vpop.permute.xlu0 %444  ;;  %v745_v13 = vsel %vm733_vm8, %v1493_v51, %v453_v17 }
  0xaf   : > { %v737_v56 = vsel %vm733_vm8, %v1486_v46, %v445_v54 }
  0xb1   : > { %v496_v52 = vpop.permute.xlu1 %495 }
  0xb2   : > { %v488_v39 = vpop.permute.xlu0 %487  ;;  %v762_v24 = vsel %vm750_vm9, %v745_v13, %v496_v52 }
  0xb3   : > { %v754_v48 = vsel %vm750_vm9, %v737_v56, %v488_v39 }
  0xb5   : > { %v530_v63 = vpop.permute.xlu1 %529 }
  0xb6   : > { %v522_v38 = vpop.permute.xlu0 %521  ;;  %v779_v32 = vsel %vm767_vm10, %v762_v24, %v530_v63 }
  0xb7   : > { %v771_v15 = vsel %vm767_vm10, %v754_v48, %v522_v38 }
  0xb9   : > { %v584_v19 = vpop.permute.xlu1 %583 }
  0xba   : > { %v576_v11 = vpop.permute.xlu0 %575  ;;  %v796_v14 = vsel %vm784_vm11, %v779_v32, %v584_v19 }
  0xbb   : > { %v788_v9 = vsel %vm784_vm11, %v771_v15, %v576_v11 }
  0xbd   : > { %v618_v60 = vpop.permute.xlu1 %617 }
  0xbe   : > { %v610_v34 = vpop.permute.xlu0 %609  ;;  %v813_v0 = vsel %vm801_vm12, %v796_v14, %v618_v60 }
  0xbf   : > { %v805_v33 = vsel %vm801_vm12, %v788_v9, %v610_v34 }
  0xc1   : > { %v653_v55 = vpop.permute.xlu1 %652 }
  0xc2   : > { %v645_v10 = vpop.permute.xlu0 %644  ;;  %v830_v51 = vsel %vm818_vm13, %v813_v0, %v653_v55 }
  0xc3   : > { %v822_v57 = vsel %vm818_vm13, %v805_v33, %v645_v10 }
  0xc5   : > { %v710_v31 = vpop.permute.xlu1 %709 }
  0xc6   : > { %v852_v46 = vsel %vm835_vm14, %v830_v51, %v710_v31  ;;  %v702_v5 = vpop.permute.xlu0 %701  ;;  %v2104_v51 = vld [vmem:[%s2157_s4] ss:$0 sm:$0xff] }
  0xc7   : > { %1036 = vmatmul.mubr.bf16.gmra.mxu1 %v852_v46  ;;  %v840_v40 = vsel %vm835_vm14, %v822_v57, %v702_v5 }
  0xc8   : > { %1201 = vmatprep.mubr.msk.bf16.mxu1 %vm733_vm8, %v1956_v41  ;;  %1004 = vmatmul.mubr.bf16.gmra.mxu0 %v840_v40 }
  0xc9   : > { %v455_v3 = vpop.permute.xlu1 %454  ;;  %1197 = vmatprep.mubr.msk.bf16.mxu0 %vm733_vm8, %v722_v27 }
  0xca   : > { %v447_v30 = vpop.permute.xlu0 %446  ;;  %v747_v23 = vsel %vm733_vm8, %v1597_v49, %v455_v3 }
  0xcb   : > { %v739_v41 = vsel %vm733_vm8, %v1555_v26, %v447_v30 }
  0xcd   : > { %v498_v35 = vpop.permute.xlu1 %497 }
  0xce   : > { %v490_v59 = vpop.permute.xlu0 %489  ;;  %v764_v37 = vsel %vm750_vm9, %v747_v23, %v498_v35 }
  0xcf   : > { %v756_v8 = vsel %vm750_vm9, %v739_v41, %v490_v59 }
  0xd1   : > { %v532_v6 = vpop.permute.xlu1 %531 }
  0xd2   : > { %v524_v62 = vpop.permute.xlu0 %523  ;;  %v781_v61 = vsel %vm767_vm10, %v764_v37, %v532_v6 }
  0xd3   : > { %v773_v45 = vsel %vm767_vm10, %v756_v8, %v524_v62 }
  0xd5   : > { %v586_v16 = vpop.permute.xlu1 %585 }
  0xd6   : > { %v578_v50 = vpop.permute.xlu0 %577  ;;  %v798_v47 = vsel %vm784_vm11, %v781_v61, %v586_v16 }
  0xd7   : > { %v790_v25 = vsel %vm784_vm11, %v773_v45, %v578_v50 }
  0xd9   : > { %v620_v29 = vpop.permute.xlu1 %619 }
  0xda   : > { %v612_v53 = vpop.permute.xlu0 %611  ;;  %v815_v22 = vsel %vm801_vm12, %v798_v47, %v620_v29 }
  0xdb   : > { %v807_v28 = vsel %vm801_vm12, %v790_v25, %v612_v53 }
  0xdd   : > { %v655_v58 = vpop.permute.xlu1 %654 }
  0xde   : > { %v647_v43 = vpop.permute.xlu0 %646  ;;  %v832_v49 = vsel %vm818_vm13, %v815_v22, %v655_v58 }
  0xdf   : > { %v824_v2 = vsel %vm818_vm13, %v807_v28, %v647_v43 }
  0xe1   : > { %v712_v4 = vpop.permute.xlu1 %711 }
  0xe2   : > { %v855_v26 = vsel %vm835_vm14, %v832_v49, %v712_v4  ;;  %v704_v18 = vpop.permute.xlu0 %703 }
  0xe3   : > { %1044 = vmatmul.mubr.bf16.gmra.mxu1 %v855_v26  ;;  %v843_v36 = vsel %vm835_vm14, %v824_v2, %v704_v18 }
  0xe4   : > { %1202 = vmatprep.mubr.msk.bf16.mxu1 %vm733_vm8, %v2007_v1  ;;  %1012 = vmatmul.mubr.bf16.gmra.mxu0 %v843_v36 }
  0xe5   : > { %v457_v12 = vpop.permute.xlu1 %456  ;;  %1198 = vmatprep.mubr.msk.bf16.mxu0 %vm733_vm8, %v2004_v44 }
  0xe6   : > { %v449_v42 = vpop.permute.xlu0 %448  ;;  %v749_v11 = vsel %vm733_vm8, %v1722_v20, %v457_v12 }
  0xe7   : > { %v741_v34 = vsel %vm733_vm8, %v1724_v21, %v449_v42 }
  0xe9   : > { %v500_v7 = vpop.permute.xlu1 %499 }
  0xea   : > { %v492_v17 = vpop.permute.xlu0 %491  ;;  %v766_v60 = vsel %vm750_vm9, %v749_v11, %v500_v7 }
  0xeb   : > { %v758_v13 = vsel %vm750_vm9, %v741_v34, %v492_v17 }
  0xed   : > { %v534_v54 = vpop.permute.xlu1 %533 }
  0xee   : > { %v526_v52 = vpop.permute.xlu0 %525  ;;  %v783_v44 = vsel %vm767_vm10, %v766_v60, %v534_v54 }
  0xef   : > { %v775_v56 = vsel %vm767_vm10, %v758_v13, %v526_v52 }
  0xf1   : > { %v588_v39 = vpop.permute.xlu1 %587 }
  0xf2   : > { %v580_v63 = vpop.permute.xlu0 %579  ;;  %v800_v24 = vsel %vm784_vm11, %v783_v44, %v588_v39 }
  0xf3   : > { %v792_v48 = vsel %vm784_vm11, %v775_v56, %v580_v63 }
  0xf5   : > { %v622_v38 = vpop.permute.xlu1 %621 }
  0xf6   : > { %v614_v19 = vpop.permute.xlu0 %613  ;;  %v817_v32 = vsel %vm801_vm12, %v800_v24, %v622_v38 }
  0xf7   : > { %v809_v10 = vsel %vm801_vm12, %v792_v48, %v614_v19 }
  0xf9   : > { %v657_v1 = vpop.permute.xlu1 %656 }
  0xfa   : > { %v649_v55 = vpop.permute.xlu0 %648  ;;  %v834_v20 = vsel %vm818_vm13, %v817_v32, %v657_v1 }
  0xfb   : > { %v826_v15 = vsel %vm818_vm13, %v809_v10, %v649_v55 }
  0xfd   : > { %v714_v14 = vpop.permute.xlu1 %713 }
  0xfe   : > { %v858_v21 = vsel %vm835_vm14, %v834_v20, %v714_v14  ;;  %v706_v0 = vpop.permute.xlu0 %705 }
  0xff   : > { %1052 = vmatmul.mubr.bf16.gmra.mxu1 %v858_v21  ;;  %v846_v9 = vsel %vm835_vm14, %v826_v15, %v706_v0 }
 0x100   : > { %1020 = vmatmul.mubr.bf16.gmra.mxu0 %v846_v9 }
 0x16b   : > { %v1029_v31 = vpop.f32.mrf.mxu1 }
 0x16c   : > { %v1030_v33 = vadd.f32 %v2104_v51, %v1029_v31  ;;  %v997_v46 = vpop.f32.mrf.mxu0 }
 0x16d   : > { %v1031_v57 = vpop.f32.mrf.mxu1  ;;  %v998_v5 = vadd.f32 %v2104_v51, %v997_v46 }
 0x16e   : > { %1310 = vtanh.f32 %v1030_v33  ;;  %v999_v27 = vpop.f32.mrf.mxu0 }
 0x16f   : > { %v1032_v40 = vpop.f32.mrf.mxu1  ;;  %1312 = vtanh.f32 %v998_v5 }
 0x170   : > { %v1033_v3 = vadd.f32 %v2104_v51, %v1032_v40  ;;  %v1000_v30 = vpop.f32.mrf.mxu0 }
 0x171   : > { %v1034_v35 = vpop.f32.mrf.mxu1  ;;  %v1001_v59 = vadd.f32 %v2104_v51, %v1000_v30 }
 0x172   : > { %1314 = vtanh.f32 %v1033_v3  ;;  %v1002_v6 = vpop.f32.mrf.mxu0 }
 0x173   : > { %1316 = vtanh.f32 %v1001_v59 }
 0x17b   : > { %v1311_v62 = vpop.eup %1310 }
 0x17c   : > { %1084 = vst [vmem:[%s2114_s14 + $0x40] sm:$0xff] %v1311_v62  ;;  %v1313_v16 = vpop.eup %1312 }
 0x17d   : > { %1076 = vst [vmem:[%s2114_s14] sm:$0xff] %v1313_v16 }
 0x17f   : > { %v1315_v50 = vpop.eup %1314 }
 0x180   : > { %1085 = vst [vmem:[%s2114_s14 + $0x48] sm:$0xff] %v1315_v50  ;;  %v1317_v29 = vpop.eup %1316 }
 0x181   : > { %1077 = vst [vmem:[%s2114_s14 + $0x8] sm:$0xff] %v1317_v29 }
 0x187   : > { %v1037_v53 = vpop.f32.mrf.mxu1 }
 0x188   : > { %v1038_v23 = vadd.f32 %v2104_v51, %v1037_v53  ;;  %v1005_v37 = vpop.f32.mrf.mxu0 }
 0x189   : > { %v1039_v58 = vpop.f32.mrf.mxu1  ;;  %v1006_v41 = vadd.f32 %v2104_v51, %v1005_v37 }
 0x18a   : > { %1318 = vtanh.f32 %v1038_v23  ;;  %v1007_v61 = vpop.f32.mrf.mxu0 }
 0x18b   : > { %v1040_v8 = vpop.f32.mrf.mxu1  ;;  %1320 = vtanh.f32 %v1006_v41 }
 0x18c   : > { %v1041_v47 = vadd.f32 %v2104_v51, %v1040_v8  ;;  %v1008_v43 = vpop.f32.mrf.mxu0 }
 0x18d   : > { %v1042_v45 = vpop.f32.mrf.mxu1  ;;  %v1009_v22 = vadd.f32 %v2104_v51, %v1008_v43 }
 0x18e   : > { %1322 = vtanh.f32 %v1041_v47  ;;  %v1010_v25 = vpop.f32.mrf.mxu0 }
 0x18f   : > { %1324 = vtanh.f32 %v1009_v22 }
 0x197   : > { %v1319_v49 = vpop.eup %1318 }
 0x198   : > { %1086 = vst [vmem:[%s2114_s14 + $0x50] sm:$0xff] %v1319_v49  ;;  %v1321_v4 = vpop.eup %1320 }
 0x199   : > { %1078 = vst [vmem:[%s2114_s14 + $0x10] sm:$0xff] %v1321_v4 }
 0x19b   : > { %v1323_v28 = vpop.eup %1322 }
 0x19c   : > { %1087 = vst [vmem:[%s2114_s14 + $0x58] sm:$0xff] %v1323_v28  ;;  %v1325_v26 = vpop.eup %1324 }
 0x19d   : > { %1079 = vst [vmem:[%s2114_s14 + $0x18] sm:$0xff] %v1325_v26 }
 0x1a3   : > { %v1045_v2 = vpop.f32.mrf.mxu1 }
 0x1a4   : > { %v1046_v18 = vadd.f32 %v2104_v51, %v1045_v2  ;;  %v1013_v36 = vpop.f32.mrf.mxu0 }
 0x1a5   : > { %v1047_v12 = vpop.f32.mrf.mxu1  ;;  %v1014_v42 = vadd.f32 %v2104_v51, %v1013_v36 }
 0x1a6   : > { %1326 = vtanh.f32 %v1046_v18  ;;  %v1015_v7 = vpop.f32.mrf.mxu0 }
 0x1a7   : > { %v1048_v17 = vpop.f32.mrf.mxu1  ;;  %1328 = vtanh.f32 %v1014_v42 }
 0x1a8   : > { %v1049_v54 = vadd.f32 %v2104_v51, %v1048_v17  ;;  %v1016_v52 = vpop.f32.mrf.mxu0 }
 0x1a9   : > { %v1050_v39 = vpop.f32.mrf.mxu1  ;;  %v1017_v63 = vadd.f32 %v2104_v51, %v1016_v52 }
 0x1aa   : > { %1330 = vtanh.f32 %v1049_v54  ;;  %v1018_v38 = vpop.f32.mrf.mxu0 }
 0x1ab   : > { %1332 = vtanh.f32 %v1017_v63 }
 0x1b3   : > { %v1327_v19 = vpop.eup %1326 }
 0x1b4   : > { %1088 = vst [vmem:[%s2114_s14 + $0x60] sm:$0xff] %v1327_v19  ;;  %v1329_v11 = vpop.eup %1328 }
 0x1b5   : > { %1080 = vst [vmem:[%s2114_s14 + $0x20] sm:$0xff] %v1329_v11 }
 0x1b7   : > { %v1331_v60 = vpop.eup %1330 }
 0x1b8   : > { %1089 = vst [vmem:[%s2114_s14 + $0x68] sm:$0xff] %v1331_v60  ;;  %v1333_v1 = vpop.eup %1332 }
 0x1b9   : > { %1081 = vst [vmem:[%s2114_s14 + $0x28] sm:$0xff] %v1333_v1 }
 0x1bf   : > { %v1053_v34 = vpop.f32.mrf.mxu1 }
 0x1c0   : > { %v1054_v44 = vadd.f32 %v2104_v51, %v1053_v34  ;;  %v1021_v13 = vpop.f32.mrf.mxu0 }
 0x1c1   : > { %v1055_v24 = vpop.f32.mrf.mxu1  ;;  %v1022_v55 = vadd.f32 %v2104_v51, %v1021_v13 }
 0x1c2   : > { %1334 = vtanh.f32 %v1054_v44  ;;  %v1023_v56 = vpop.f32.mrf.mxu0 }
 0x1c3   : > { %v1056_v32 = vpop.f32.mrf.mxu1  ;;  %1336 = vtanh.f32 %v1022_v55 }
 0x1c4   : > { %v1057_v48 = vadd.f32 %v2104_v51, %v1056_v32  ;;  %v1024_v20 = vpop.f32.mrf.mxu0 }
 0x1c5   : > { %v1058_v14 = vpop.f32.mrf.mxu1  ;;  %v1025_v10 = vadd.f32 %v2104_v51, %v1024_v20 }
 0x1c6   : > { %1338 = vtanh.f32 %v1057_v48  ;;  %v1026_v21 = vpop.f32.mrf.mxu0 }
 0x1c7   : > { %1340 = vtanh.f32 %v1025_v10 }
 0x1cf   : > { %v1335_v15 = vpop.eup %1334 }
 0x1d0   : > { %1090 = vst [vmem:[%s2114_s14 + $0x70] sm:$0xff] %v1335_v15  ;;  %v1337_v0 = vpop.eup %1336 }
 0x1d1   : > { %1082 = vst [vmem:[%s2114_s14 + $0x30] sm:$0xff] %v1337_v0 }
 0x1d3   : > { %v1339_v9 = vpop.eup %1338 }
 0x1d4   : > { %1091 = vst [vmem:[%s2114_s14 + $0x78] sm:$0xff] %v1339_v9  ;;  %v1341_v31 = vpop.eup %1340 }
 0x1d5   : > { %1083 = vst [vmem:[%s2114_s14 + $0x38] sm:$0xff] %v1341_v31 }
 0x1d6 PF: > { %s15_s20 = sadd.s32 1, %s1364_s20   ;;  %s2159_s18 = smov %s1360_s19 }
 0x1d7   : > { %p12_p5 = scmp.ge.s32.totalorder %s15_s20, 4   ;;  %s2160_s19 = smov %s2162_s21 }
 0x1d9   :  { %14 = sbr.rel (!%p12_p5) target bundleno = 2 (0x2), region = 71 }

</bundles_post_ra>
